<compile_context>
chip_gen: v6e
topology: v6e:2x2x1
jax: 0.10.0
libtpu: 0.0.40
codegen_flags: <defaults>
</compile_context>

<pallas_src>
import jax
import jax.numpy as jnp
from jax.experimental import pallas as pl
from jax.experimental.pallas import tpu as pltpu

INPUT_SIZE = 2
HIDDEN_SIZE = 8
OUTPUT_SIZE = 2
OUT_PAD = 128          # lane-dense padded output feature dim
DEFAULT_TILE = 512     # batch rows per grid step (tiny VMEM footprint: ~0.5 MiB dbl-buffered)


def _round_up(n, m):
    return ((n + m - 1) // m) * m


def simple_nn_kernel(x_ref, w1_ref, b1_ref, w2_ref, b2_ref, o_ref):
    x = x_ref[...]           # (TB, INPUT_SIZE)
    w1 = w1_ref[...]         # (INPUT_SIZE, HIDDEN_SIZE)
    w2 = w2_ref[...]         # (HIDDEN_SIZE, OUT_PAD)  (zero-padded beyond OUTPUT_SIZE)

    # fc1: unrolled VPU broadcast-FMA over the K=2 input features (MXU would
    # waste >99% of a systolic pass at this size). Bias is the accumulator seed.
    h = b1_ref[...]          # (1, HIDDEN_SIZE) -> broadcasts over TB rows
    for k in range(INPUT_SIZE):
        h = h + x[:, k:k + 1] * w1[k:k + 1, :]

    # fc2 activation: Tanh on the EUP.
    h = jnp.tanh(h)          # (TB, HIDDEN_SIZE)

    # fc3: unrolled VPU broadcast-FMA over the 8 hidden units, accumulating
    # directly into the lane-dense (TB, 128) output slab.
    out = b2_ref[...]        # (1, OUT_PAD)
    for j in range(HIDDEN_SIZE):
        out = out + h[:, j:j + 1] * w2[j:j + 1, :]

    o_ref[...] = out.astype(o_ref.dtype)   # full-lane stores, no vst.msk


def simple_nn_forward(x, w1, b1, w2, b2, *, tile_batch=DEFAULT_TILE):
    """x: (B, INPUT_SIZE); w1: (in, hidden); b1: (1, hidden); w2: (hidden, out); b2: (1, out)."""
    B = x.shape[0]

    # Pad the output feature dim to 128 lanes (zero columns) -> lane-dense stores.
    w2p = jnp.zeros((HIDDEN_SIZE, OUT_PAD), w2.dtype).at[:, :OUTPUT_SIZE].set(w2)
    b2p = jnp.zeros((1, OUT_PAD), b2.dtype).at[:, :OUTPUT_SIZE].set(b2)

    # Batch tiling: TB multiple of 8 (sublane), pad B up to a multiple of TB.
    TB = min(tile_batch, _round_up(B, 8))
    Bp = _round_up(B, TB)
    if Bp != B:
        x = jnp.pad(x, ((0, Bp - B), (0, 0)))
    grid = (Bp // TB,)

    cost = pl.CostEstimate(
        flops=2 * Bp * (INPUT_SIZE * HIDDEN_SIZE + HIDDEN_SIZE * OUTPUT_SIZE),
        transcendentals=Bp * HIDDEN_SIZE,
        bytes_accessed=4 * (Bp * INPUT_SIZE + Bp * OUT_PAD
                            + INPUT_SIZE * HIDDEN_SIZE + HIDDEN_SIZE
                            + HIDDEN_SIZE * OUT_PAD + OUT_PAD),
    )

    out = pl.pallas_call(
        simple_nn_kernel,
        out_shape=jax.ShapeDtypeStruct((Bp, OUT_PAD), jnp.float32),
        grid_spec=pl.GridSpec(
            grid=grid,
            in_specs=[
                pl.BlockSpec((TB, INPUT_SIZE), lambda i: (i, 0)),   # x: tiled over batch
                pl.BlockSpec(w1.shape, lambda i: (0, 0)),           # weights stay resident
                pl.BlockSpec(b1.shape, lambda i: (0, 0)),
                pl.BlockSpec(w2p.shape, lambda i: (0, 0)),
                pl.BlockSpec(b2p.shape, lambda i: (0, 0)),
            ],
            out_specs=pl.BlockSpec((TB, OUT_PAD), lambda i: (i, 0)),
        ),
        compiler_params=pltpu.CompilerParams(
            dimension_semantics=("parallel",),    # batch tiles are independent (v7x: 2 TCs)
        ),
        cost_estimate=cost,
    )(x, w1, b1, w2p, b2p)

    return out[:B, :OUTPUT_SIZE]


def init_params(key):
    # Deterministic synthetic init mimicking nn.Linear's uniform(-1/sqrt(fan_in), ...)
    k1, k2, k3, k4 = jax.random.split(key, 4)
    bound1 = 1.0 / jnp.sqrt(INPUT_SIZE)
    bound2 = 1.0 / jnp.sqrt(HIDDEN_SIZE)
    # stored as (in, out) so the kernel computes x @ W + b
    w1 = jax.random.uniform(k1, (INPUT_SIZE, HIDDEN_SIZE), jnp.float32, -bound1, bound1)
    b1 = jax.random.uniform(k2, (1, HIDDEN_SIZE), jnp.float32, -bound1, bound1)
    w2 = jax.random.uniform(k3, (HIDDEN_SIZE, OUTPUT_SIZE), jnp.float32, -bound2, bound2)
    b2 = jax.random.uniform(k4, (1, OUTPUT_SIZE), jnp.float32, -bound2, bound2)
    return w1, b1, w2, b2


if __name__ == "__main__":
    key = jax.random.PRNGKey(0)
    kx, kp = jax.random.split(key)
    batch = 1024  # 2 grid steps of 512 rows; still only ~8 KiB of input data
    x = jax.random.normal(kx, (batch, INPUT_SIZE), jnp.float32)
    w1, b1, w2, b2 = init_params(kp)

    out = jax.block_until_ready(simple_nn_forward(x, w1, b1, w2, b2))

    # Pure-JAX reference check
    ref = jnp.tanh(x @ w1 + b1) @ w2 + b2
    assert out.shape == (batch, OUTPUT_SIZE)
    assert jnp.allclose(out, ref, atol=1e-5), "mismatch vs reference"
    print("KERNEL_OK")
</pallas_src>

<mosaic_0001>
module attributes {stable_mosaic.version = 11 : i64} {
  func.func @simple_nn_kernel(%arg0: i32, %arg1: memref<512x2xf32, #tpu.memory_space<vmem>>, %arg2: memref<2x8xf32, #tpu.memory_space<vmem>>, %arg3: memref<1x8xf32, #tpu.memory_space<vmem>>, %arg4: memref<8x128xf32, #tpu.memory_space<vmem>>, %arg5: memref<1x128xf32, #tpu.memory_space<vmem>>, %arg6: memref<512x128xf32, #tpu.memory_space<vmem>>) attributes {dimension_semantics = [#tpu.dimension_semantics<parallel>], iteration_bounds = array<i64: 2>, scalar_prefetch = 0 : i64, scratch_operands = 0 : i64, tpu.core_type = #tpu.core_type<tc>, window_params = [{transform_indices = @transform_0, window_bounds = array<i64: 512, 2>}, {pipeline_mode = #tpu.pipeline_mode<synchronous>, transform_indices = @transform_1, window_bounds = array<i64: 2, 8>}, {pipeline_mode = #tpu.pipeline_mode<synchronous>, transform_indices = @transform_2, window_bounds = array<i64: 1, 8>}, {pipeline_mode = #tpu.pipeline_mode<synchronous>, transform_indices = @transform_3, window_bounds = array<i64: 8, 128>}, {pipeline_mode = #tpu.pipeline_mode<synchronous>, transform_indices = @transform_4, window_bounds = array<i64: 1, 128>}, {transform_indices = @transform_5, window_bounds = array<i64: 512, 128>}]} {
    %c0 = arith.constant 0 : index
    %c0_0 = arith.constant 0 : index
    %0 = vector.load %arg1[%c0, %c0_0] : memref<512x2xf32, #tpu.memory_space<vmem>>, vector<512x2xf32>
    %c0_1 = arith.constant 0 : index
    %c0_2 = arith.constant 0 : index
    %1 = vector.load %arg2[%c0_1, %c0_2] : memref<2x8xf32, #tpu.memory_space<vmem>>, vector<2x8xf32>
    %c0_3 = arith.constant 0 : index
    %c0_4 = arith.constant 0 : index
    %2 = vector.load %arg4[%c0_3, %c0_4] : memref<8x128xf32, #tpu.memory_space<vmem>>, vector<8x128xf32>
    %c0_5 = arith.constant 0 : index
    %c0_6 = arith.constant 0 : index
    %3 = vector.load %arg3[%c0_5, %c0_6] : memref<1x8xf32, #tpu.memory_space<vmem>>, vector<1x8xf32>
    %4 = vector.extract_strided_slice %0 {offsets = [0, 0], sizes = [512, 1], strides = [1, 1]} : vector<512x2xf32> to vector<512x1xf32>
    %5 = vector.extract_strided_slice %1 {offsets = [0, 0], sizes = [1, 8], strides = [1, 1]} : vector<2x8xf32> to vector<1x8xf32>
    %6 = vector.broadcast %4 : vector<512x1xf32> to vector<512x8xf32>
    %7 = vector.broadcast %5 : vector<1x8xf32> to vector<512x8xf32>
    %8 = arith.mulf %6, %7 : vector<512x8xf32>
    %9 = vector.broadcast %3 : vector<1x8xf32> to vector<512x8xf32>
    %10 = arith.addf %9, %8 : vector<512x8xf32>
    %11 = vector.extract_strided_slice %0 {offsets = [0, 1], sizes = [512, 1], strides = [1, 1]} : vector<512x2xf32> to vector<512x1xf32>
    %12 = vector.extract_strided_slice %1 {offsets = [1, 0], sizes = [1, 8], strides = [1, 1]} : vector<2x8xf32> to vector<1x8xf32>
    %13 = vector.broadcast %11 : vector<512x1xf32> to vector<512x8xf32>
    %14 = vector.broadcast %12 : vector<1x8xf32> to vector<512x8xf32>
    %15 = arith.mulf %13, %14 : vector<512x8xf32>
    %16 = arith.addf %10, %15 : vector<512x8xf32>
    %17 = math.tanh %16 : vector<512x8xf32>
    %c0_7 = arith.constant 0 : index
    %c0_8 = arith.constant 0 : index
    %18 = vector.load %arg5[%c0_7, %c0_8] : memref<1x128xf32, #tpu.memory_space<vmem>>, vector<1x128xf32>
    %19 = vector.extract_strided_slice %17 {offsets = [0, 0], sizes = [512, 1], strides = [1, 1]} : vector<512x8xf32> to vector<512x1xf32>
    %20 = vector.extract_strided_slice %2 {offsets = [0, 0], sizes = [1, 128], strides = [1, 1]} : vector<8x128xf32> to vector<1x128xf32>
    %21 = vector.broadcast %19 : vector<512x1xf32> to vector<512x128xf32>
    %22 = vector.broadcast %20 : vector<1x128xf32> to vector<512x128xf32>
    %23 = arith.mulf %21, %22 : vector<512x128xf32>
    %24 = vector.broadcast %18 : vector<1x128xf32> to vector<512x128xf32>
    %25 = arith.addf %24, %23 : vector<512x128xf32>
    %26 = vector.extract_strided_slice %17 {offsets = [0, 1], sizes = [512, 1], strides = [1, 1]} : vector<512x8xf32> to vector<512x1xf32>
    %27 = vector.extract_strided_slice %2 {offsets = [1, 0], sizes = [1, 128], strides = [1, 1]} : vector<8x128xf32> to vector<1x128xf32>
    %28 = vector.broadcast %26 : vector<512x1xf32> to vector<512x128xf32>
    %29 = vector.broadcast %27 : vector<1x128xf32> to vector<512x128xf32>
    %30 = arith.mulf %28, %29 : vector<512x128xf32>
    %31 = arith.addf %25, %30 : vector<512x128xf32>
    %32 = vector.extract_strided_slice %17 {offsets = [0, 2], sizes = [512, 1], strides = [1, 1]} : vector<512x8xf32> to vector<512x1xf32>
    %33 = vector.extract_strided_slice %2 {offsets = [2, 0], sizes = [1, 128], strides = [1, 1]} : vector<8x128xf32> to vector<1x128xf32>
    %34 = vector.broadcast %32 : vector<512x1xf32> to vector<512x128xf32>
    %35 = vector.broadcast %33 : vector<1x128xf32> to vector<512x128xf32>
    %36 = arith.mulf %34, %35 : vector<512x128xf32>
    %37 = arith.addf %31, %36 : vector<512x128xf32>
    %38 = vector.extract_strided_slice %17 {offsets = [0, 3], sizes = [512, 1], strides = [1, 1]} : vector<512x8xf32> to vector<512x1xf32>
    %39 = vector.extract_strided_slice %2 {offsets = [3, 0], sizes = [1, 128], strides = [1, 1]} : vector<8x128xf32> to vector<1x128xf32>
    %40 = vector.broadcast %38 : vector<512x1xf32> to vector<512x128xf32>
    %41 = vector.broadcast %39 : vector<1x128xf32> to vector<512x128xf32>
    %42 = arith.mulf %40, %41 : vector<512x128xf32>
    %43 = arith.addf %37, %42 : vector<512x128xf32>
    %44 = vector.extract_strided_slice %17 {offsets = [0, 4], sizes = [512, 1], strides = [1, 1]} : vector<512x8xf32> to vector<512x1xf32>
    %45 = vector.extract_strided_slice %2 {offsets = [4, 0], sizes = [1, 128], strides = [1, 1]} : vector<8x128xf32> to vector<1x128xf32>
    %46 = vector.broadcast %44 : vector<512x1xf32> to vector<512x128xf32>
    %47 = vector.broadcast %45 : vector<1x128xf32> to vector<512x128xf32>
    %48 = arith.mulf %46, %47 : vector<512x128xf32>
    %49 = arith.addf %43, %48 : vector<512x128xf32>
    %50 = vector.extract_strided_slice %17 {offsets = [0, 5], sizes = [512, 1], strides = [1, 1]} : vector<512x8xf32> to vector<512x1xf32>
    %51 = vector.extract_strided_slice %2 {offsets = [5, 0], sizes = [1, 128], strides = [1, 1]} : vector<8x128xf32> to vector<1x128xf32>
    %52 = vector.broadcast %50 : vector<512x1xf32> to vector<512x128xf32>
    %53 = vector.broadcast %51 : vector<1x128xf32> to vector<512x128xf32>
    %54 = arith.mulf %52, %53 : vector<512x128xf32>
    %55 = arith.addf %49, %54 : vector<512x128xf32>
    %56 = vector.extract_strided_slice %17 {offsets = [0, 6], sizes = [512, 1], strides = [1, 1]} : vector<512x8xf32> to vector<512x1xf32>
    %57 = vector.extract_strided_slice %2 {offsets = [6, 0], sizes = [1, 128], strides = [1, 1]} : vector<8x128xf32> to vector<1x128xf32>
    %58 = vector.broadcast %56 : vector<512x1xf32> to vector<512x128xf32>
    %59 = vector.broadcast %57 : vector<1x128xf32> to vector<512x128xf32>
    %60 = arith.mulf %58, %59 : vector<512x128xf32>
    %61 = arith.addf %55, %60 : vector<512x128xf32>
    %62 = vector.extract_strided_slice %17 {offsets = [0, 7], sizes = [512, 1], strides = [1, 1]} : vector<512x8xf32> to vector<512x1xf32>
    %63 = vector.extract_strided_slice %2 {offsets = [7, 0], sizes = [1, 128], strides = [1, 1]} : vector<8x128xf32> to vector<1x128xf32>
    %64 = vector.broadcast %62 : vector<512x1xf32> to vector<512x128xf32>
    %65 = vector.broadcast %63 : vector<1x128xf32> to vector<512x128xf32>
    %66 = arith.mulf %64, %65 : vector<512x128xf32>
    %67 = arith.addf %61, %66 : vector<512x128xf32>
    %c0_9 = arith.constant 0 : index
    %c0_10 = arith.constant 0 : index
    %68 = vector.load %arg6[%c0_9, %c0_10] : memref<512x128xf32, #tpu.memory_space<vmem>>, vector<512x128xf32>
    tpu.vector_store %arg6[%c0_9, %c0_10], %67 {strides = array<i32>} : memref<512x128xf32, #tpu.memory_space<vmem>>, vector<512x128xf32>,
    return
  }
  func.func @transform_0(%arg0: i32) -> (i32, i32) {
    %c0_i32 = arith.constant 0 : i32
    %c0_i32_0 = arith.constant 0 : i32
    return %arg0, %c0_i32 : i32, i32
  }
  func.func @transform_1(%arg0: i32) -> (i32, i32) {
    %c0_i32 = arith.constant 0 : i32
    %c0_i32_0 = arith.constant 0 : i32
    %c0_i32_1 = arith.constant 0 : i32
    return %c0_i32, %c0_i32_0 : i32, i32
  }
  func.func @transform_2(%arg0: i32) -> (i32, i32) {
    %c0_i32 = arith.constant 0 : i32
    %c0_i32_0 = arith.constant 0 : i32
    %c0_i32_1 = arith.constant 0 : i32
    return %c0_i32, %c0_i32_0 : i32, i32
  }
  func.func @transform_3(%arg0: i32) -> (i32, i32) {
    %c0_i32 = arith.constant 0 : i32
    %c0_i32_0 = arith.constant 0 : i32
    %c0_i32_1 = arith.constant 0 : i32
    return %c0_i32, %c0_i32_0 : i32, i32
  }
  func.func @transform_4(%arg0: i32) -> (i32, i32) {
    %c0_i32 = arith.constant 0 : i32
    %c0_i32_0 = arith.constant 0 : i32
    %c0_i32_1 = arith.constant 0 : i32
    return %c0_i32, %c0_i32_0 : i32, i32
  }
  func.func @transform_5(%arg0: i32) -> (i32, i32) {
    %c0_i32 = arith.constant 0 : i32
    %c0_i32_0 = arith.constant 0 : i32
    return %arg0, %c0_i32 : i32, i32
  }
}

</mosaic_0001>

<bundles_post_ra>
// kernel: tpu_custom_call.1
= control target key start
LH: loop header
LB: loop body
LE: loop exit
PB: predicated region body
PF: predicated region fallthrough
CT: control target
= control target key end

     0   :  { %10 = vsyncpa [#allocation3], 0  ;;  %s8115_s0 = inlined_call_operand.vmem [shape: f32[1024,2], index: 0, kind: input, shape index: {}]   ;;  %s8116_s1 = inlined_call_operand.vmem [shape: f32[2,8], index: 1, kind: input, shape index: {}]   ;;  %s8117_s2 = inlined_call_operand.vmem [shape: f32[1,8], index: 2, kind: input, shape index: {}]   ;;  %s8118_s3 = inlined_call_operand.vmem [shape: f32[8,128], index: 3, kind: input, shape index: {}]   ;;  %s8119_s4 = inlined_call_operand.vmem [shape: f32[1,128], index: 4, kind: input, shape index: {}]   ;;  %s8120_s5 = inlined_call_operand.hbm [shape: f32[1024,128], index: 5, kind: output, shape index: {}]  }
   0x1   :  { %12 = vsyncpa [#allocation3 + $0x1], 0  ;;  %s4836_s18 = smov 0   ;;  %s4838_s19 = smov 0  }
   0x2   :  { %s4840_s20 = smov 0   ;;  %s4842_s21 = smov 0  }
   0x3 LB: > { %s4857_s22 = sadd.s32 4294967295, %s4793_s21   ;;  %s4518_s23 = sadd.s32 4294967294, %s4793_s21   ;;  %s4793_s21 = sphi %s4842_s21, %s9170_s21   ;;  %s4789_s20 = sphi %s4840_s20, %s9169_s20   ;;  %s4785_s19 = sphi %s4838_s19, %s9168_s19   ;;  %s4781_s18 = sphi %s4836_s18, %s9167_s18  }
   0x4   : > { %s4861_s24 = sadd.s32 1, %s4793_s21   ;;  %s135_s25 = sadd.s32 1, %s4789_s20 }
   0x5   : > { %s132_s26 = ssub.s32 %s4793_s21, %s4861_s24  ;;  %p145_p0 = scmp.ne.s32.totalorder %s4789_s20, %s4785_s19 }
   0x6   : > { %p133_p1 = scmp.eq.s32.totalorder %s132_s26, 0  ;;  %p146_p2 = scmp.eq.s32.totalorder %s4857_s22, 1 }
   0x7   : > { %p151_p3 = scmp.ne.s32.totalorder %s4785_s19, %s4781_s18  ;;  %p152_p4 = scmp.eq.s32.totalorder %s4518_s23, 1 }
   0x8   : > { %s4872_s27 = scalar_select %p133_p1, %s4789_s20, %s135_s25  }
   0x9   : > { %p4874_p5 = por %p146_p2, %p145_p0  ;;  %p4878_p6 = por %p152_p4, %p151_p3 }
   0xa   : > { %p4521_p7 = scmp.ge.s32.totalorder %s4793_s21, 1  ;;  %p191_p8 = scmp.lt.s32.totalorder %s4793_s21, 3 }
   0xc   : > { %p192_p9 = pnand %p4521_p7, %p191_p8 }
   0xe   : > { %195 = sbr.rel (%p192_p9) target bundleno = 1625 (0x659), region = 40 }
  0x13   : > { %s4523_s30 = sshll.u32 %s4857_s22, 6  ;;  %v8121_v0 = vmov 1   ;;  %v8123_v1 = vmov 0   ;;  %s216_s26 = sand.u32 1, %s4785_s19  }
  0x14   : > { %4583 = vset.pattern.permute.xlu0 %v8121_v0  ;;  %4582 = vset.pattern.permute.xlu1 %v8123_v1  ;;  %p220_p10 = scmp.lt.s32.totalorder %s4523_s30, 127  ;;  %s4532_s11 = sshll.u32 %s4857_s22, 13 }
  0x15   : > { %s8068_s15 = scalar_lea.hbm %s8120_s5, %s4532_s11  ;;  %s8075_s22 = scalar_lea.sflag [#allocation3], %s216_s26 }
  0x16   : > { %s9172_s30 = smov (!%p220_p10, %s4523_s30), 127  ;;  %s4803_s17 = smov [#allocation2]  }
  0x17   : > { %s4524_s6 = sshll.u32 %s9172_s30, 3  ;;  %s6908_s30 = sshll.u32 %s216_s26, 9 }
  0x18   : > { %s4890_s9 = scalar_lea.vmem %s8115_s0, %s4524_s6  ;;  %s6953_s6 = scalar_lea.vmem [#allocation2], %s6908_s30 }
  0x19   : > { %v4893_v2 = vld [vmem:[%s4890_s9 + $0x10] sm:$0xff]  ;;  %v4896_v3 = vld [vmem:[%s4890_s9] sm:$0xff]  ;;  %v229_v4 = vld [vmem:[%s4890_s9 + $0x18] sm:$0xff]  ;;  %s4456_s12 = sshll.u32 %s6953_s6, 4  ;;  %s4737_s23 = sshll.u32 %s4803_s17, 4  ;;  %s8070_s12 = int_to_ptr.vmem [resolvable:$true] %s4456_s12  ;;  %s4738_s23 = int_to_ptr.vmem [resolvable:$false] %s4737_s23 }
  0x1a   : > { %305 = vperm.xlu1 %4582, %v4893_v2   ;;  %752 = vperm.xlu0 %4583, %v4896_v3   ;;  %v231_v5 = vld [vmem:[%s4890_s9 + $0x28] sm:$0xff]  ;;  %v233_v6 = vld [vmem:[%s4890_s9 + $0x38] sm:$0xff]  ;;  %v230_v40 = vld [vmem:[%s4890_s9 + $0x20] sm:$0xff]  ;;  %s4733_s16 = scalar_lea.vmem %s8070_s12, 8192  ;;  %s4739_s25 = scalar_lea.vmem %s4738_s23, 16384 }
  0x1b   : > { %v235_v7 = vld [vmem:[%s4890_s9 + $0x48] sm:$0xff]  ;;  %v237_v8 = vld [vmem:[%s4890_s9 + $0x58] sm:$0xff]  ;;  %v232_v43 = vld [vmem:[%s4890_s9 + $0x30] sm:$0xff]  ;;  %p4734_p11 = scmp.ne.s32.totalorder %s8070_s12, %s4733_s16  ;;  %p4740_p0 = scmp.lt.s32.totalorder %s8070_s12, %s4738_s23 }
  0x1c   : > { %v239_v9 = vld [vmem:[%s4890_s9 + $0x68] sm:$0xff]  ;;  %v241_v10 = vld [vmem:[%s4890_s9 + $0x78] sm:$0xff]  ;;  %v234_v46 = vld [vmem:[%s4890_s9 + $0x40] sm:$0xff]  ;;  %p4741_p1 = scmp.lt.s32.totalorder %s4739_s25, %s4733_s16 }
  0x1d   : > { %v243_v11 = vld [vmem:[%s4890_s9 + $0x88] sm:$0xff]  ;;  %v245_v12 = vld [vmem:[%s4890_s9 + $0x98] sm:$0xff]  ;;  %v236_v49 = vld [vmem:[%s4890_s9 + $0x50] sm:$0xff]  ;;  %p4735_p12 = pnand %p4734_p11, %p4874_p5 }
  0x1e   : > { %310 = vperm.xlu1 %4582, %v229_v4   ;;  %764 = vperm.xlu0 %4583, %v229_v4   ;;  %v247_v13 = vld [vmem:[%s4890_s9 + $0xa8] sm:$0xff]  ;;  %v249_v14 = vld [vmem:[%s4890_s9 + $0xb8] sm:$0xff]  ;;  %v238_v52 = vld [vmem:[%s4890_s9 + $0x60] sm:$0xff]  ;;  %p4742_p2 = por %p4741_p1, %p4740_p0 }
  0x1f   : > { %v251_v15 = vld [vmem:[%s4890_s9 + $0xc8] sm:$0xff]  ;;  %v253_v16 = vld [vmem:[%s4890_s9 + $0xd8] sm:$0xff]  ;;  %v240_v55 = vld [vmem:[%s4890_s9 + $0x70] sm:$0xff]  ;;  %p4736_p13 = pneg %p4735_p12 }
  0x20   : > { %v255_v17 = vld [vmem:[%s4890_s9 + $0xe8] sm:$0xff]  ;;  %v257_v18 = vld [vmem:[%s4890_s9 + $0xf8] sm:$0xff]  ;;  %v242_v58 = vld [vmem:[%s4890_s9 + $0x80] sm:$0xff] }
  0x21   : > { %v259_v19 = vld [vmem:[%s4890_s9 + $0x108] sm:$0xff]  ;;  %v261_v20 = vld [vmem:[%s4890_s9 + $0x118] sm:$0xff]  ;;  %v244_v61 = vld [vmem:[%s4890_s9 + $0x90] sm:$0xff]  ;;  %p4743_p3 = pnand %p4742_p2, %p4736_p13 }
  0x22   : > { %320 = vperm.xlu1 %4582, %v231_v5   ;;  %772 = vperm.xlu0 %4583, %v231_v5   ;;  %v263_v21 = vld [vmem:[%s4890_s9 + $0x128] sm:$0xff]  ;;  %v265_v22 = vld [vmem:[%s4890_s9 + $0x138] sm:$0xff]  ;;  %v248_v5 = vld [vmem:[%s4890_s9 + $0xb0] sm:$0xff] }
  0x23   : > { %v267_v23 = vld [vmem:[%s4890_s9 + $0x148] sm:$0xff]  ;;  %v269_v24 = vld [vmem:[%s4890_s9 + $0x158] sm:$0xff] }
  0x24   : > { %v271_v25 = vld [vmem:[%s4890_s9 + $0x168] sm:$0xff]  ;;  %v273_v26 = vld [vmem:[%s4890_s9 + $0x178] sm:$0xff] }
  0x25   : > { %v275_v27 = vld [vmem:[%s4890_s9 + $0x188] sm:$0xff]  ;;  %v277_v28 = vld [vmem:[%s4890_s9 + $0x198] sm:$0xff] }
  0x26   : > { %330 = vperm.xlu1 %4582, %v233_v6   ;;  %780 = vperm.xlu0 %4583, %v233_v6   ;;  %v279_v29 = vld [vmem:[%s4890_s9 + $0x1a8] sm:$0xff]  ;;  %v281_v30 = vld [vmem:[%s4890_s9 + $0x1b8] sm:$0xff] }
  0x27   : > { %v283_v31 = vld [vmem:[%s4890_s9 + $0x1c8] sm:$0xff]  ;;  %v285_v32 = vld [vmem:[%s4890_s9 + $0x1d8] sm:$0xff] }
  0x28   : > { %v287_v33 = vld [vmem:[%s4890_s9 + $0x1e8] sm:$0xff]  ;;  %v289_v34 = vld [vmem:[%s4890_s9 + $0x1f8] sm:$0xff] }
  0x29   : > { %v227_v37 = vld [vmem:[%s4890_s9 + $0x8] sm:$0xff] }
  0x2a   : > { %340 = vperm.xlu1 %4582, %v235_v7   ;;  %788 = vperm.xlu0 %4583, %v235_v7  }
  0x2e   : > { %350 = vperm.xlu1 %4582, %v237_v8   ;;  %796 = vperm.xlu0 %4583, %v237_v8   ;;  %v250_v8 = vld [vmem:[%s4890_s9 + $0xc0] sm:$0xff] }
  0x32   : > { %360 = vperm.xlu1 %4582, %v239_v9   ;;  %804 = vperm.xlu0 %4583, %v239_v9  }
  0x36   : > { %370 = vperm.xlu1 %4582, %v241_v10   ;;  %812 = vperm.xlu0 %4583, %v241_v10  }
  0x3a   : > { %380 = vperm.xlu1 %4582, %v243_v11   ;;  %820 = vperm.xlu0 %4583, %v243_v11   ;;  %v252_v11 = vld [vmem:[%s4890_s9 + $0xd0] sm:$0xff] }
  0x3e   : > { %390 = vperm.xlu1 %4582, %v245_v12   ;;  %828 = vperm.xlu0 %4583, %v245_v12  }
  0x42   : > { %400 = vperm.xlu1 %4582, %v247_v13   ;;  %836 = vperm.xlu0 %4583, %v247_v13  }
  0x46   : > { %410 = vperm.xlu1 %4582, %v249_v14   ;;  %844 = vperm.xlu0 %4583, %v249_v14   ;;  %v254_v14 = vld [vmem:[%s4890_s9 + $0xe0] sm:$0xff] }
  0x4a   : > { %420 = vperm.xlu1 %4582, %v251_v15   ;;  %852 = vperm.xlu0 %4583, %v251_v15  }
  0x4e   : > { %430 = vperm.xlu1 %4582, %v253_v16   ;;  %860 = vperm.xlu0 %4583, %v253_v16  }
  0x52   : > { %440 = vperm.xlu1 %4582, %v255_v17   ;;  %868 = vperm.xlu0 %4583, %v255_v17   ;;  %v256_v17 = vld [vmem:[%s4890_s9 + $0xf0] sm:$0xff] }
  0x56   : > { %450 = vperm.xlu1 %4582, %v257_v18   ;;  %876 = vperm.xlu0 %4583, %v257_v18  }
  0x5a   : > { %460 = vperm.xlu1 %4582, %v259_v19   ;;  %884 = vperm.xlu0 %4583, %v259_v19  }
  0x5e   : > { %470 = vperm.xlu1 %4582, %v261_v20   ;;  %892 = vperm.xlu0 %4583, %v261_v20   ;;  %v258_v20 = vld [vmem:[%s4890_s9 + $0x100] sm:$0xff] }
  0x62   : > { %480 = vperm.xlu1 %4582, %v263_v21   ;;  %900 = vperm.xlu0 %4583, %v263_v21  }
  0x66   : > { %490 = vperm.xlu1 %4582, %v265_v22   ;;  %908 = vperm.xlu0 %4583, %v265_v22  }
  0x6a   : > { %500 = vperm.xlu1 %4582, %v267_v23   ;;  %916 = vperm.xlu0 %4583, %v267_v23   ;;  %v260_v23 = vld [vmem:[%s4890_s9 + $0x110] sm:$0xff] }
  0x6e   : > { %510 = vperm.xlu1 %4582, %v269_v24   ;;  %924 = vperm.xlu0 %4583, %v269_v24  }
  0x72   : > { %520 = vperm.xlu1 %4582, %v271_v25   ;;  %932 = vperm.xlu0 %4583, %v271_v25  }
  0x76   : > { %530 = vperm.xlu1 %4582, %v273_v26   ;;  %940 = vperm.xlu0 %4583, %v273_v26   ;;  %v262_v26 = vld [vmem:[%s4890_s9 + $0x120] sm:$0xff] }
  0x7a   : > { %540 = vperm.xlu1 %4582, %v275_v27   ;;  %948 = vperm.xlu0 %4583, %v275_v27  }
  0x7e   : > { %550 = vperm.xlu1 %4582, %v277_v28   ;;  %956 = vperm.xlu0 %4583, %v277_v28  }
  0x82   : > { %560 = vperm.xlu1 %4582, %v279_v29   ;;  %964 = vperm.xlu0 %4583, %v279_v29   ;;  %v264_v29 = vld [vmem:[%s4890_s9 + $0x130] sm:$0xff] }
  0x86   : > { %570 = vperm.xlu1 %4582, %v281_v30   ;;  %972 = vperm.xlu0 %4583, %v281_v30  }
  0x8a   : > { %580 = vperm.xlu1 %4582, %v283_v31   ;;  %980 = vperm.xlu0 %4583, %v283_v31  }
  0x8e   : > { %590 = vperm.xlu1 %4582, %v285_v32   ;;  %988 = vperm.xlu0 %4583, %v285_v32   ;;  %v266_v32 = vld [vmem:[%s4890_s9 + $0x140] sm:$0xff] }
  0x92   : > { %600 = vperm.xlu1 %4582, %v287_v33   ;;  %996 = vperm.xlu0 %4583, %v287_v33  }
  0x95   : > { %v4931_v35 = vpop.permute.xlu1 %305  ;;  %v4933_v36 = vpop.permute.xlu0 %752 }
  0x96   : > { %610 = vperm.xlu1 %4582, %v289_v34   ;;  %4585 = vset.pattern.permute.xlu0 %v8123_v1  ;;  %v284_v1 = vld [vmem:[%s4890_s9 + $0x1d0] sm:$0xff] }
  0x97   : > { %295 = vperm.xlu0 %4585, %v4896_v3  }
  0x99   : > { %v4938_v38 = vpop.permute.xlu1 %310  ;;  %v4940_v39 = vpop.permute.xlu0 %764 }
  0x9a   : > { %4584 = vset.pattern.permute.xlu1 %v8121_v0 }
  0x9b   : > { %756 = vperm.xlu1 %4584, %v227_v37   ;;  %300 = vperm.xlu0 %4585, %v227_v37   ;;  %v268_v37 = vld [vmem:[%s4890_s9 + $0x150] sm:$0xff] }
  0x9d   : > { %v4944_v41 = vpop.permute.xlu1 %320  ;;  %v4946_v42 = vpop.permute.xlu0 %772 }
  0x9f   : > { %760 = vperm.xlu1 %4584, %v4893_v2   ;;  %315 = vperm.xlu0 %4585, %v230_v40   ;;  %v246_v2 = vld [vmem:[%s4890_s9 + $0xa0] sm:$0xff] }
  0xa1   : > { %v4950_v44 = vpop.permute.xlu1 %330  ;;  %v4952_v45 = vpop.permute.xlu0 %780 }
  0xa3   : > { %768 = vperm.xlu1 %4584, %v230_v40   ;;  %325 = vperm.xlu0 %4585, %v232_v43  }
  0xa5   : > { %v4955_v47 = vpop.permute.xlu1 %340  ;;  %v4957_v48 = vpop.permute.xlu0 %788 }
  0xa7   : > { %776 = vperm.xlu1 %4584, %v232_v43   ;;  %335 = vperm.xlu0 %4585, %v234_v46  }
  0xa9   : > { %v4960_v50 = vpop.permute.xlu1 %350  ;;  %v4962_v51 = vpop.permute.xlu0 %796 }
  0xab   : > { %784 = vperm.xlu1 %4584, %v234_v46   ;;  %345 = vperm.xlu0 %4585, %v236_v49   ;;  %v270_v46 = vld [vmem:[%s4890_s9 + $0x160] sm:$0xff] }
  0xad   : > { %v4965_v53 = vpop.permute.xlu1 %360  ;;  %v4967_v54 = vpop.permute.xlu0 %804 }
  0xaf   : > { %792 = vperm.xlu1 %4584, %v236_v49   ;;  %355 = vperm.xlu0 %4585, %v238_v52  }
  0xb1   : > { %v4970_v56 = vpop.permute.xlu1 %370  ;;  %v4972_v57 = vpop.permute.xlu0 %812 }
  0xb3   : > { %800 = vperm.xlu1 %4584, %v238_v52   ;;  %365 = vperm.xlu0 %4585, %v240_v55  }
  0xb5   : > { %v4975_v59 = vpop.permute.xlu1 %380  ;;  %v4977_v60 = vpop.permute.xlu0 %820 }
  0xb7   : > { %808 = vperm.xlu1 %4584, %v240_v55   ;;  %375 = vperm.xlu0 %4585, %v242_v58   ;;  %v272_v55 = vld [vmem:[%s4890_s9 + $0x170] sm:$0xff] }
  0xb9   : > { %v4980_v62 = vpop.permute.xlu1 %390  ;;  %v4982_v63 = vpop.permute.xlu0 %828 }
  0xbb   : > { %816 = vperm.xlu1 %4584, %v242_v58   ;;  %385 = vperm.xlu0 %4585, %v244_v61  }
  0xbd   : > { %v4985_v3 = vpop.permute.xlu1 %400  ;;  %v4987_v4 = vpop.permute.xlu0 %836 }
  0xbf   : > { %824 = vperm.xlu1 %4584, %v244_v61   ;;  %395 = vperm.xlu0 %4585, %v246_v2  }
  0xc1   : > { %v4990_v6 = vpop.permute.xlu1 %410  ;;  %v4992_v7 = vpop.permute.xlu0 %844 }
  0xc3   : > { %832 = vperm.xlu1 %4584, %v246_v2   ;;  %405 = vperm.xlu0 %4585, %v248_v5   ;;  %v274_v2 = vld [vmem:[%s4890_s9 + $0x180] sm:$0xff] }
  0xc5   : > { %v4995_v9 = vpop.permute.xlu1 %420  ;;  %v4997_v10 = vpop.permute.xlu0 %852 }
  0xc7   : > { %840 = vperm.xlu1 %4584, %v248_v5   ;;  %415 = vperm.xlu0 %4585, %v250_v8  }
  0xc9   : > { %v5000_v12 = vpop.permute.xlu1 %430  ;;  %v5002_v13 = vpop.permute.xlu0 %860 }
  0xcb   : > { %848 = vperm.xlu1 %4584, %v250_v8   ;;  %425 = vperm.xlu0 %4585, %v252_v11  }
  0xcd   : > { %v5005_v15 = vpop.permute.xlu1 %440  ;;  %v5007_v16 = vpop.permute.xlu0 %868 }
  0xcf   : > { %856 = vperm.xlu1 %4584, %v252_v11   ;;  %435 = vperm.xlu0 %4585, %v254_v14   ;;  %v276_v11 = vld [vmem:[%s4890_s9 + $0x190] sm:$0xff] }
  0xd1   : > { %v5010_v18 = vpop.permute.xlu1 %450  ;;  %v5012_v19 = vpop.permute.xlu0 %876 }
  0xd3   : > { %864 = vperm.xlu1 %4584, %v254_v14   ;;  %445 = vperm.xlu0 %4585, %v256_v17  }
  0xd5   : > { %v5015_v21 = vpop.permute.xlu1 %460  ;;  %v5017_v22 = vpop.permute.xlu0 %884 }
  0xd7   : > { %872 = vperm.xlu1 %4584, %v256_v17   ;;  %455 = vperm.xlu0 %4585, %v258_v20  }
  0xd9   : > { %v5020_v24 = vpop.permute.xlu1 %470  ;;  %v5022_v25 = vpop.permute.xlu0 %892 }
  0xdb   : > { %880 = vperm.xlu1 %4584, %v258_v20   ;;  %465 = vperm.xlu0 %4585, %v260_v23   ;;  %v278_v20 = vld [vmem:[%s4890_s9 + $0x1a0] sm:$0xff] }
  0xdd   : > { %v5025_v27 = vpop.permute.xlu1 %480  ;;  %v5027_v28 = vpop.permute.xlu0 %900 }
  0xdf   : > { %888 = vperm.xlu1 %4584, %v260_v23   ;;  %475 = vperm.xlu0 %4585, %v262_v26  }
  0xe1   : > { %v5030_v30 = vpop.permute.xlu1 %490  ;;  %v5032_v31 = vpop.permute.xlu0 %908 }
  0xe3   : > { %896 = vperm.xlu1 %4584, %v262_v26   ;;  %485 = vperm.xlu0 %4585, %v264_v29  }
  0xe5   : > { %v5035_v33 = vpop.permute.xlu1 %500  ;;  %v5037_v34 = vpop.permute.xlu0 %916 }
  0xe7   : > { %904 = vperm.xlu1 %4584, %v264_v29   ;;  %495 = vperm.xlu0 %4585, %v266_v32   ;;  %v280_v29 = vld [vmem:[%s4890_s9 + $0x1b0] sm:$0xff] }
  0xe9   : > { %v5040_v40 = vpop.permute.xlu1 %510  ;;  %v5042_v43 = vpop.permute.xlu0 %924 }
  0xeb   : > { %912 = vperm.xlu1 %4584, %v266_v32   ;;  %505 = vperm.xlu0 %4585, %v268_v37  }
  0xed   : > { %v5045_v49 = vpop.permute.xlu1 %520  ;;  %v5047_v52 = vpop.permute.xlu0 %932 }
  0xee   : > { %8220 = vst [vmem:[#allocation5_spill] sm:$0xff] %v5047_v52 }
  0xef   : > { %920 = vperm.xlu1 %4584, %v268_v37   ;;  %515 = vperm.xlu0 %4585, %v270_v46  }
  0xf1   : > { %v5050_v58 = vpop.permute.xlu1 %530  ;;  %v5052_v61 = vpop.permute.xlu0 %940 }
  0xf2   : > { %8221 = vst [vmem:[#allocation6_spill] sm:$0xff] %v5052_v61 }
  0xf3   : > { %928 = vperm.xlu1 %4584, %v270_v46   ;;  %525 = vperm.xlu0 %4585, %v272_v55   ;;  %v282_v46 = vld [vmem:[%s4890_s9 + $0x1c0] sm:$0xff] }
  0xf5   : > { %v5055_v5 = vpop.permute.xlu1 %540  ;;  %v5057_v8 = vpop.permute.xlu0 %948 }
  0xf6   : > { %8222 = vst [vmem:[#allocation7_spill] sm:$0xff] %v5055_v5  ;;  %8223 = vst [vmem:[#allocation8_spill] sm:$0xff] %v5057_v8 }
  0xf7   : > { %936 = vperm.xlu1 %4584, %v272_v55   ;;  %535 = vperm.xlu0 %4585, %v274_v2   ;;  %v613_v55 = vlaneseq }
  0xf9   : > { %v5060_v14 = vpop.permute.xlu1 %550  ;;  %v5062_v17 = vpop.permute.xlu0 %956 }
  0xfa   : > { %8224 = vst [vmem:[#allocation9_spill] sm:$0xff] %v5060_v14  ;;  %8225 = vst [vmem:[#allocation10_spill] sm:$0xff] %v5062_v17 }
  0xfb   : > { %944 = vperm.xlu1 %4584, %v274_v2   ;;  %545 = vperm.xlu0 %4585, %v276_v11  }
  0xfd   : > { %v5065_v23 = vpop.permute.xlu1 %560  ;;  %v5067_v26 = vpop.permute.xlu0 %964 }
  0xfe   : > { %8226 = vst [vmem:[#allocation11_spill] sm:$0xff] %v5065_v23  ;;  %8227 = vst [vmem:[#allocation12_spill] sm:$0xff] %v5067_v26 }
  0xff   : > { %952 = vperm.xlu1 %4584, %v276_v11   ;;  %555 = vperm.xlu0 %4585, %v278_v20   ;;  %v5080_v11 = vshrl.u32 %v613_v55, 7  ;;  %v288_v55 = vld [vmem:[%s4890_s9 + $0x1f0] sm:$0xff] }
 0x101   : > { %v5070_v32 = vpop.permute.xlu1 %570  ;;  %v5072_v37 = vpop.permute.xlu0 %972  ;;  %8232 = vst [vmem:[#allocation17_spill] sm:$0xff] %v5080_v11  ;;  %v8125_v17 = vsub.s32 1, %v5080_v11 }
 0x102   : > { %8228 = vst [vmem:[#allocation13_spill] sm:$0xff] %v5070_v32  ;;  %8229 = vst [vmem:[#allocation14_spill] sm:$0xff] %v5072_v37  ;;  %v8124_v37 = vsub.s32 0, %v5080_v11 }
 0x103   : > { %960 = vperm.xlu1 %4584, %v278_v20   ;;  %565 = vperm.xlu0 %4585, %v280_v29   ;;  %v286_v20 = vld [vmem:[%s4890_s9 + $0x1e0] sm:$0xff] }
 0x105   : > { %v5075_v2 = vpop.permute.xlu1 %580  ;;  %v5077_v0 = vpop.permute.xlu0 %980 }
 0x106   : > { %8230 = vst [vmem:[#allocation15_spill] sm:$0xff] %v5075_v2  ;;  %8231 = vst [vmem:[#allocation16_spill] sm:$0xff] %v5077_v0 }
 0x107   : > { %968 = vperm.xlu1 %4584, %v280_v29   ;;  %575 = vperm.xlu0 %4585, %v282_v46   ;;  %v290_v29 = vld [vmem:[%s8116_s1] sm:$0x3] }
 0x109   : > { %v5082_v26 = vpop.permute.xlu1 %590  ;;  %v5084_v32 = vpop.permute.xlu0 %988 }
 0x10a   : > { %8233 = vst [vmem:[#allocation18_spill] sm:$0xff] %v5082_v26  ;;  %8234 = vst [vmem:[#allocation19_spill] sm:$0xff] %v5084_v32  ;;  %v5103_v32 = vrot.slane %v290_v29, %v8125_v17 }
 0x10b   : > { %976 = vperm.xlu1 %4584, %v282_v46   ;;  %585 = vperm.xlu0 %4585, %v284_v1   ;;  %v5099_v46 = vrot.slane %v290_v29, %v8124_v37 }
 0x10c   : > { %v1011_v37 = vmul.f32 %v5103_v32, %v4933_v36 }
 0x10d   : > { %v5089_v2 = vpop.permute.xlu1 %600  ;;  %v5091_v0 = vpop.permute.xlu0 %996  ;;  %v620_v29 = vmul.f32 %v5099_v46, %v4938_v38 }
 0x10e   : > { %8235 = vst [vmem:[#allocation20_spill] sm:$0xff] %v5089_v2  ;;  %8236 = vst [vmem:[#allocation21_spill] sm:$0xff] %v5091_v0 }
 0x10f   : > { %984 = vperm.xlu1 %4584, %v284_v1   ;;  %595 = vperm.xlu0 %4585, %v286_v20   ;;  %v5111_v1 = vld [vmem:[%s8117_s2] ss:$0 sm:$0xff] }
 0x110   : > { %v690_v36 = vadd.f32 %v5111_v1, %v620_v29 }
 0x111   : > { %v5105_v26 = vpop.permute.xlu1 %610 }
 0x112   : > { %8237 = vst [vmem:[#allocation22_spill] sm:$0xff] %v5105_v26  ;;  %v296_v2 = vpop.permute.xlu0 %295 }
 0x113   : > { %v617_v0 = vmul.f32 %v5099_v46, %v296_v2  ;;  %992 = vperm.xlu1 %4584, %v286_v20   ;;  %605 = vperm.xlu0 %4585, %v288_v55   ;;  %v619_v2 = vmul.f32 %v5099_v46, %v4931_v35 }
 0x115   : > { %v687_v23 = vadd.f32 %v5111_v1, %v617_v0  ;;  %v622_v0 = vmul.f32 %v5099_v46, %v4944_v41  ;;  %v689_v5 = vadd.f32 %v5111_v1, %v619_v2  ;;  %v624_v41 = vmul.f32 %v5099_v46, %v4950_v44 }
 0x116   : > { %v757_v17 = vpop.permute.xlu1 %756  ;;  %v301_v11 = vpop.permute.xlu0 %300  ;;  %v626_v44 = vmul.f32 %v5099_v46, %v4955_v47  ;;  %v628_v47 = vmul.f32 %v5099_v46, %v4960_v50 }
 0x117   : > { %v1075_v20 = vadd.f32 %v1011_v37, %v687_v23  ;;  %v618_v26 = vmul.f32 %v5099_v46, %v301_v11  ;;  %1000 = vperm.xlu1 %4584, %v288_v55   ;;  %v1012_v8 = vmul.f32 %v5103_v32, %v757_v17  ;;  %v8238_v37 = vmov 0  }
 0x118   : > { %v1014_v17 = vmul.f32 %v5103_v32, %v4940_v39  ;;  %v692_v55 = vadd.f32 %v5111_v1, %v622_v0  ;;  %v1016_v39 = vmul.f32 %v5103_v32, %v4946_v42  ;;  %v1018_v42 = vmul.f32 %v5103_v32, %v4952_v45 }
 0x119   : > { %4601 = vtanh.f32 %v1075_v20  ;;  %v688_v14 = vadd.f32 %v5111_v1, %v618_v26  ;;  %v694_v20 = vadd.f32 %v5111_v1, %v624_v41  ;;  %v1020_v45 = vmul.f32 %v5103_v32, %v4957_v48 }
 0x11a   : > { %v761_v38 = vpop.permute.xlu1 %760  ;;  %v316_v61 = vpop.permute.xlu0 %315  ;;  %v1078_v11 = vadd.f32 %v1014_v17, %v690_v36  ;;  %v698_v50 = vadd.f32 %v5111_v1, %v628_v47 }
 0x11b   : > { %v1076_v52 = vadd.f32 %v1012_v8, %v688_v14  ;;  %v1013_v35 = vmul.f32 %v5103_v32, %v761_v38  ;;  %v621_v23 = vmul.f32 %v5099_v46, %v316_v61  ;;  %4586 = vset.pattern.permute.xlu1 %v8238_v37 }
 0x11d   : > { %4603 = vtanh.f32 %v1076_v52  ;;  %v1077_v26 = vadd.f32 %v1013_v35, %v689_v5  ;;  %v691_v8 = vadd.f32 %v5111_v1, %v621_v23  ;;  %v1080_v5 = vadd.f32 %v1016_v39, %v692_v55 }
 0x11e   : > { %v769_v29 = vpop.permute.xlu1 %768  ;;  %v326_v2 = vpop.permute.xlu0 %325 }
 0x11f   : > { %4605 = vtanh.f32 %v1077_v26  ;;  %v1015_v61 = vmul.f32 %v5103_v32, %v769_v29  ;;  %v623_v14 = vmul.f32 %v5099_v46, %v326_v2  ;;  %v1082_v26 = vadd.f32 %v1018_v42, %v694_v20 }
 0x120   : > { %4607 = vtanh.f32 %v1078_v11  ;;  %v696_v11 = vadd.f32 %v5111_v1, %v626_v44  ;;  %v632_v42 = vmul.f32 %v5099_v46, %v4970_v56 }
 0x121   : > { %v1079_v52 = vadd.f32 %v1015_v61, %v691_v8  ;;  %v693_v38 = vadd.f32 %v5111_v1, %v623_v14 }
 0x122   : > { %v777_v36 = vpop.permute.xlu1 %776  ;;  %v336_v0 = vpop.permute.xlu0 %335  ;;  %v1084_v39 = vadd.f32 %v1020_v45, %v696_v11  ;;  %v634_v45 = vmul.f32 %v5099_v46, %v4975_v59 }
 0x123   : > { %4609 = vtanh.f32 %v1079_v52  ;;  %v1017_v35 = vmul.f32 %v5103_v32, %v777_v36  ;;  %v625_v23 = vmul.f32 %v5099_v46, %v336_v0  ;;  %v630_v52 = vmul.f32 %v5099_v46, %v4965_v53 }
 0x124   : > { %4611 = vtanh.f32 %v1080_v5 }
 0x125   : > { %v1081_v37 = vadd.f32 %v1017_v35, %v693_v38  ;;  %v695_v29 = vadd.f32 %v5111_v1, %v625_v23  ;;  %v1022_v38 = vmul.f32 %v5103_v32, %v4962_v51  ;;  %v700_v23 = vadd.f32 %v5111_v1, %v630_v52 }
 0x126   : > { %v5148_v17 = vpop.eup %4601  ;;  %v785_v55 = vpop.permute.xlu1 %784 }
 0x127   : > { %v346_v41 = vpop.permute.xlu0 %345  ;;  %4613 = vtanh.f32 %v1081_v37  ;;  %v1019_v2 = vmul.f32 %v5103_v32, %v785_v55  ;;  %1206 = vperm.xlu1 %4586, %v5148_v17   ;;  %v1086_v53 = vadd.f32 %v1022_v38, %v698_v50  ;;  %v636_v38 = vmul.f32 %v5099_v46, %v4980_v62 }
 0x128   : > { %v627_v8 = vmul.f32 %v5099_v46, %v346_v41  ;;  %4615 = vtanh.f32 %v1082_v26 }
 0x129   : > { %v1083_v61 = vadd.f32 %v1019_v2, %v695_v29  ;;  %v1024_v29 = vmul.f32 %v5103_v32, %v4967_v54 }
 0x12a   : > { %v5159_v14 = vpop.eup %4603  ;;  %v793_v5 = vpop.permute.xlu1 %792  ;;  %v697_v44 = vadd.f32 %v5111_v1, %v627_v8  ;;  %v702_v8 = vadd.f32 %v5111_v1, %v632_v42 }
 0x12b   : > { %8239 = vst [vmem:[#allocation23_spill] sm:$0xff] %v5159_v14  ;;  %v356_v20 = vpop.permute.xlu0 %355  ;;  %4617 = vtanh.f32 %v1083_v61  ;;  %v1021_v36 = vmul.f32 %v5103_v32, %v793_v5  ;;  %1211 = vperm.xlu0 %4585, %v5159_v14   ;;  %v1088_v56 = vadd.f32 %v1024_v29, %v700_v23  ;;  %v638_v29 = vmul.f32 %v5099_v46, %v4985_v3 }
 0x12c   : > { %v629_v0 = vmul.f32 %v5099_v46, %v356_v20  ;;  %v5168_v48 = vpop.eup %4605  ;;  %4619 = vtanh.f32 %v1084_v39 }
 0x12d   : > { %v1085_v35 = vadd.f32 %v1021_v36, %v697_v44  ;;  %1216 = vperm.xlu1 %4586, %v5168_v48   ;;  %v5176_v11 = vpop.eup %4607  ;;  %v1026_v44 = vmul.f32 %v5103_v32, %v4972_v57 }
 0x12e   : > { %v801_v37 = vpop.permute.xlu1 %800  ;;  %v699_v47 = vadd.f32 %v5111_v1, %v629_v0  ;;  %v704_v0 = vadd.f32 %v5111_v1, %v634_v45 }
 0x12f   : > { %v366_v26 = vpop.permute.xlu0 %365  ;;  %4621 = vtanh.f32 %v1085_v35  ;;  %v1023_v55 = vmul.f32 %v5103_v32, %v801_v37  ;;  %v1090_v59 = vadd.f32 %v1026_v44, %v702_v8  ;;  %v640_v44 = vmul.f32 %v5099_v46, %v4990_v6 }
 0x130   : > { %v631_v51 = vmul.f32 %v5099_v46, %v366_v26  ;;  %v5181_v41 = vpop.eup %4609  ;;  %4623 = vtanh.f32 %v1086_v53 }
 0x131   : > { %8240 = vst [vmem:[#allocation24_spill] sm:$0xff] %v5181_v41  ;;  %v1087_v2 = vadd.f32 %v1023_v55, %v699_v47  ;;  %1221 = vperm.xlu1 %4586, %v5176_v11   ;;  %1226 = vperm.xlu0 %4585, %v5181_v41   ;;  %v5190_v50 = vpop.eup %4611  ;;  %v1028_v47 = vmul.f32 %v5103_v32, %v4977_v60 }
 0x132   : > { %v809_v61 = vpop.permute.xlu1 %808  ;;  %v701_v52 = vadd.f32 %v5111_v1, %v631_v51  ;;  %v706_v51 = vadd.f32 %v5111_v1, %v636_v38 }
 0x133   : > { %v376_v39 = vpop.permute.xlu0 %375  ;;  %4625 = vtanh.f32 %v1087_v2  ;;  %v1025_v54 = vmul.f32 %v5103_v32, %v809_v61  ;;  %v1092_v62 = vadd.f32 %v1028_v47, %v704_v0  ;;  %v642_v47 = vmul.f32 %v5099_v46, %v4995_v9 }
 0x134   : > { %v633_v5 = vmul.f32 %v5099_v46, %v376_v39  ;;  %v5195_v20 = vpop.eup %4613  ;;  %4627 = vtanh.f32 %v1088_v56 }
 0x135   : > { %8241 = vst [vmem:[#allocation25_spill] sm:$0xff] %v5195_v20  ;;  %v1089_v36 = vadd.f32 %v1025_v54, %v701_v52  ;;  %1231 = vperm.xlu1 %4586, %v5190_v50   ;;  %1236 = vperm.xlu0 %4585, %v5195_v20   ;;  %v5204_v23 = vpop.eup %4615  ;;  %v1030_v52 = vmul.f32 %v5103_v32, %v4982_v63 }
 0x136   : > { %v817_v35 = vpop.permute.xlu1 %816  ;;  %v703_v42 = vadd.f32 %v5111_v1, %v633_v5  ;;  %v708_v5 = vadd.f32 %v5111_v1, %v638_v29 }
 0x137   : > { %v386_v53 = vpop.permute.xlu0 %385  ;;  %4629 = vtanh.f32 %v1089_v36  ;;  %v1027_v57 = vmul.f32 %v5103_v32, %v817_v35  ;;  %v1094_v3 = vadd.f32 %v1030_v52, %v706_v51  ;;  %v644_v52 = vmul.f32 %v5099_v46, %v5000_v12 }
 0x138   : > { %v635_v37 = vmul.f32 %v5099_v46, %v386_v53  ;;  %v5209_v26 = vpop.eup %4617  ;;  %4631 = vtanh.f32 %v1090_v59 }
 0x139   : > { %8242 = vst [vmem:[#allocation26_spill] sm:$0xff] %v5209_v26  ;;  %v1091_v55 = vadd.f32 %v1027_v57, %v703_v42  ;;  %1241 = vperm.xlu1 %4586, %v5204_v23   ;;  %1246 = vperm.xlu0 %4585, %v5209_v26   ;;  %v5218_v8 = vpop.eup %4619  ;;  %v1032_v42 = vmul.f32 %v5103_v32, %v4987_v4 }
 0x13a   : > { %v825_v2 = vpop.permute.xlu1 %824  ;;  %v705_v45 = vadd.f32 %v5111_v1, %v635_v37  ;;  %v710_v37 = vadd.f32 %v5111_v1, %v640_v44 }
 0x13b   : > { %v396_v56 = vpop.permute.xlu0 %395  ;;  %4633 = vtanh.f32 %v1091_v55  ;;  %v1029_v60 = vmul.f32 %v5103_v32, %v825_v2  ;;  %v1096_v6 = vadd.f32 %v1032_v42, %v708_v5  ;;  %v646_v42 = vmul.f32 %v5099_v46, %v5005_v15 }
 0x13c   : > { %v637_v61 = vmul.f32 %v5099_v46, %v396_v56  ;;  %v5223_v39 = vpop.eup %4621  ;;  %4635 = vtanh.f32 %v1092_v62 }
 0x13d   : > { %8243 = vst [vmem:[#allocation27_spill] sm:$0xff] %v5223_v39  ;;  %v1093_v54 = vadd.f32 %v1029_v60, %v705_v45  ;;  %1251 = vperm.xlu1 %4586, %v5218_v8   ;;  %1256 = vperm.xlu0 %4585, %v5223_v39   ;;  %v5232_v0 = vpop.eup %4623  ;;  %v1034_v45 = vmul.f32 %v5103_v32, %v4992_v7 }
 0x13e   : > { %v833_v36 = vpop.permute.xlu1 %832  ;;  %v707_v38 = vadd.f32 %v5111_v1, %v637_v61  ;;  %v712_v61 = vadd.f32 %v5111_v1, %v642_v47 }
 0x13f   : > { %v406_v59 = vpop.permute.xlu0 %405  ;;  %4637 = vtanh.f32 %v1093_v54  ;;  %v1031_v63 = vmul.f32 %v5103_v32, %v833_v36  ;;  %v1098_v9 = vadd.f32 %v1034_v45, %v710_v37  ;;  %v648_v45 = vmul.f32 %v5099_v46, %v5010_v18 }
 0x140   : > { %v639_v35 = vmul.f32 %v5099_v46, %v406_v59  ;;  %v5237_v53 = vpop.eup %4625  ;;  %4639 = vtanh.f32 %v1094_v3 }
 0x141   : > { %8244 = vst [vmem:[#allocation28_spill] sm:$0xff] %v5237_v53  ;;  %v1095_v57 = vadd.f32 %v1031_v63, %v707_v38  ;;  %1261 = vperm.xlu1 %4586, %v5232_v0   ;;  %1266 = vperm.xlu0 %4585, %v5237_v53   ;;  %v5246_v51 = vpop.eup %4627  ;;  %v1036_v38 = vmul.f32 %v5103_v32, %v4997_v10 }
 0x142   : > { %v841_v55 = vpop.permute.xlu1 %840  ;;  %v709_v29 = vadd.f32 %v5111_v1, %v639_v35  ;;  %v714_v35 = vadd.f32 %v5111_v1, %v644_v52 }
 0x143   : > { %v416_v62 = vpop.permute.xlu0 %415  ;;  %4641 = vtanh.f32 %v1095_v57  ;;  %v1033_v4 = vmul.f32 %v5103_v32, %v841_v55  ;;  %v1100_v12 = vadd.f32 %v1036_v38, %v712_v61  ;;  %v650_v38 = vmul.f32 %v5099_v46, %v5015_v21 }
 0x144   : > { %v641_v2 = vmul.f32 %v5099_v46, %v416_v62  ;;  %v5251_v56 = vpop.eup %4629  ;;  %4643 = vtanh.f32 %v1096_v6 }
 0x145   : > { %8245 = vst [vmem:[#allocation29_spill] sm:$0xff] %v5251_v56  ;;  %v1097_v60 = vadd.f32 %v1033_v4, %v709_v29  ;;  %1271 = vperm.xlu1 %4586, %v5246_v51   ;;  %1276 = vperm.xlu0 %4585, %v5251_v56   ;;  %v5260_v5 = vpop.eup %4631  ;;  %v1038_v29 = vmul.f32 %v5103_v32, %v5002_v13 }
 0x146   : > { %v849_v54 = vpop.permute.xlu1 %848  ;;  %v711_v44 = vadd.f32 %v5111_v1, %v641_v2  ;;  %v716_v2 = vadd.f32 %v5111_v1, %v646_v42 }
 0x147   : > { %v426_v3 = vpop.permute.xlu0 %425  ;;  %4645 = vtanh.f32 %v1097_v60  ;;  %v1035_v7 = vmul.f32 %v5103_v32, %v849_v54  ;;  %v1102_v15 = vadd.f32 %v1038_v29, %v714_v35  ;;  %v652_v29 = vmul.f32 %v5099_v46, %v5020_v24 }
 0x148   : > { %v643_v36 = vmul.f32 %v5099_v46, %v426_v3  ;;  %v5265_v59 = vpop.eup %4633  ;;  %4647 = vtanh.f32 %v1098_v9 }
 0x149   : > { %8246 = vst [vmem:[#allocation30_spill] sm:$0xff] %v5265_v59  ;;  %v1099_v63 = vadd.f32 %v1035_v7, %v711_v44  ;;  %1281 = vperm.xlu1 %4586, %v5260_v5   ;;  %1286 = vperm.xlu0 %4585, %v5265_v59   ;;  %v5274_v37 = vpop.eup %4635  ;;  %v1040_v44 = vmul.f32 %v5103_v32, %v5007_v16 }
 0x14a   : > { %v857_v57 = vpop.permute.xlu1 %856  ;;  %v713_v47 = vadd.f32 %v5111_v1, %v643_v36  ;;  %v718_v36 = vadd.f32 %v5111_v1, %v648_v45 }
 0x14b   : > { %v436_v6 = vpop.permute.xlu0 %435  ;;  %4649 = vtanh.f32 %v1099_v63  ;;  %v1037_v10 = vmul.f32 %v5103_v32, %v857_v57  ;;  %v1104_v18 = vadd.f32 %v1040_v44, %v716_v2  ;;  %v654_v44 = vmul.f32 %v5099_v46, %v5025_v27 }
 0x14c   : > { %v645_v55 = vmul.f32 %v5099_v46, %v436_v6  ;;  %v5279_v62 = vpop.eup %4637  ;;  %4651 = vtanh.f32 %v1100_v12 }
 0x14d   : > { %8247 = vst [vmem:[#allocation31_spill] sm:$0xff] %v5279_v62  ;;  %v1101_v4 = vadd.f32 %v1037_v10, %v713_v47  ;;  %1291 = vperm.xlu1 %4586, %v5274_v37   ;;  %1296 = vperm.xlu0 %4585, %v5279_v62   ;;  %v5288_v61 = vpop.eup %4639  ;;  %v1042_v47 = vmul.f32 %v5103_v32, %v5012_v19 }
 0x14e   : > { %v865_v60 = vpop.permute.xlu1 %864  ;;  %v715_v52 = vadd.f32 %v5111_v1, %v645_v55  ;;  %v720_v55 = vadd.f32 %v5111_v1, %v650_v38 }
 0x14f   : > { %v446_v9 = vpop.permute.xlu0 %445  ;;  %4653 = vtanh.f32 %v1101_v4  ;;  %v1039_v13 = vmul.f32 %v5103_v32, %v865_v60  ;;  %v1106_v21 = vadd.f32 %v1042_v47, %v718_v36  ;;  %v656_v47 = vmul.f32 %v5099_v46, %v5030_v30 }
 0x150   : > { %v647_v54 = vmul.f32 %v5099_v46, %v446_v9  ;;  %v5293_v3 = vpop.eup %4641  ;;  %4655 = vtanh.f32 %v1102_v15 }
 0x151   : > { %8248 = vst [vmem:[#allocation32_spill] sm:$0xff] %v5293_v3  ;;  %v1103_v7 = vadd.f32 %v1039_v13, %v715_v52  ;;  %1301 = vperm.xlu1 %4586, %v5288_v61   ;;  %1306 = vperm.xlu0 %4585, %v5293_v3   ;;  %v5302_v35 = vpop.eup %4643  ;;  %v1044_v52 = vmul.f32 %v5103_v32, %v5017_v22 }
 0x152   : > { %v873_v63 = vpop.permute.xlu1 %872  ;;  %v717_v42 = vadd.f32 %v5111_v1, %v647_v54  ;;  %v722_v54 = vadd.f32 %v5111_v1, %v652_v29 }
 0x153   : > { %v456_v12 = vpop.permute.xlu0 %455  ;;  %4657 = vtanh.f32 %v1103_v7  ;;  %v1041_v16 = vmul.f32 %v5103_v32, %v873_v63  ;;  %v1108_v24 = vadd.f32 %v1044_v52, %v720_v55  ;;  %v658_v52 = vmul.f32 %v5099_v46, %v5035_v33 }
 0x154   : > { %v649_v57 = vmul.f32 %v5099_v46, %v456_v12  ;;  %v5307_v6 = vpop.eup %4645  ;;  %4659 = vtanh.f32 %v1104_v18 }
 0x155   : > { %8249 = vst [vmem:[#allocation33_spill] sm:$0xff] %v5307_v6  ;;  %v1105_v10 = vadd.f32 %v1041_v16, %v717_v42  ;;  %1311 = vperm.xlu1 %4586, %v5302_v35   ;;  %1316 = vperm.xlu0 %4585, %v5307_v6   ;;  %v5316_v2 = vpop.eup %4647  ;;  %v1046_v42 = vmul.f32 %v5103_v32, %v5022_v25 }
 0x156   : > { %v881_v4 = vpop.permute.xlu1 %880  ;;  %v719_v45 = vadd.f32 %v5111_v1, %v649_v57  ;;  %v724_v57 = vadd.f32 %v5111_v1, %v654_v44 }
 0x157   : > { %v466_v15 = vpop.permute.xlu0 %465  ;;  %4661 = vtanh.f32 %v1105_v10  ;;  %v1043_v19 = vmul.f32 %v5103_v32, %v881_v4  ;;  %v1110_v27 = vadd.f32 %v1046_v42, %v722_v54  ;;  %v660_v42 = vmul.f32 %v5099_v46, %v5040_v40 }
 0x158   : > { %v651_v60 = vmul.f32 %v5099_v46, %v466_v15  ;;  %v5321_v9 = vpop.eup %4649  ;;  %4663 = vtanh.f32 %v1106_v21 }
 0x159   : > { %8250 = vst [vmem:[#allocation34_spill] sm:$0xff] %v5321_v9  ;;  %v1107_v13 = vadd.f32 %v1043_v19, %v719_v45  ;;  %1321 = vperm.xlu1 %4586, %v5316_v2   ;;  %1326 = vperm.xlu0 %4585, %v5321_v9   ;;  %v5330_v36 = vpop.eup %4651  ;;  %v1048_v45 = vmul.f32 %v5103_v32, %v5027_v28 }
 0x15a   : > { %v889_v7 = vpop.permute.xlu1 %888  ;;  %v721_v38 = vadd.f32 %v5111_v1, %v651_v60  ;;  %v726_v60 = vadd.f32 %v5111_v1, %v656_v47 }
 0x15b   : > { %v476_v18 = vpop.permute.xlu0 %475  ;;  %4665 = vtanh.f32 %v1107_v13  ;;  %v1045_v22 = vmul.f32 %v5103_v32, %v889_v7  ;;  %v1112_v30 = vadd.f32 %v1048_v45, %v724_v57  ;;  %v662_v45 = vmul.f32 %v5099_v46, %v5045_v49 }
 0x15c   : > { %v653_v63 = vmul.f32 %v5099_v46, %v476_v18  ;;  %v5335_v12 = vpop.eup %4653  ;;  %4667 = vtanh.f32 %v1108_v24 }
 0x15d   : > { %8251 = vst [vmem:[#allocation35_spill] sm:$0xff] %v5335_v12  ;;  %v1109_v16 = vadd.f32 %v1045_v22, %v721_v38  ;;  %1331 = vperm.xlu1 %4586, %v5330_v36   ;;  %1336 = vperm.xlu0 %4585, %v5335_v12   ;;  %v5344_v55 = vpop.eup %4655  ;;  %v1050_v38 = vmul.f32 %v5103_v32, %v5032_v31 }
 0x15e   : > { %v897_v10 = vpop.permute.xlu1 %896  ;;  %v723_v29 = vadd.f32 %v5111_v1, %v653_v63  ;;  %v728_v63 = vadd.f32 %v5111_v1, %v658_v52 }
 0x15f   : > { %v486_v21 = vpop.permute.xlu0 %485  ;;  %4669 = vtanh.f32 %v1109_v16  ;;  %v1047_v25 = vmul.f32 %v5103_v32, %v897_v10  ;;  %v1114_v33 = vadd.f32 %v1050_v38, %v726_v60  ;;  %v664_v38 = vmul.f32 %v5099_v46, %v5050_v58 }
 0x160   : > { %v655_v4 = vmul.f32 %v5099_v46, %v486_v21  ;;  %v5349_v15 = vpop.eup %4657  ;;  %4671 = vtanh.f32 %v1110_v27 }
 0x161   : > { %8252 = vst [vmem:[#allocation36_spill] sm:$0xff] %v5349_v15  ;;  %v1111_v19 = vadd.f32 %v1047_v25, %v723_v29  ;;  %1341 = vperm.xlu1 %4586, %v5344_v55   ;;  %1346 = vperm.xlu0 %4585, %v5349_v15   ;;  %v5358_v54 = vpop.eup %4659  ;;  %v1052_v29 = vmul.f32 %v5103_v32, %v5037_v34 }
 0x162   : > { %v905_v13 = vpop.permute.xlu1 %904  ;;  %v725_v44 = vadd.f32 %v5111_v1, %v655_v4  ;;  %v730_v4 = vadd.f32 %v5111_v1, %v660_v42 }
 0x163   : > { %v496_v24 = vpop.permute.xlu0 %495  ;;  %4673 = vtanh.f32 %v1111_v19  ;;  %v1049_v28 = vmul.f32 %v5103_v32, %v905_v13  ;;  %v1116_v40 = vadd.f32 %v1052_v29, %v728_v63  ;;  %v734_v29 = vadd.f32 %v5111_v1, %v664_v38 }
 0x164   : > { %v657_v7 = vmul.f32 %v5099_v46, %v496_v24  ;;  %v5363_v18 = vpop.eup %4661  ;;  %4675 = vtanh.f32 %v1112_v30 }
 0x165   : > { %8253 = vst [vmem:[#allocation37_spill] sm:$0xff] %v5363_v18  ;;  %v1113_v22 = vadd.f32 %v1049_v28, %v725_v44  ;;  %1351 = vperm.xlu1 %4586, %v5358_v54   ;;  %1356 = vperm.xlu0 %4585, %v5363_v18   ;;  %v5372_v57 = vpop.eup %4663  ;;  %v1054_v44 = vmul.f32 %v5103_v32, %v5042_v43 }
 0x166   : > { %v913_v16 = vpop.permute.xlu1 %912  ;;  %8254 = vst [vmem:[#allocation38_spill] sm:$0xff] %v5372_v57  ;;  %v727_v47 = vadd.f32 %v5111_v1, %v657_v7  ;;  %v732_v7 = vadd.f32 %v5111_v1, %v662_v45 }
 0x167   : > { %v506_v27 = vpop.permute.xlu0 %505  ;;  %4677 = vtanh.f32 %v1113_v22  ;;  %v1051_v31 = vmul.f32 %v5103_v32, %v913_v16  ;;  %v1118_v49 = vadd.f32 %v1054_v44, %v730_v4  ;;  %v8264_v44 = vld [vmem:[#allocation6_spill] sm:$0xff] }
 0x168   : > { %v659_v10 = vmul.f32 %v5099_v46, %v506_v27  ;;  %v5377_v21 = vpop.eup %4665  ;;  %4679 = vtanh.f32 %v1114_v33 }
 0x169   : > { %8255 = vst [vmem:[#allocation39_spill] sm:$0xff] %v5377_v21  ;;  %v1115_v25 = vadd.f32 %v1051_v31, %v727_v47  ;;  %1361 = vperm.xlu1 %4586, %v5372_v57   ;;  %1366 = vperm.xlu0 %4585, %v5377_v21   ;;  %v5386_v60 = vpop.eup %4667  ;;  %v8260_v47 = vld [vmem:[#allocation5_spill] sm:$0xff] }
 0x16a   : > { %v921_v19 = vpop.permute.xlu1 %920  ;;  %8256 = vst [vmem:[#allocation40_spill] sm:$0xff] %v5386_v60  ;;  %v729_v52 = vadd.f32 %v5111_v1, %v659_v10  ;;  %v1056_v31 = vmul.f32 %v5103_v32, %v8260_v47 }
 0x16b   : > { %v516_v30 = vpop.permute.xlu0 %515  ;;  %4681 = vtanh.f32 %v1115_v25  ;;  %v1053_v34 = vmul.f32 %v5103_v32, %v921_v19  ;;  %v8261_v25 = vld [vmem:[#allocation7_spill] sm:$0xff] }
 0x16c   : > { %v661_v13 = vmul.f32 %v5099_v46, %v516_v30  ;;  %v5391_v24 = vpop.eup %4669  ;;  %4683 = vtanh.f32 %v1116_v40  ;;  %v1120_v58 = vadd.f32 %v1056_v31, %v732_v7  ;;  %v666_v40 = vmul.f32 %v5099_v46, %v8261_v25 }
 0x16d   : > { %8257 = vst [vmem:[#allocation41_spill] sm:$0xff] %v5391_v24  ;;  %v1117_v28 = vadd.f32 %v1053_v34, %v729_v52  ;;  %1371 = vperm.xlu1 %4586, %v5386_v60   ;;  %1376 = vperm.xlu0 %4585, %v5391_v24   ;;  %v5400_v63 = vpop.eup %4671 }
 0x16e   : > { %v929_v22 = vpop.permute.xlu1 %928  ;;  %8258 = vst [vmem:[#allocation42_spill] sm:$0xff] %v5400_v63  ;;  %v731_v42 = vadd.f32 %v5111_v1, %v661_v13  ;;  %v736_v38 = vadd.f32 %v5111_v1, %v666_v40 }
 0x16f   : > { %v526_v33 = vpop.permute.xlu0 %525  ;;  %4685 = vtanh.f32 %v1117_v28  ;;  %v1055_v43 = vmul.f32 %v5103_v32, %v929_v22  ;;  %v1058_v28 = vmul.f32 %v5103_v32, %v8264_v44  ;;  %v8265_v22 = vld [vmem:[#allocation9_spill] sm:$0xff] }
 0x170   : > { %v663_v16 = vmul.f32 %v5099_v46, %v526_v33  ;;  %v5405_v27 = vpop.eup %4673  ;;  %4687 = vtanh.f32 %v1118_v49  ;;  %v668_v33 = vmul.f32 %v5099_v46, %v8265_v22 }
 0x171   : > { %8259 = vst [vmem:[#allocation43_spill] sm:$0xff] %v5405_v27  ;;  %v1119_v10 = vadd.f32 %v1055_v43, %v731_v42  ;;  %1381 = vperm.xlu1 %4586, %v5400_v63   ;;  %1386 = vperm.xlu0 %4585, %v5405_v27   ;;  %v5414_v19 = vpop.eup %4675  ;;  %v1122_v7 = vadd.f32 %v1058_v28, %v734_v29 }
 0x172   : > { %v937_v4 = vpop.permute.xlu1 %936  ;;  %8262 = vst [vmem:[#allocation5_spill] sm:$0xff] %v5414_v19  ;;  %v733_v30 = vadd.f32 %v5111_v1, %v663_v16 }
 0x173   : > { %v536_v45 = vpop.permute.xlu0 %535  ;;  %4689 = vtanh.f32 %v1119_v10  ;;  %v1057_v52 = vmul.f32 %v5103_v32, %v937_v4 }
 0x174   : > { %v665_v34 = vmul.f32 %v5099_v46, %v536_v45  ;;  %v5419_v13 = vpop.eup %4677  ;;  %4691 = vtanh.f32 %v1120_v58  ;;  %v8268_v58 = vld [vmem:[#allocation8_spill] sm:$0xff]  ;;  %v738_v45 = vadd.f32 %v5111_v1, %v668_v33 }
 0x175   : > { %8263 = vst [vmem:[#allocation7_spill] sm:$0xff] %v5419_v13  ;;  %v1121_v49 = vadd.f32 %v1057_v52, %v733_v30  ;;  %1391 = vperm.xlu1 %4586, %v5414_v19   ;;  %1396 = vperm.xlu0 %4585, %v5419_v13   ;;  %v5428_v16 = vpop.eup %4679  ;;  %v1060_v29 = vmul.f32 %v5103_v32, %v8268_v58  ;;  %v8269_v30 = vld [vmem:[#allocation11_spill] sm:$0xff]  ;;  %v8272_v58 = vld [vmem:[#allocation13_spill] sm:$0xff] }
 0x176   : > { %v945_v42 = vpop.permute.xlu1 %944  ;;  %8266 = vst [vmem:[#allocation6_spill] sm:$0xff] %v5428_v16  ;;  %v735_v47 = vadd.f32 %v5111_v1, %v665_v34  ;;  %v670_v52 = vmul.f32 %v5099_v46, %v8269_v30 }
 0x177   : > { %v546_v43 = vpop.permute.xlu0 %545  ;;  %4693 = vtanh.f32 %v1121_v49  ;;  %v1059_v31 = vmul.f32 %v5103_v32, %v945_v42  ;;  %v1124_v4 = vadd.f32 %v1060_v29, %v736_v38 }
 0x178   : > { %v667_v10 = vmul.f32 %v5099_v46, %v546_v43  ;;  %v5433_v25 = vpop.eup %4681  ;;  %4695 = vtanh.f32 %v1122_v7  ;;  %v8271_v7 = vld [vmem:[#allocation10_spill] sm:$0xff] }
 0x179   : > { %8267 = vst [vmem:[#allocation9_spill] sm:$0xff] %v5433_v25  ;;  %v1123_v40 = vadd.f32 %v1059_v31, %v735_v47  ;;  %1401 = vperm.xlu1 %4586, %v5428_v16   ;;  %1406 = vperm.xlu0 %4585, %v5433_v25   ;;  %v5442_v28 = vpop.eup %4683  ;;  %v1062_v38 = vmul.f32 %v5103_v32, %v8271_v7 }
 0x17a   : > { %v953_v34 = vpop.permute.xlu1 %952  ;;  %v737_v49 = vadd.f32 %v5111_v1, %v667_v10  ;;  %v740_v31 = vadd.f32 %v5111_v1, %v670_v52  ;;  %v672_v10 = vmul.f32 %v5099_v46, %v8272_v58 }
 0x17b   : > { %v556_v44 = vpop.permute.xlu0 %555  ;;  %4697 = vtanh.f32 %v1123_v40  ;;  %v1061_v22 = vmul.f32 %v5103_v32, %v953_v34  ;;  %v1126_v47 = vadd.f32 %v1062_v38, %v738_v45 }
 0x17c   : > { %v669_v42 = vmul.f32 %v5099_v46, %v556_v44  ;;  %v5447_v43 = vpop.eup %4685  ;;  %4699 = vtanh.f32 %v1124_v4  ;;  %v8275_v4 = vld [vmem:[#allocation12_spill] sm:$0xff]  ;;  %v742_v38 = vadd.f32 %v5111_v1, %v672_v10 }
 0x17d   : > { %8270 = vst [vmem:[#allocation8_spill] sm:$0xff] %v5447_v43  ;;  %v1125_v33 = vadd.f32 %v1061_v22, %v737_v49  ;;  %1411 = vperm.xlu1 %4586, %v5442_v28   ;;  %1416 = vperm.xlu0 %4585, %v5447_v43   ;;  %v5456_v30 = vpop.eup %4687  ;;  %v1064_v45 = vmul.f32 %v5103_v32, %v8275_v4 }
 0x17e   : > { %v961_v29 = vpop.permute.xlu1 %960  ;;  %8273 = vst [vmem:[#allocation11_spill] sm:$0xff] %v5456_v30  ;;  %v739_v34 = vadd.f32 %v5111_v1, %v669_v42 }
 0x17f   : > { %v566_v40 = vpop.permute.xlu0 %565  ;;  %4701 = vtanh.f32 %v1125_v33  ;;  %v1063_v44 = vmul.f32 %v5103_v32, %v961_v29  ;;  %v1128_v7 = vadd.f32 %v1064_v45, %v740_v31  ;;  %v8276_v33 = vld [vmem:[#allocation15_spill] sm:$0xff] }
 0x180   : > { %v671_v49 = vmul.f32 %v5099_v46, %v566_v40  ;;  %v5461_v22 = vpop.eup %4689  ;;  %4703 = vtanh.f32 %v1126_v47  ;;  %v674_v42 = vmul.f32 %v5099_v46, %v8276_v33  ;;  %v8279_v47 = vld [vmem:[#allocation14_spill] sm:$0xff] }
 0x181   : > { %8274 = vst [vmem:[#allocation10_spill] sm:$0xff] %v5461_v22  ;;  %v1127_v52 = vadd.f32 %v1063_v44, %v739_v34  ;;  %1421 = vperm.xlu1 %4586, %v5456_v30   ;;  %1426 = vperm.xlu0 %4585, %v5461_v22   ;;  %v5470_v40 = vpop.eup %4691  ;;  %v1066_v31 = vmul.f32 %v5103_v32, %v8279_v47  ;;  %v8280_v33 = vld [vmem:[#allocation18_spill] sm:$0xff] }
 0x182   : > { %v969_v58 = vpop.permute.xlu1 %968  ;;  %8277 = vst [vmem:[#allocation13_spill] sm:$0xff] %v5470_v40  ;;  %v741_v43 = vadd.f32 %v5111_v1, %v671_v49  ;;  %v676_v49 = vmul.f32 %v5099_v46, %v8280_v33  ;;  %v8284_v33 = vld [vmem:[#allocation20_spill] sm:$0xff] }
 0x183   : > { %v576_v29 = vpop.permute.xlu0 %575  ;;  %4705 = vtanh.f32 %v1127_v52  ;;  %v1065_v34 = vmul.f32 %v5103_v32, %v969_v58  ;;  %v1130_v45 = vadd.f32 %v1066_v31, %v742_v38  ;;  %v744_v52 = vadd.f32 %v5111_v1, %v674_v42 }
 0x184   : > { %v673_v44 = vmul.f32 %v5099_v46, %v576_v29  ;;  %v5475_v4 = vpop.eup %4693  ;;  %4707 = vtanh.f32 %v1128_v7  ;;  %v8283_v7 = vld [vmem:[#allocation16_spill] sm:$0xff] }
 0x185   : > { %8278 = vst [vmem:[#allocation12_spill] sm:$0xff] %v5475_v4  ;;  %v1129_v10 = vadd.f32 %v1065_v34, %v741_v43  ;;  %1431 = vperm.xlu1 %4586, %v5470_v40   ;;  %1436 = vperm.xlu0 %4585, %v5475_v4   ;;  %v5484_v29 = vpop.eup %4695  ;;  %v1068_v38 = vmul.f32 %v5103_v32, %v8283_v7 }
 0x186   : > { %v977_v58 = vpop.permute.xlu1 %976  ;;  %8281 = vst [vmem:[#allocation15_spill] sm:$0xff] %v5484_v29  ;;  %v743_v25 = vadd.f32 %v5111_v1, %v673_v44  ;;  %v678_v44 = vmul.f32 %v5099_v46, %v8284_v33 }
 0x187   : > { %v586_v22 = vpop.permute.xlu0 %585  ;;  %4709 = vtanh.f32 %v1129_v10  ;;  %v1067_v43 = vmul.f32 %v5103_v32, %v977_v58  ;;  %v1132_v31 = vadd.f32 %v1068_v38, %v744_v52  ;;  %v746_v10 = vadd.f32 %v5111_v1, %v676_v49 }
 0x188   : > { %v675_v34 = vmul.f32 %v5099_v46, %v586_v22  ;;  %v5489_v47 = vpop.eup %4697  ;;  %4711 = vtanh.f32 %v1130_v45  ;;  %v8287_v45 = vld [vmem:[#allocation19_spill] sm:$0xff] }
 0x189   : > { %8282 = vst [vmem:[#allocation14_spill] sm:$0xff] %v5489_v47  ;;  %v1131_v42 = vadd.f32 %v1067_v43, %v743_v25  ;;  %1441 = vperm.xlu1 %4586, %v5484_v29   ;;  %1446 = vperm.xlu0 %4585, %v5489_v47   ;;  %v5498_v22 = vpop.eup %4699  ;;  %v1070_v52 = vmul.f32 %v5103_v32, %v8287_v45 }
 0x18a   : > { %v985_v58 = vpop.permute.xlu1 %984  ;;  %8285 = vst [vmem:[#allocation18_spill] sm:$0xff] %v5498_v22  ;;  %v745_v13 = vadd.f32 %v5111_v1, %v675_v34 }
 0x18b   : > { %v596_v4 = vpop.permute.xlu0 %595  ;;  %4713 = vtanh.f32 %v1131_v42  ;;  %v1069_v25 = vmul.f32 %v5103_v32, %v985_v58  ;;  %v1134_v38 = vadd.f32 %v1070_v52, %v746_v10  ;;  %v748_v42 = vadd.f32 %v5111_v1, %v678_v44 }
 0x18c   : > { %v677_v43 = vmul.f32 %v5099_v46, %v596_v4  ;;  %v5503_v7 = vpop.eup %4701  ;;  %4715 = vtanh.f32 %v1132_v31 }
 0x18d   : > { %8286 = vst [vmem:[#allocation16_spill] sm:$0xff] %v5503_v7  ;;  %v1133_v49 = vadd.f32 %v1069_v25, %v745_v13  ;;  %1451 = vperm.xlu1 %4586, %v5498_v22   ;;  %1456 = vperm.xlu0 %4585, %v5503_v7   ;;  %v5510_v47 = vpop.eup %4703  ;;  %v8290_v25 = vld [vmem:[#allocation21_spill] sm:$0xff] }
 0x18e   : > { %v993_v33 = vpop.permute.xlu1 %992  ;;  %8288 = vst [vmem:[#allocation20_spill] sm:$0xff] %v5510_v47  ;;  %v747_v4 = vadd.f32 %v5111_v1, %v677_v43  ;;  %v1072_v7 = vmul.f32 %v5103_v32, %v8290_v25 }
 0x18f   : > { %v606_v34 = vpop.permute.xlu0 %605  ;;  %4717 = vtanh.f32 %v1133_v49  ;;  %v1071_v58 = vmul.f32 %v5103_v32, %v993_v33 }
 0x190   : > { %v679_v45 = vmul.f32 %v5099_v46, %v606_v34  ;;  %v5515_v13 = vpop.eup %4705  ;;  %4719 = vtanh.f32 %v1134_v38  ;;  %v1136_v10 = vadd.f32 %v1072_v7, %v748_v42 }
 0x191   : > { %8289 = vst [vmem:[#allocation19_spill] sm:$0xff] %v5515_v13  ;;  %v1135_v31 = vadd.f32 %v1071_v58, %v747_v4  ;;  %1461 = vperm.xlu1 %4586, %v5510_v47   ;;  %1466 = vperm.xlu0 %4585, %v5515_v13   ;;  %v5521_v52 = vpop.eup %4707 }
 0x192   : > { %v1001_v44 = vpop.permute.xlu1 %1000  ;;  %8291 = vst [vmem:[#allocation21_spill] sm:$0xff] %v5521_v52  ;;  %v749_v43 = vadd.f32 %v5111_v1, %v679_v45 }
 0x193   : > { %4721 = vtanh.f32 %v1135_v31  ;;  %v1073_v49 = vmul.f32 %v5103_v32, %v1001_v44  ;;  %v4729_v44 = vld [vmem:[%s4890_s9 + $0x1f8] sm:$0xff] }
 0x194   : > { %v5525_v33 = vpop.eup %4709  ;;  %4723 = vtanh.f32 %v1136_v10  ;;  %v8302_v10 = vmov 1  }
 0x195   : > { %8292 = vst [vmem:[#allocation44_spill] sm:$0xff] %v5525_v33  ;;  %v1137_v34 = vadd.f32 %v1073_v49, %v749_v43  ;;  %1471 = vperm.xlu1 %4586, %v5521_v52   ;;  %1476 = vperm.xlu0 %4585, %v5525_v33   ;;  %v5529_v4 = vpop.eup %4711 }
 0x196   : > { %8293 = vst [vmem:[#allocation45_spill] sm:$0xff] %v5529_v4 }
 0x197   : > { %4725 = vtanh.f32 %v1137_v34 }
 0x198   : > { %v5531_v7 = vpop.eup %4713 }
 0x199   : > { %8294 = vst [vmem:[#allocation46_spill] sm:$0xff] %v5531_v7  ;;  %1481 = vperm.xlu1 %4586, %v5529_v4   ;;  %1486 = vperm.xlu0 %4585, %v5531_v7   ;;  %v5535_v1 = vpop.eup %4715 }
 0x19a   : > { %8295 = vst [vmem:[#allocation47_spill] sm:$0xff] %v5535_v1 }
 0x19c   : > { %v5537_v38 = vpop.eup %4717 }
 0x19d   : > { %8296 = vst [vmem:[#allocation48_spill] sm:$0xff] %v5537_v38  ;;  %1491 = vperm.xlu1 %4586, %v5535_v1   ;;  %1496 = vperm.xlu0 %4585, %v5537_v38   ;;  %v5541_v42 = vpop.eup %4719 }
 0x19e   : > { %8297 = vst [vmem:[#allocation49_spill] sm:$0xff] %v5541_v42 }
 0x1a0   : > { %v5543_v58 = vpop.eup %4721 }
 0x1a1   : > { %8298 = vst [vmem:[#allocation50_spill] sm:$0xff] %v5543_v58  ;;  %1501 = vperm.xlu1 %4586, %v5541_v42   ;;  %1506 = vperm.xlu0 %4585, %v5543_v58   ;;  %v5547_v45 = vpop.eup %4723 }
 0x1a2   : > { %8299 = vst [vmem:[#allocation51_spill] sm:$0xff] %v5547_v45 }
 0x1a4   : > { %v5549_v25 = vpop.eup %4725 }
 0x1a5   : > { %8300 = vst [vmem:[#allocation52_spill] sm:$0xff] %v5549_v25  ;;  %1511 = vperm.xlu1 %4586, %v5547_v45   ;;  %1516 = vperm.xlu0 %4585, %v5549_v25  }
 0x1a6   : > { %v5553_v31 = vpop.permute.xlu0 %1211 }
 0x1a7   : > { %8301 = vst [vmem:[#allocation53_spill] sm:$0xff] %v5553_v31 }
 0x1a9   : > { %4587 = vset.pattern.permute.xlu0 %v8302_v10 }
 0x1aa   : > { %1004 = vperm.xlu0 %4587, %v4729_v44  }
 0x1ac   : > { %v5557_v43 = vpop.permute.xlu0 %1226 }
 0x1ad   : > { %8303 = vst [vmem:[#allocation54_spill] sm:$0xff] %v5557_v43 }
 0x1ae   : > { %1663 = vperm.xlu0 %4587, %v5148_v17  }
 0x1b0   : > { %v5560_v49 = vpop.permute.xlu0 %1236 }
 0x1b1   : > { %8304 = vst [vmem:[#allocation55_spill] sm:$0xff] %v5560_v49 }
 0x1b2   : > { %1675 = vperm.xlu0 %4587, %v5176_v11  }
 0x1b4   : > { %v5563_v34 = vpop.permute.xlu0 %1246 }
 0x1b5   : > { %8305 = vst [vmem:[#allocation56_spill] sm:$0xff] %v5563_v34 }
 0x1b6   : > { %1683 = vperm.xlu0 %4587, %v5190_v50  }
 0x1b8   : > { %v5566_v58 = vpop.permute.xlu0 %1256 }
 0x1b9   : > { %8306 = vst [vmem:[#allocation57_spill] sm:$0xff] %v5566_v58 }
 0x1ba   : > { %1691 = vperm.xlu0 %4587, %v5204_v23  }
 0x1bc   : > { %v5569_v31 = vpop.permute.xlu0 %1266 }
 0x1bd   : > { %8307 = vst [vmem:[#allocation58_spill] sm:$0xff] %v5569_v31 }
 0x1be   : > { %1699 = vperm.xlu0 %4587, %v5218_v8  }
 0x1c0   : > { %v5572_v44 = vpop.permute.xlu0 %1276 }
 0x1c1   : > { %8308 = vst [vmem:[#allocation59_spill] sm:$0xff] %v5572_v44 }
 0x1c2   : > { %1707 = vperm.xlu0 %4587, %v5232_v0  }
 0x1c4   : > { %v5575_v43 = vpop.permute.xlu0 %1286 }
 0x1c5   : > { %8309 = vst [vmem:[#allocation60_spill] sm:$0xff] %v5575_v43 }
 0x1c6   : > { %1715 = vperm.xlu0 %4587, %v5246_v51  }
 0x1c8   : > { %v5578_v49 = vpop.permute.xlu0 %1296 }
 0x1c9   : > { %8310 = vst [vmem:[#allocation61_spill] sm:$0xff] %v5578_v49 }
 0x1ca   : > { %1723 = vperm.xlu0 %4587, %v5260_v5  }
 0x1cc   : > { %v5581_v34 = vpop.permute.xlu0 %1306 }
 0x1cd   : > { %8311 = vst [vmem:[#allocation62_spill] sm:$0xff] %v5581_v34 }
 0x1ce   : > { %1731 = vperm.xlu0 %4587, %v5274_v37  }
 0x1d0   : > { %v5584_v58 = vpop.permute.xlu0 %1316 }
 0x1d1   : > { %8312 = vst [vmem:[#allocation63_spill] sm:$0xff] %v5584_v58 }
 0x1d2   : > { %1739 = vperm.xlu0 %4587, %v5288_v61  }
 0x1d4   : > { %v5587_v31 = vpop.permute.xlu0 %1326 }
 0x1d5   : > { %8313 = vst [vmem:[#allocation64_spill] sm:$0xff] %v5587_v31 }
 0x1d6   : > { %1747 = vperm.xlu0 %4587, %v5302_v35  }
 0x1d8   : > { %v5590_v44 = vpop.permute.xlu0 %1336 }
 0x1d9   : > { %8314 = vst [vmem:[#allocation65_spill] sm:$0xff] %v5590_v44 }
 0x1da   : > { %1755 = vperm.xlu0 %4587, %v5316_v2  }
 0x1dc   : > { %v5593_v43 = vpop.permute.xlu0 %1346 }
 0x1dd   : > { %8315 = vst [vmem:[#allocation66_spill] sm:$0xff] %v5593_v43 }
 0x1de   : > { %1763 = vperm.xlu0 %4587, %v5330_v36  }
 0x1e0   : > { %v5596_v49 = vpop.permute.xlu0 %1356 }
 0x1e1   : > { %8316 = vst [vmem:[#allocation67_spill] sm:$0xff] %v5596_v49  ;;  %v5614_v49 = vpop.permute.xlu1 %1206 }
 0x1e2   : > { %1771 = vperm.xlu0 %4587, %v5344_v55   ;;  %8322 = vst [vmem:[#allocation73_spill] sm:$0xff] %v5614_v49 }
 0x1e4   : > { %v5599_v34 = vpop.permute.xlu0 %1366 }
 0x1e5   : > { %8317 = vst [vmem:[#allocation68_spill] sm:$0xff] %v5599_v34 }
 0x1e6   : > { %1779 = vperm.xlu0 %4587, %v5358_v54  }
 0x1e8   : > { %v5602_v58 = vpop.permute.xlu0 %1376 }
 0x1e9   : > { %8318 = vst [vmem:[#allocation69_spill] sm:$0xff] %v5602_v58  ;;  %v5619_v58 = vpop.permute.xlu1 %1216 }
 0x1ea   : > { %1787 = vperm.xlu0 %4587, %v5372_v57   ;;  %8324 = vst [vmem:[#allocation75_spill] sm:$0xff] %v5619_v58 }
 0x1ec   : > { %v5605_v31 = vpop.permute.xlu0 %1386 }
 0x1ed   : > { %8319 = vst [vmem:[#allocation70_spill] sm:$0xff] %v5605_v31 }
 0x1ee   : > { %1795 = vperm.xlu0 %4587, %v5386_v60  }
 0x1f0   : > { %v5608_v44 = vpop.permute.xlu0 %1396 }
 0x1f1   : > { %8320 = vst [vmem:[#allocation71_spill] sm:$0xff] %v5608_v44  ;;  %v5626_v44 = vpop.permute.xlu1 %1221 }
 0x1f2   : > { %1803 = vperm.xlu0 %4587, %v5400_v63   ;;  %8327 = vst [vmem:[#allocation78_spill] sm:$0xff] %v5626_v44 }
 0x1f4   : > { %v5611_v43 = vpop.permute.xlu0 %1406 }
 0x1f5   : > { %8321 = vst [vmem:[#allocation72_spill] sm:$0xff] %v5611_v43  ;;  %v5632_v49 = vpop.permute.xlu1 %1231 }
 0x1f6   : > { %1811 = vperm.xlu0 %4587, %v5414_v19   ;;  %8329 = vst [vmem:[#allocation80_spill] sm:$0xff] %v5632_v49 }
 0x1f8   : > { %v5616_v34 = vpop.permute.xlu0 %1416 }
 0x1f9   : > { %8323 = vst [vmem:[#allocation74_spill] sm:$0xff] %v5616_v34 }
 0x1fa   : > { %1819 = vperm.xlu0 %4587, %v5428_v16  }
 0x1fc   : > { %v5621_v57 = vpop.permute.xlu0 %1426 }
 0x1fd   : > { %8325 = vst [vmem:[#allocation76_spill] sm:$0xff] %v5621_v57  ;;  %v5639_v57 = vpop.permute.xlu1 %1241 }
 0x1fe   : > { %1827 = vperm.xlu0 %4587, %v5442_v28   ;;  %8332 = vst [vmem:[#allocation83_spill] sm:$0xff] %v5639_v57 }
 0x200   : > { %v5624_v31 = vpop.permute.xlu0 %1436 }
 0x201   : > { %8326 = vst [vmem:[#allocation77_spill] sm:$0xff] %v5624_v31  ;;  %v5645_v44 = vpop.permute.xlu1 %1251 }
 0x202   : > { %1835 = vperm.xlu0 %4587, %v5456_v30   ;;  %8334 = vst [vmem:[#allocation85_spill] sm:$0xff] %v5645_v44 }
 0x204   : > { %v5629_v43 = vpop.permute.xlu0 %1446 }
 0x205   : > { %8328 = vst [vmem:[#allocation79_spill] sm:$0xff] %v5629_v43 }
 0x206   : > { %1843 = vperm.xlu0 %4587, %v5470_v40  }
 0x208   : > { %v5634_v34 = vpop.permute.xlu0 %1456 }
 0x209   : > { %8330 = vst [vmem:[#allocation81_spill] sm:$0xff] %v5634_v34  ;;  %v5652_v34 = vpop.permute.xlu1 %1261 }
 0x20a   : > { %1851 = vperm.xlu0 %4587, %v5484_v29   ;;  %8337 = vst [vmem:[#allocation88_spill] sm:$0xff] %v5652_v34  ;;  %v4730_v34 = vld [vmem:[%s8117_s2] ss:$0 sm:$0xff] }
 0x20c   : > { %v5637_v58 = vpop.permute.xlu0 %1466 }
 0x20d   : > { %8331 = vst [vmem:[#allocation82_spill] sm:$0xff] %v5637_v58  ;;  %v5658_v57 = vpop.permute.xlu1 %1271 }
 0x20e   : > { %1859 = vperm.xlu0 %4587, %v5498_v22   ;;  %8339 = vst [vmem:[#allocation90_spill] sm:$0xff] %v5658_v57 }
 0x210   : > { %v5642_v31 = vpop.permute.xlu0 %1476 }
 0x211   : > { %8333 = vst [vmem:[#allocation84_spill] sm:$0xff] %v5642_v31 }
 0x212   : > { %1867 = vperm.xlu0 %4587, %v5510_v47   ;;  %v8341_v47 = vld [vmem:[#allocation22_spill] sm:$0xff] }
 0x213   : > { %v680_v44 = vmul.f32 %v5099_v46, %v8341_v47 }
 0x214   : > { %v5647_v43 = vpop.permute.xlu0 %1486 }
 0x215   : > { %8335 = vst [vmem:[#allocation86_spill] sm:$0xff] %v5647_v43  ;;  %v5665_v43 = vpop.permute.xlu1 %1281 }
 0x216   : > { %1875 = vperm.xlu0 %4587, %v5521_v52   ;;  %8342 = vst [vmem:[#allocation22_spill] sm:$0xff] %v5665_v43 }
 0x218   : > { %v5650_v49 = vpop.permute.xlu0 %1496 }
 0x219   : > { %8336 = vst [vmem:[#allocation87_spill] sm:$0xff] %v5650_v49 }
 0x21a   : > { %1883 = vperm.xlu0 %4587, %v5529_v4   ;;  %v750_v4 = vadd.f32 %v4730_v34, %v680_v44 }
 0x21c   : > { %v5655_v58 = vpop.permute.xlu0 %1506 }
 0x21d   : > { %8338 = vst [vmem:[#allocation89_spill] sm:$0xff] %v5655_v58 }
 0x21e   : > { %1891 = vperm.xlu0 %4587, %v5535_v1  }
 0x220   : > { %v5660_v31 = vpop.permute.xlu0 %1516 }
 0x221   : > { %8340 = vst [vmem:[#allocation91_spill] sm:$0xff] %v5660_v31  ;;  %v5674_v31 = vpop.permute.xlu1 %1291 }
 0x222   : > { %1899 = vperm.xlu0 %4587, %v5541_v42   ;;  %8344 = vst [vmem:[#allocation93_spill] sm:$0xff] %v5674_v31  ;;  %v8382_v31 = vld [vmem:[#allocation7_spill] sm:$0xff] }
 0x225   : > { %v1005_v49 = vpop.permute.xlu0 %1004  ;;  %v5678_v47 = vpop.permute.xlu1 %1301 }
 0x226   : > { %v1074_v58 = vmul.f32 %v5103_v32, %v1005_v49  ;;  %1907 = vperm.xlu0 %4587, %v5547_v45   ;;  %8346 = vst [vmem:[#allocation95_spill] sm:$0xff] %v5678_v47 }
 0x228   : > { %v1138_v57 = vadd.f32 %v1074_v58, %v750_v4 }
 0x229   : > { %v5672_v1 = vpop.permute.xlu0 %1663  ;;  %v5686_v34 = vpop.permute.xlu1 %1311 }
 0x22a   : > { %8343 = vst [vmem:[#allocation92_spill] sm:$0xff] %v5672_v1  ;;  %4727 = vtanh.f32 %v1138_v57  ;;  %8349 = vst [vmem:[#allocation98_spill] sm:$0xff] %v5686_v34  ;;  %v8156_v57 = vmov 2  }
 0x22d   : > { %v5676_v46 = vpop.permute.xlu0 %1675  ;;  %v5694_v4 = vpop.permute.xlu1 %1321 }
 0x22e   : > { %8345 = vst [vmem:[#allocation94_spill] sm:$0xff] %v5676_v46  ;;  %8351 = vst [vmem:[#allocation100_spill] sm:$0xff] %v5694_v4 }
 0x231   : > { %v5680_v43 = vpop.permute.xlu0 %1683  ;;  %v5704_v44 = vpop.permute.xlu1 %1331 }
 0x232   : > { %8347 = vst [vmem:[#allocation96_spill] sm:$0xff] %v5680_v43  ;;  %8354 = vst [vmem:[#allocation103_spill] sm:$0xff] %v5704_v44 }
 0x235   : > { %v5682_v42 = vpop.permute.xlu0 %1691 }
 0x236   : > { %8348 = vst [vmem:[#allocation97_spill] sm:$0xff] %v5682_v42 }
 0x237   : > { %v5684_v52 = vpop.eup %4727 }
 0x238   : > { %1915 = vperm.xlu0 %4587, %v5684_v52   ;;  %1521 = vperm.xlu1 %4586, %v5684_v52  }
 0x239   : > { %v5690_v32 = vpop.permute.xlu0 %1699 }
 0x23a   : > { %8350 = vst [vmem:[#allocation99_spill] sm:$0xff] %v5690_v32 }
 0x23c   : > { %4590 = vset.pattern.permute.xlu0 %v8156_v57  ;;  %4588 = vset.pattern.permute.xlu1 %v8302_v10  ;;  %v5710_v57 = vpop.permute.xlu1 %1341 }
 0x23d   : > { %2055 = vperm.xlu0 %4590, %v5159_v14   ;;  %1667 = vperm.xlu1 %4588, %v5159_v14   ;;  %v5698_v58 = vpop.permute.xlu0 %1707  ;;  %8356 = vst [vmem:[#allocation105_spill] sm:$0xff] %v5710_v57 }
 0x23e   : > { %8352 = vst [vmem:[#allocation101_spill] sm:$0xff] %v5698_v58  ;;  %v8390_v58 = vld [vmem:[#allocation10_spill] sm:$0xff] }
 0x240   : > { %v5720_v44 = vpop.permute.xlu1 %1351 }
 0x241   : > { %2067 = vperm.xlu0 %4590, %v5181_v41   ;;  %1671 = vperm.xlu1 %4588, %v5168_v48   ;;  %v5702_v49 = vpop.permute.xlu0 %1715  ;;  %8359 = vst [vmem:[#allocation108_spill] sm:$0xff] %v5720_v44 }
 0x242   : > { %8353 = vst [vmem:[#allocation102_spill] sm:$0xff] %v5702_v49  ;;  %v8387_v49 = vld [vmem:[#allocation8_spill] sm:$0xff] }
 0x244   : > { %v5726_v57 = vpop.permute.xlu1 %1361 }
 0x245   : > { %2075 = vperm.xlu0 %4590, %v5195_v20   ;;  %1679 = vperm.xlu1 %4588, %v5181_v41   ;;  %v5708_v10 = vpop.permute.xlu0 %1723  ;;  %8361 = vst [vmem:[#allocation110_spill] sm:$0xff] %v5726_v57 }
 0x246   : > { %8355 = vst [vmem:[#allocation104_spill] sm:$0xff] %v5708_v10  ;;  %v8384_v10 = vld [vmem:[#allocation9_spill] sm:$0xff] }
 0x248   : > { %v5736_v44 = vpop.permute.xlu1 %1371 }
 0x249   : > { %2083 = vperm.xlu0 %4590, %v5209_v26   ;;  %1687 = vperm.xlu1 %4588, %v5195_v20   ;;  %v5714_v4 = vpop.permute.xlu0 %1731  ;;  %8364 = vst [vmem:[#allocation113_spill] sm:$0xff] %v5736_v44 }
 0x24a   : > { %8357 = vst [vmem:[#allocation106_spill] sm:$0xff] %v5714_v4 }
 0x24c   : > { %v5742_v57 = vpop.permute.xlu1 %1381 }
 0x24d   : > { %2091 = vperm.xlu0 %4590, %v5223_v39   ;;  %1695 = vperm.xlu1 %4588, %v5209_v26   ;;  %v5718_v34 = vpop.permute.xlu0 %1739  ;;  %8366 = vst [vmem:[#allocation115_spill] sm:$0xff] %v5742_v57 }
 0x24e   : > { %8358 = vst [vmem:[#allocation107_spill] sm:$0xff] %v5718_v34 }
 0x250   : > { %v5752_v44 = vpop.permute.xlu1 %1391 }
 0x251   : > { %2099 = vperm.xlu0 %4590, %v5237_v53   ;;  %1703 = vperm.xlu1 %4588, %v5223_v39   ;;  %v5724_v47 = vpop.permute.xlu0 %1747  ;;  %8369 = vst [vmem:[#allocation118_spill] sm:$0xff] %v5752_v44 }
 0x252   : > { %8360 = vst [vmem:[#allocation109_spill] sm:$0xff] %v5724_v47 }
 0x254   : > { %v5758_v57 = vpop.permute.xlu1 %1401 }
 0x255   : > { %2107 = vperm.xlu0 %4590, %v5251_v56   ;;  %1711 = vperm.xlu1 %4588, %v5237_v53   ;;  %v5730_v4 = vpop.permute.xlu0 %1755  ;;  %8371 = vst [vmem:[#allocation120_spill] sm:$0xff] %v5758_v57 }
 0x256   : > { %8362 = vst [vmem:[#allocation111_spill] sm:$0xff] %v5730_v4 }
 0x258   : > { %v5768_v44 = vpop.permute.xlu1 %1411 }
 0x259   : > { %2115 = vperm.xlu0 %4590, %v5265_v59   ;;  %1719 = vperm.xlu1 %4588, %v5251_v56   ;;  %v5734_v34 = vpop.permute.xlu0 %1763  ;;  %8374 = vst [vmem:[#allocation123_spill] sm:$0xff] %v5768_v44 }
 0x25a   : > { %8363 = vst [vmem:[#allocation112_spill] sm:$0xff] %v5734_v34 }
 0x25c   : > { %v5774_v57 = vpop.permute.xlu1 %1421 }
 0x25d   : > { %2123 = vperm.xlu0 %4590, %v5279_v62   ;;  %1727 = vperm.xlu1 %4588, %v5265_v59   ;;  %v5740_v47 = vpop.permute.xlu0 %1771  ;;  %8376 = vst [vmem:[#allocation125_spill] sm:$0xff] %v5774_v57 }
 0x25e   : > { %8365 = vst [vmem:[#allocation114_spill] sm:$0xff] %v5740_v47 }
 0x260   : > { %v5784_v44 = vpop.permute.xlu1 %1431 }
 0x261   : > { %2131 = vperm.xlu0 %4590, %v5293_v3   ;;  %1735 = vperm.xlu1 %4588, %v5279_v62   ;;  %v5746_v4 = vpop.permute.xlu0 %1779  ;;  %8379 = vst [vmem:[#allocation128_spill] sm:$0xff] %v5784_v44 }
 0x262   : > { %8367 = vst [vmem:[#allocation116_spill] sm:$0xff] %v5746_v4 }
 0x264   : > { %v5790_v57 = vpop.permute.xlu1 %1441 }
 0x265   : > { %2139 = vperm.xlu0 %4590, %v5307_v6   ;;  %1743 = vperm.xlu1 %4588, %v5293_v3   ;;  %v5750_v34 = vpop.permute.xlu0 %1787  ;;  %8381 = vst [vmem:[#allocation130_spill] sm:$0xff] %v5790_v57 }
 0x266   : > { %8368 = vst [vmem:[#allocation117_spill] sm:$0xff] %v5750_v34 }
 0x269   : > { %2147 = vperm.xlu0 %4590, %v5321_v9   ;;  %1751 = vperm.xlu1 %4588, %v5307_v6   ;;  %v5756_v47 = vpop.permute.xlu0 %1795 }
 0x26a   : > { %8370 = vst [vmem:[#allocation119_spill] sm:$0xff] %v5756_v47 }
 0x26d   : > { %2155 = vperm.xlu0 %4590, %v5335_v12   ;;  %1759 = vperm.xlu1 %4588, %v5321_v9   ;;  %v5762_v4 = vpop.permute.xlu0 %1803 }
 0x26e   : > { %8372 = vst [vmem:[#allocation121_spill] sm:$0xff] %v5762_v4 }
 0x271   : > { %2163 = vperm.xlu0 %4590, %v5349_v15   ;;  %1767 = vperm.xlu1 %4588, %v5335_v12   ;;  %v5766_v34 = vpop.permute.xlu0 %1811 }
 0x272   : > { %8373 = vst [vmem:[#allocation122_spill] sm:$0xff] %v5766_v34 }
 0x275   : > { %2171 = vperm.xlu0 %4590, %v5363_v18   ;;  %1775 = vperm.xlu1 %4588, %v5349_v15   ;;  %v5772_v47 = vpop.permute.xlu0 %1819 }
 0x276   : > { %8375 = vst [vmem:[#allocation124_spill] sm:$0xff] %v5772_v47 }
 0x279   : > { %2179 = vperm.xlu0 %4590, %v5377_v21   ;;  %1783 = vperm.xlu1 %4588, %v5363_v18   ;;  %v5778_v4 = vpop.permute.xlu0 %1827 }
 0x27a   : > { %8377 = vst [vmem:[#allocation126_spill] sm:$0xff] %v5778_v4 }
 0x27d   : > { %2187 = vperm.xlu0 %4590, %v5391_v24   ;;  %1791 = vperm.xlu1 %4588, %v5377_v21   ;;  %v5782_v34 = vpop.permute.xlu0 %1835 }
 0x27e   : > { %8378 = vst [vmem:[#allocation127_spill] sm:$0xff] %v5782_v34  ;;  %v5798_v34 = vpop.permute.xlu1 %1451 }
 0x27f   : > { %8385 = vst [vmem:[#allocation132_spill] sm:$0xff] %v5798_v34 }
 0x281   : > { %1799 = vperm.xlu1 %4588, %v5391_v24   ;;  %2195 = vperm.xlu0 %4590, %v5405_v27   ;;  %v5788_v47 = vpop.permute.xlu0 %1843 }
 0x282   : > { %8380 = vst [vmem:[#allocation129_spill] sm:$0xff] %v5788_v47  ;;  %v5804_v47 = vpop.permute.xlu1 %1461 }
 0x283   : > { %8388 = vst [vmem:[#allocation134_spill] sm:$0xff] %v5804_v47 }
 0x285   : > { %1807 = vperm.xlu1 %4588, %v5405_v27   ;;  %2203 = vperm.xlu0 %4590, %v8382_v31   ;;  %v5794_v4 = vpop.permute.xlu0 %1851 }
 0x286   : > { %8383 = vst [vmem:[#allocation131_spill] sm:$0xff] %v5794_v4  ;;  %v8391_v4 = vld [vmem:[#allocation12_spill] sm:$0xff]  ;;  %v5812_v32 = vpop.permute.xlu1 %1471 }
 0x287   : > { %8392 = vst [vmem:[#allocation136_spill] sm:$0xff] %v5812_v32 }
 0x289   : > { %1815 = vperm.xlu1 %4588, %v8382_v31   ;;  %2211 = vperm.xlu0 %4590, %v8384_v10   ;;  %v5800_v44 = vpop.permute.xlu0 %1859 }
 0x28a   : > { %8386 = vst [vmem:[#allocation133_spill] sm:$0xff] %v5800_v44  ;;  %v8394_v44 = vld [vmem:[#allocation14_spill] sm:$0xff]  ;;  %v5818_v42 = vpop.permute.xlu1 %1481 }
 0x28b   : > { %8395 = vst [vmem:[#allocation138_spill] sm:$0xff] %v5818_v42 }
 0x28d   : > { %1823 = vperm.xlu1 %4588, %v8384_v10   ;;  %2219 = vperm.xlu0 %4590, %v8387_v49   ;;  %v5806_v57 = vpop.permute.xlu0 %1867 }
 0x28e   : > { %8389 = vst [vmem:[#allocation135_spill] sm:$0xff] %v5806_v57  ;;  %v8397_v57 = vld [vmem:[#allocation16_spill] sm:$0xff]  ;;  %v5826_v43 = vpop.permute.xlu1 %1491 }
 0x28f   : > { %8398 = vst [vmem:[#allocation140_spill] sm:$0xff] %v5826_v43 }
 0x291   : > { %1831 = vperm.xlu1 %4588, %v8387_v49   ;;  %2227 = vperm.xlu0 %4590, %v8390_v58   ;;  %v5814_v34 = vpop.permute.xlu0 %1875 }
 0x292   : > { %8393 = vst [vmem:[#allocation137_spill] sm:$0xff] %v5814_v34  ;;  %v5832_v34 = vpop.permute.xlu1 %1501 }
 0x293   : > { %8400 = vst [vmem:[#allocation142_spill] sm:$0xff] %v5832_v34 }
 0x295   : > { %1839 = vperm.xlu1 %4588, %v8390_v58   ;;  %2235 = vperm.xlu0 %4590, %v8391_v4   ;;  %v5820_v47 = vpop.permute.xlu0 %1883 }
 0x296   : > { %8396 = vst [vmem:[#allocation139_spill] sm:$0xff] %v5820_v47  ;;  %v5840_v47 = vpop.permute.xlu1 %1511 }
 0x297   : > { %8402 = vst [vmem:[#allocation144_spill] sm:$0xff] %v5840_v47  ;;  %v8157_v47 = vmov 3  }
 0x299   : > { %1847 = vperm.xlu1 %4588, %v8391_v4   ;;  %2243 = vperm.xlu0 %4590, %v8394_v44   ;;  %v5828_v32 = vpop.permute.xlu0 %1891 }
 0x29a   : > { %8399 = vst [vmem:[#allocation141_spill] sm:$0xff] %v5828_v32  ;;  %v8404_v32 = vld [vmem:[#allocation50_spill] sm:$0xff] }
 0x29d   : > { %1855 = vperm.xlu1 %4588, %v8394_v44   ;;  %2251 = vperm.xlu0 %4590, %v8397_v57   ;;  %v5834_v42 = vpop.permute.xlu0 %1899 }
 0x29e   : > { %8401 = vst [vmem:[#allocation143_spill] sm:$0xff] %v5834_v42 }
 0x2a1   : > { %1863 = vperm.xlu1 %4588, %v8397_v57   ;;  %2259 = vperm.xlu0 %4590, %v5515_v13   ;;  %v5842_v43 = vpop.permute.xlu0 %1907 }
 0x2a2   : > { %8403 = vst [vmem:[#allocation145_spill] sm:$0xff] %v5842_v43 }
 0x2a5   : > { %1871 = vperm.xlu1 %4588, %v5515_v13   ;;  %2267 = vperm.xlu0 %4590, %v5525_v33  }
 0x2a9   : > { %1879 = vperm.xlu1 %4588, %v5525_v33   ;;  %2275 = vperm.xlu0 %4590, %v5531_v7  }
 0x2ad   : > { %1887 = vperm.xlu1 %4588, %v5531_v7   ;;  %2283 = vperm.xlu0 %4590, %v5537_v38  }
 0x2b1   : > { %1895 = vperm.xlu1 %4588, %v5537_v38   ;;  %2291 = vperm.xlu0 %4590, %v8404_v32  }
 0x2b3   : > { %v5846_v46 = vpop.permute.xlu1 %1521  ;;  %v5848_v34 = vpop.permute.xlu0 %1915 }
 0x2b4   : > { %8405 = vst [vmem:[#allocation146_spill] sm:$0xff] %v5846_v46  ;;  %8406 = vst [vmem:[#allocation147_spill] sm:$0xff] %v5848_v34  ;;  %v8411_v34 = vmov 2  }
 0x2b5   : > { %1903 = vperm.xlu1 %4588, %v8404_v32   ;;  %2299 = vperm.xlu0 %4590, %v5549_v25  }
 0x2b8   : > { %v5852_v42 = vpop.permute.xlu1 %1667  ;;  %v5854_v1 = vpop.permute.xlu0 %2055 }
 0x2b9   : > { %8407 = vst [vmem:[#allocation148_spill] sm:$0xff] %v5852_v42  ;;  %8408 = vst [vmem:[#allocation149_spill] sm:$0xff] %v5854_v1  ;;  %1911 = vperm.xlu1 %4588, %v5549_v25   ;;  %4591 = vset.pattern.permute.xlu0 %v8157_v47 }
 0x2ba   : > { %2439 = vperm.xlu0 %4591, %v5148_v17  }
 0x2bc   : > { %v5859_v43 = vpop.permute.xlu1 %1671  ;;  %v5861_v46 = vpop.permute.xlu0 %2067 }
 0x2bd   : > { %8409 = vst [vmem:[#allocation150_spill] sm:$0xff] %v5859_v43  ;;  %8410 = vst [vmem:[#allocation151_spill] sm:$0xff] %v5861_v46  ;;  %4589 = vset.pattern.permute.xlu1 %v8411_v34 }
 0x2be   : > { %2051 = vperm.xlu1 %4589, %v5148_v17   ;;  %2451 = vperm.xlu0 %4591, %v5176_v11  }
 0x2c0   : > { %v5866_v42 = vpop.permute.xlu1 %1679  ;;  %v5868_v1 = vpop.permute.xlu0 %2075 }
 0x2c1   : > { %8412 = vst [vmem:[#allocation152_spill] sm:$0xff] %v5866_v42  ;;  %8413 = vst [vmem:[#allocation153_spill] sm:$0xff] %v5868_v1 }
 0x2c2   : > { %2059 = vperm.xlu1 %4589, %v5168_v48   ;;  %2459 = vperm.xlu0 %4591, %v5190_v50  }
 0x2c4   : > { %v5872_v47 = vpop.permute.xlu1 %1687  ;;  %v5874_v25 = vpop.permute.xlu0 %2083 }
 0x2c5   : > { %8414 = vst [vmem:[#allocation154_spill] sm:$0xff] %v5872_v47  ;;  %8415 = vst [vmem:[#allocation155_spill] sm:$0xff] %v5874_v25 }
 0x2c6   : > { %2063 = vperm.xlu1 %4589, %v5176_v11   ;;  %2467 = vperm.xlu0 %4591, %v5204_v23  }
 0x2c8   : > { %v5878_v34 = vpop.permute.xlu1 %1695  ;;  %v5880_v46 = vpop.permute.xlu0 %2091 }
 0x2c9   : > { %8416 = vst [vmem:[#allocation156_spill] sm:$0xff] %v5878_v34  ;;  %8417 = vst [vmem:[#allocation157_spill] sm:$0xff] %v5880_v46 }
 0x2ca   : > { %2071 = vperm.xlu1 %4589, %v5190_v50   ;;  %2475 = vperm.xlu0 %4591, %v5218_v8  }
 0x2cc   : > { %v5884_v1 = vpop.permute.xlu1 %1703  ;;  %v5886_v42 = vpop.permute.xlu0 %2099 }
 0x2cd   : > { %8418 = vst [vmem:[#allocation158_spill] sm:$0xff] %v5884_v1  ;;  %8419 = vst [vmem:[#allocation159_spill] sm:$0xff] %v5886_v42 }
 0x2ce   : > { %2079 = vperm.xlu1 %4589, %v5204_v23   ;;  %2483 = vperm.xlu0 %4591, %v5232_v0  }
 0x2d0   : > { %v5890_v25 = vpop.permute.xlu1 %1711  ;;  %v5892_v47 = vpop.permute.xlu0 %2107 }
 0x2d1   : > { %8420 = vst [vmem:[#allocation160_spill] sm:$0xff] %v5890_v25  ;;  %8421 = vst [vmem:[#allocation161_spill] sm:$0xff] %v5892_v47 }
 0x2d2   : > { %2087 = vperm.xlu1 %4589, %v5218_v8   ;;  %2491 = vperm.xlu0 %4591, %v5246_v51  }
 0x2d4   : > { %v5896_v46 = vpop.permute.xlu1 %1719  ;;  %v5898_v34 = vpop.permute.xlu0 %2115 }
 0x2d5   : > { %8422 = vst [vmem:[#allocation162_spill] sm:$0xff] %v5896_v46  ;;  %8423 = vst [vmem:[#allocation163_spill] sm:$0xff] %v5898_v34 }
 0x2d6   : > { %2095 = vperm.xlu1 %4589, %v5232_v0   ;;  %2499 = vperm.xlu0 %4591, %v5260_v5  }
 0x2d8   : > { %v5902_v42 = vpop.permute.xlu1 %1727  ;;  %v5904_v1 = vpop.permute.xlu0 %2123 }
 0x2d9   : > { %8424 = vst [vmem:[#allocation164_spill] sm:$0xff] %v5902_v42  ;;  %8425 = vst [vmem:[#allocation165_spill] sm:$0xff] %v5904_v1 }
 0x2da   : > { %2103 = vperm.xlu1 %4589, %v5246_v51   ;;  %2507 = vperm.xlu0 %4591, %v5274_v37  }
 0x2dc   : > { %v5908_v47 = vpop.permute.xlu1 %1735  ;;  %v5910_v25 = vpop.permute.xlu0 %2131 }
 0x2dd   : > { %8426 = vst [vmem:[#allocation166_spill] sm:$0xff] %v5908_v47  ;;  %8427 = vst [vmem:[#allocation167_spill] sm:$0xff] %v5910_v25 }
 0x2de   : > { %2111 = vperm.xlu1 %4589, %v5260_v5   ;;  %2515 = vperm.xlu0 %4591, %v5288_v61  }
 0x2e0   : > { %v5914_v34 = vpop.permute.xlu1 %1743  ;;  %v5916_v46 = vpop.permute.xlu0 %2139 }
 0x2e1   : > { %8428 = vst [vmem:[#allocation168_spill] sm:$0xff] %v5914_v34  ;;  %8429 = vst [vmem:[#allocation169_spill] sm:$0xff] %v5916_v46 }
 0x2e2   : > { %2119 = vperm.xlu1 %4589, %v5274_v37   ;;  %2523 = vperm.xlu0 %4591, %v5302_v35  }
 0x2e4   : > { %v5920_v1 = vpop.permute.xlu1 %1751  ;;  %v5922_v42 = vpop.permute.xlu0 %2147 }
 0x2e5   : > { %8430 = vst [vmem:[#allocation170_spill] sm:$0xff] %v5920_v1  ;;  %8431 = vst [vmem:[#allocation171_spill] sm:$0xff] %v5922_v42 }
 0x2e6   : > { %2127 = vperm.xlu1 %4589, %v5288_v61   ;;  %2531 = vperm.xlu0 %4591, %v5316_v2  }
 0x2e8   : > { %v5926_v25 = vpop.permute.xlu1 %1759  ;;  %v5928_v47 = vpop.permute.xlu0 %2155 }
 0x2e9   : > { %8432 = vst [vmem:[#allocation172_spill] sm:$0xff] %v5926_v25  ;;  %8433 = vst [vmem:[#allocation173_spill] sm:$0xff] %v5928_v47 }
 0x2ea   : > { %2135 = vperm.xlu1 %4589, %v5302_v35   ;;  %2539 = vperm.xlu0 %4591, %v5330_v36  }
 0x2ec   : > { %v5932_v46 = vpop.permute.xlu1 %1767  ;;  %v5934_v34 = vpop.permute.xlu0 %2163 }
 0x2ed   : > { %8434 = vst [vmem:[#allocation174_spill] sm:$0xff] %v5932_v46  ;;  %8435 = vst [vmem:[#allocation175_spill] sm:$0xff] %v5934_v34  ;;  %v8440_v46 = vld [vmem:[#allocation38_spill] sm:$0xff] }
 0x2ee   : > { %2143 = vperm.xlu1 %4589, %v5316_v2   ;;  %2547 = vperm.xlu0 %4591, %v5344_v55  }
 0x2f0   : > { %v5938_v42 = vpop.permute.xlu1 %1775  ;;  %v5940_v1 = vpop.permute.xlu0 %2171 }
 0x2f1   : > { %8436 = vst [vmem:[#allocation176_spill] sm:$0xff] %v5938_v42  ;;  %8437 = vst [vmem:[#allocation177_spill] sm:$0xff] %v5940_v1 }
 0x2f2   : > { %2151 = vperm.xlu1 %4589, %v5330_v36   ;;  %2555 = vperm.xlu0 %4591, %v5358_v54  }
 0x2f4   : > { %v5944_v47 = vpop.permute.xlu1 %1783  ;;  %v5946_v25 = vpop.permute.xlu0 %2179 }
 0x2f5   : > { %8438 = vst [vmem:[#allocation178_spill] sm:$0xff] %v5944_v47  ;;  %8439 = vst [vmem:[#allocation179_spill] sm:$0xff] %v5946_v25 }
 0x2f6   : > { %2159 = vperm.xlu1 %4589, %v5344_v55   ;;  %2563 = vperm.xlu0 %4591, %v8440_v46  }
 0x2f8   : > { %v5950_v34 = vpop.permute.xlu1 %1791  ;;  %v5952_v43 = vpop.permute.xlu0 %2187 }
 0x2f9   : > { %8441 = vst [vmem:[#allocation38_spill] sm:$0xff] %v5950_v34  ;;  %8442 = vst [vmem:[#allocation180_spill] sm:$0xff] %v5952_v43 }
 0x2fa   : > { %2167 = vperm.xlu1 %4589, %v5358_v54   ;;  %2571 = vperm.xlu0 %4591, %v5386_v60  }
 0x2fc   : > { %v5956_v1 = vpop.permute.xlu1 %1799  ;;  %v5958_v42 = vpop.permute.xlu0 %2195 }
 0x2fd   : > { %8443 = vst [vmem:[#allocation181_spill] sm:$0xff] %v5956_v1  ;;  %8444 = vst [vmem:[#allocation182_spill] sm:$0xff] %v5958_v42 }
 0x2fe   : > { %2175 = vperm.xlu1 %4589, %v8440_v46   ;;  %2579 = vperm.xlu0 %4591, %v5400_v63  }
 0x300   : > { %v5962_v25 = vpop.permute.xlu1 %1807  ;;  %v5964_v47 = vpop.permute.xlu0 %2203 }
 0x301   : > { %8445 = vst [vmem:[#allocation183_spill] sm:$0xff] %v5962_v25  ;;  %8446 = vst [vmem:[#allocation184_spill] sm:$0xff] %v5964_v47 }
 0x302   : > { %2183 = vperm.xlu1 %4589, %v5386_v60   ;;  %2587 = vperm.xlu0 %4591, %v5414_v19  }
 0x304   : > { %v5968_v43 = vpop.permute.xlu1 %1815  ;;  %v5970_v34 = vpop.permute.xlu0 %2211 }
 0x305   : > { %8447 = vst [vmem:[#allocation185_spill] sm:$0xff] %v5968_v43  ;;  %8448 = vst [vmem:[#allocation186_spill] sm:$0xff] %v5970_v34 }
 0x306   : > { %2191 = vperm.xlu1 %4589, %v5400_v63   ;;  %2595 = vperm.xlu0 %4591, %v5428_v16  }
 0x308   : > { %v5974_v42 = vpop.permute.xlu1 %1823  ;;  %v5976_v1 = vpop.permute.xlu0 %2219 }
 0x309   : > { %8449 = vst [vmem:[#allocation187_spill] sm:$0xff] %v5974_v42  ;;  %8450 = vst [vmem:[#allocation188_spill] sm:$0xff] %v5976_v1 }
 0x30a   : > { %2199 = vperm.xlu1 %4589, %v5414_v19   ;;  %2603 = vperm.xlu0 %4591, %v5442_v28  }
 0x30c   : > { %v5980_v47 = vpop.permute.xlu1 %1831  ;;  %v5982_v25 = vpop.permute.xlu0 %2227 }
 0x30d   : > { %8451 = vst [vmem:[#allocation189_spill] sm:$0xff] %v5980_v47  ;;  %8452 = vst [vmem:[#allocation190_spill] sm:$0xff] %v5982_v25 }
 0x30e   : > { %2207 = vperm.xlu1 %4589, %v5428_v16   ;;  %2611 = vperm.xlu0 %4591, %v5456_v30  }
 0x310   : > { %v5986_v34 = vpop.permute.xlu1 %1839  ;;  %v5988_v43 = vpop.permute.xlu0 %2235 }
 0x311   : > { %8453 = vst [vmem:[#allocation191_spill] sm:$0xff] %v5986_v34  ;;  %8454 = vst [vmem:[#allocation192_spill] sm:$0xff] %v5988_v43 }
 0x312   : > { %2215 = vperm.xlu1 %4589, %v5442_v28   ;;  %2619 = vperm.xlu0 %4591, %v5470_v40  }
 0x314   : > { %v5992_v1 = vpop.permute.xlu1 %1847  ;;  %v5994_v42 = vpop.permute.xlu0 %2243 }
 0x315   : > { %8455 = vst [vmem:[#allocation193_spill] sm:$0xff] %v5992_v1  ;;  %8456 = vst [vmem:[#allocation194_spill] sm:$0xff] %v5994_v42  ;;  %v8461_v1 = vld [vmem:[#allocation20_spill] sm:$0xff] }
 0x316   : > { %2223 = vperm.xlu1 %4589, %v5456_v30   ;;  %2627 = vperm.xlu0 %4591, %v5484_v29  }
 0x318   : > { %v5998_v25 = vpop.permute.xlu1 %1855  ;;  %v6000_v47 = vpop.permute.xlu0 %2251 }
 0x319   : > { %8457 = vst [vmem:[#allocation195_spill] sm:$0xff] %v5998_v25  ;;  %8458 = vst [vmem:[#allocation196_spill] sm:$0xff] %v6000_v47  ;;  %v8464_v25 = vld [vmem:[#allocation21_spill] sm:$0xff] }
 0x31a   : > { %2231 = vperm.xlu1 %4589, %v5470_v40   ;;  %2635 = vperm.xlu0 %4591, %v5498_v22  }
 0x31c   : > { %v6004_v43 = vpop.permute.xlu1 %1863  ;;  %v6006_v34 = vpop.permute.xlu0 %2259 }
 0x31d   : > { %8459 = vst [vmem:[#allocation197_spill] sm:$0xff] %v6004_v43  ;;  %8460 = vst [vmem:[#allocation198_spill] sm:$0xff] %v6006_v34  ;;  %v8467_v43 = vld [vmem:[#allocation45_spill] sm:$0xff] }
 0x31e   : > { %2239 = vperm.xlu1 %4589, %v5484_v29   ;;  %2643 = vperm.xlu0 %4591, %v8461_v1  }
 0x320   : > { %v6010_v42 = vpop.permute.xlu1 %1871  ;;  %v6012_v30 = vpop.permute.xlu0 %2267 }
 0x321   : > { %8462 = vst [vmem:[#allocation199_spill] sm:$0xff] %v6010_v42  ;;  %8463 = vst [vmem:[#allocation200_spill] sm:$0xff] %v6012_v30  ;;  %v8470_v42 = vld [vmem:[#allocation47_spill] sm:$0xff] }
 0x322   : > { %2247 = vperm.xlu1 %4589, %v5498_v22   ;;  %2651 = vperm.xlu0 %4591, %v8464_v25  }
 0x324   : > { %v6016_v47 = vpop.permute.xlu1 %1879  ;;  %v6018_v40 = vpop.permute.xlu0 %2275 }
 0x325   : > { %8465 = vst [vmem:[#allocation21_spill] sm:$0xff] %v6016_v47  ;;  %8466 = vst [vmem:[#allocation201_spill] sm:$0xff] %v6018_v40  ;;  %v8473_v47 = vld [vmem:[#allocation49_spill] sm:$0xff] }
 0x326   : > { %2255 = vperm.xlu1 %4589, %v8461_v1   ;;  %2659 = vperm.xlu0 %4591, %v8467_v43  }
 0x328   : > { %v6022_v34 = vpop.permute.xlu1 %1887  ;;  %v6024_v29 = vpop.permute.xlu0 %2283 }
 0x329   : > { %8468 = vst [vmem:[#allocation45_spill] sm:$0xff] %v6022_v34  ;;  %8469 = vst [vmem:[#allocation202_spill] sm:$0xff] %v6024_v29 }
 0x32a   : > { %2263 = vperm.xlu1 %4589, %v8464_v25   ;;  %2667 = vperm.xlu0 %4591, %v8470_v42  }
 0x32c   : > { %v6028_v30 = vpop.permute.xlu1 %1895  ;;  %v6030_v22 = vpop.permute.xlu0 %2291 }
 0x32d   : > { %8471 = vst [vmem:[#allocation47_spill] sm:$0xff] %v6028_v30  ;;  %8472 = vst [vmem:[#allocation203_spill] sm:$0xff] %v6030_v22 }
 0x32e   : > { %2271 = vperm.xlu1 %4589, %v8467_v43   ;;  %2675 = vperm.xlu0 %4591, %v8473_v47  }
 0x330   : > { %v6034_v40 = vpop.permute.xlu1 %1903  ;;  %v6036_v1 = vpop.permute.xlu0 %2299 }
 0x331   : > { %8474 = vst [vmem:[#allocation204_spill] sm:$0xff] %v6034_v40  ;;  %8475 = vst [vmem:[#allocation205_spill] sm:$0xff] %v6036_v1  ;;  %v8169_v40 = vmov 4  }
 0x332   : > { %2279 = vperm.xlu1 %4589, %v8470_v42   ;;  %2683 = vperm.xlu0 %4591, %v5547_v45  }
 0x334   : > { %v6040_v29 = vpop.permute.xlu1 %1911 }
 0x335   : > { %8476 = vst [vmem:[#allocation206_spill] sm:$0xff] %v6040_v29  ;;  %v6042_v34 = vpop.permute.xlu0 %2439 }
 0x336   : > { %8477 = vst [vmem:[#allocation207_spill] sm:$0xff] %v6042_v34  ;;  %2287 = vperm.xlu1 %4589, %v8473_v47   ;;  %2691 = vperm.xlu0 %4591, %v5684_v52  }
 0x339   : > { %v6046_v22 = vpop.permute.xlu1 %2051  ;;  %v6048_v30 = vpop.permute.xlu0 %2451 }
 0x33a   : > { %8478 = vst [vmem:[#allocation208_spill] sm:$0xff] %v6046_v22  ;;  %8479 = vst [vmem:[#allocation209_spill] sm:$0xff] %v6048_v30  ;;  %2295 = vperm.xlu1 %4589, %v5547_v45   ;;  %4594 = vset.pattern.permute.xlu0 %v8169_v40  ;;  %v8484_v30 = vmov 3  }
 0x33b   : > { %2831 = vperm.xlu0 %4594, %v5159_v14  }
 0x33d   : > { %v6053_v1 = vpop.permute.xlu1 %2059  ;;  %v6055_v29 = vpop.permute.xlu0 %2459 }
 0x33e   : > { %8480 = vst [vmem:[#allocation210_spill] sm:$0xff] %v6053_v1  ;;  %8481 = vst [vmem:[#allocation211_spill] sm:$0xff] %v6055_v29  ;;  %2303 = vperm.xlu1 %4589, %v5684_v52  }
 0x33f   : > { %2843 = vperm.xlu0 %4594, %v5181_v41  }
 0x341   : > { %v6059_v34 = vpop.permute.xlu1 %2063  ;;  %v6061_v22 = vpop.permute.xlu0 %2467 }
 0x342   : > { %8482 = vst [vmem:[#allocation212_spill] sm:$0xff] %v6059_v34  ;;  %8483 = vst [vmem:[#allocation213_spill] sm:$0xff] %v6061_v22  ;;  %4592 = vset.pattern.permute.xlu1 %v8484_v30 }
 0x343   : > { %2443 = vperm.xlu1 %4592, %v5159_v14   ;;  %2851 = vperm.xlu0 %4594, %v5195_v20  }
 0x345   : > { %v6066_v40 = vpop.permute.xlu1 %2071  ;;  %v6068_v45 = vpop.permute.xlu0 %2475 }
 0x346   : > { %8485 = vst [vmem:[#allocation214_spill] sm:$0xff] %v6066_v40  ;;  %8486 = vst [vmem:[#allocation215_spill] sm:$0xff] %v6068_v45 }
 0x347   : > { %2447 = vperm.xlu1 %4592, %v5168_v48   ;;  %2859 = vperm.xlu0 %4594, %v5209_v26  }
 0x349   : > { %v6072_v1 = vpop.permute.xlu1 %2079  ;;  %v6074_v29 = vpop.permute.xlu0 %2483 }
 0x34a   : > { %8487 = vst [vmem:[#allocation216_spill] sm:$0xff] %v6072_v1  ;;  %8488 = vst [vmem:[#allocation217_spill] sm:$0xff] %v6074_v29 }
 0x34b   : > { %2455 = vperm.xlu1 %4592, %v5181_v41   ;;  %2867 = vperm.xlu0 %4594, %v5223_v39  }
 0x34d   : > { %v6078_v30 = vpop.permute.xlu1 %2087  ;;  %v6080_v22 = vpop.permute.xlu0 %2491 }
 0x34e   : > { %8489 = vst [vmem:[#allocation218_spill] sm:$0xff] %v6078_v30  ;;  %8490 = vst [vmem:[#allocation219_spill] sm:$0xff] %v6080_v22 }
 0x34f   : > { %2463 = vperm.xlu1 %4592, %v5195_v20   ;;  %2875 = vperm.xlu0 %4594, %v5237_v53  }
 0x351   : > { %v6084_v45 = vpop.permute.xlu1 %2095  ;;  %v6086_v40 = vpop.permute.xlu0 %2499 }
 0x352   : > { %8491 = vst [vmem:[#allocation220_spill] sm:$0xff] %v6084_v45  ;;  %8492 = vst [vmem:[#allocation221_spill] sm:$0xff] %v6086_v40 }
 0x353   : > { %2471 = vperm.xlu1 %4592, %v5209_v26   ;;  %2883 = vperm.xlu0 %4594, %v5251_v56  }
 0x355   : > { %v6090_v29 = vpop.permute.xlu1 %2103  ;;  %v6092_v1 = vpop.permute.xlu0 %2507 }
 0x356   : > { %8493 = vst [vmem:[#allocation222_spill] sm:$0xff] %v6090_v29  ;;  %8494 = vst [vmem:[#allocation223_spill] sm:$0xff] %v6092_v1 }
 0x357   : > { %2479 = vperm.xlu1 %4592, %v5223_v39   ;;  %2891 = vperm.xlu0 %4594, %v5265_v59  }
 0x359   : > { %v6096_v22 = vpop.permute.xlu1 %2111  ;;  %v6098_v30 = vpop.permute.xlu0 %2515 }
 0x35a   : > { %8495 = vst [vmem:[#allocation224_spill] sm:$0xff] %v6096_v22  ;;  %8496 = vst [vmem:[#allocation225_spill] sm:$0xff] %v6098_v30 }
 0x35b   : > { %2487 = vperm.xlu1 %4592, %v5237_v53   ;;  %2899 = vperm.xlu0 %4594, %v5279_v62  }
 0x35d   : > { %v6102_v40 = vpop.permute.xlu1 %2119  ;;  %v6104_v45 = vpop.permute.xlu0 %2523 }
 0x35e   : > { %8497 = vst [vmem:[#allocation226_spill] sm:$0xff] %v6102_v40  ;;  %8498 = vst [vmem:[#allocation227_spill] sm:$0xff] %v6104_v45 }
 0x35f   : > { %2495 = vperm.xlu1 %4592, %v5251_v56   ;;  %2907 = vperm.xlu0 %4594, %v5293_v3  }
 0x361   : > { %v6108_v1 = vpop.permute.xlu1 %2127  ;;  %v6110_v29 = vpop.permute.xlu0 %2531 }
 0x362   : > { %8499 = vst [vmem:[#allocation228_spill] sm:$0xff] %v6108_v1  ;;  %8500 = vst [vmem:[#allocation229_spill] sm:$0xff] %v6110_v29 }
 0x363   : > { %2503 = vperm.xlu1 %4592, %v5265_v59   ;;  %2915 = vperm.xlu0 %4594, %v5307_v6  }
 0x365   : > { %v6114_v30 = vpop.permute.xlu1 %2135  ;;  %v6116_v22 = vpop.permute.xlu0 %2539 }
 0x366   : > { %8501 = vst [vmem:[#allocation230_spill] sm:$0xff] %v6114_v30  ;;  %8502 = vst [vmem:[#allocation231_spill] sm:$0xff] %v6116_v22 }
 0x367   : > { %2511 = vperm.xlu1 %4592, %v5279_v62   ;;  %2923 = vperm.xlu0 %4594, %v5321_v9  }
 0x369   : > { %v6120_v45 = vpop.permute.xlu1 %2143  ;;  %v6122_v40 = vpop.permute.xlu0 %2547 }
 0x36a   : > { %8503 = vst [vmem:[#allocation232_spill] sm:$0xff] %v6120_v45  ;;  %8504 = vst [vmem:[#allocation233_spill] sm:$0xff] %v6122_v40 }
 0x36b   : > { %2519 = vperm.xlu1 %4592, %v5293_v3   ;;  %2931 = vperm.xlu0 %4594, %v5335_v12  }
 0x36d   : > { %v6126_v29 = vpop.permute.xlu1 %2151  ;;  %v6128_v1 = vpop.permute.xlu0 %2555 }
 0x36e   : > { %8505 = vst [vmem:[#allocation234_spill] sm:$0xff] %v6126_v29  ;;  %8506 = vst [vmem:[#allocation235_spill] sm:$0xff] %v6128_v1 }
 0x36f   : > { %2527 = vperm.xlu1 %4592, %v5307_v6   ;;  %2939 = vperm.xlu0 %4594, %v5349_v15  }
 0x371   : > { %v6132_v22 = vpop.permute.xlu1 %2159  ;;  %v6134_v30 = vpop.permute.xlu0 %2563 }
 0x372   : > { %8507 = vst [vmem:[#allocation236_spill] sm:$0xff] %v6132_v22  ;;  %8508 = vst [vmem:[#allocation237_spill] sm:$0xff] %v6134_v30 }
 0x373   : > { %2535 = vperm.xlu1 %4592, %v5321_v9   ;;  %2947 = vperm.xlu0 %4594, %v5363_v18  }
 0x375   : > { %v6138_v40 = vpop.permute.xlu1 %2167  ;;  %v6140_v45 = vpop.permute.xlu0 %2571 }
 0x376   : > { %8509 = vst [vmem:[#allocation238_spill] sm:$0xff] %v6138_v40  ;;  %8510 = vst [vmem:[#allocation239_spill] sm:$0xff] %v6140_v45 }
 0x377   : > { %2543 = vperm.xlu1 %4592, %v5335_v12   ;;  %2955 = vperm.xlu0 %4594, %v5377_v21  }
 0x379   : > { %v6144_v1 = vpop.permute.xlu1 %2175  ;;  %v6146_v29 = vpop.permute.xlu0 %2579 }
 0x37a   : > { %8511 = vst [vmem:[#allocation240_spill] sm:$0xff] %v6144_v1  ;;  %8512 = vst [vmem:[#allocation241_spill] sm:$0xff] %v6146_v29 }
 0x37b   : > { %2551 = vperm.xlu1 %4592, %v5349_v15   ;;  %2963 = vperm.xlu0 %4594, %v5391_v24  }
 0x37d   : > { %v6150_v30 = vpop.permute.xlu1 %2183  ;;  %v6152_v22 = vpop.permute.xlu0 %2587 }
 0x37e   : > { %8513 = vst [vmem:[#allocation242_spill] sm:$0xff] %v6150_v30  ;;  %8514 = vst [vmem:[#allocation243_spill] sm:$0xff] %v6152_v22 }
 0x37f   : > { %2559 = vperm.xlu1 %4592, %v5363_v18   ;;  %2971 = vperm.xlu0 %4594, %v5405_v27  }
 0x381   : > { %v6156_v45 = vpop.permute.xlu1 %2191  ;;  %v6158_v40 = vpop.permute.xlu0 %2595 }
 0x382   : > { %8515 = vst [vmem:[#allocation244_spill] sm:$0xff] %v6156_v45  ;;  %8516 = vst [vmem:[#allocation245_spill] sm:$0xff] %v6158_v40 }
 0x383   : > { %2567 = vperm.xlu1 %4592, %v5377_v21   ;;  %2979 = vperm.xlu0 %4594, %v8382_v31  }
 0x385   : > { %v6162_v29 = vpop.permute.xlu1 %2199  ;;  %v6164_v1 = vpop.permute.xlu0 %2603 }
 0x386   : > { %8517 = vst [vmem:[#allocation246_spill] sm:$0xff] %v6162_v29  ;;  %8518 = vst [vmem:[#allocation247_spill] sm:$0xff] %v6164_v1 }
 0x387   : > { %2575 = vperm.xlu1 %4592, %v5391_v24   ;;  %2987 = vperm.xlu0 %4594, %v8384_v10  }
 0x389   : > { %v6168_v22 = vpop.permute.xlu1 %2207  ;;  %v6170_v30 = vpop.permute.xlu0 %2611 }
 0x38a   : > { %8519 = vst [vmem:[#allocation248_spill] sm:$0xff] %v6168_v22  ;;  %8520 = vst [vmem:[#allocation249_spill] sm:$0xff] %v6170_v30 }
 0x38b   : > { %2583 = vperm.xlu1 %4592, %v5405_v27   ;;  %2995 = vperm.xlu0 %4594, %v8387_v49  }
 0x38d   : > { %v6174_v40 = vpop.permute.xlu1 %2215  ;;  %v6176_v45 = vpop.permute.xlu0 %2619 }
 0x38e   : > { %8521 = vst [vmem:[#allocation250_spill] sm:$0xff] %v6174_v40  ;;  %8522 = vst [vmem:[#allocation251_spill] sm:$0xff] %v6176_v45 }
 0x38f   : > { %2591 = vperm.xlu1 %4592, %v8382_v31   ;;  %3003 = vperm.xlu0 %4594, %v8390_v58  }
 0x391   : > { %v6180_v1 = vpop.permute.xlu1 %2223  ;;  %v6182_v29 = vpop.permute.xlu0 %2627 }
 0x392   : > { %8523 = vst [vmem:[#allocation252_spill] sm:$0xff] %v6180_v1  ;;  %8524 = vst [vmem:[#allocation253_spill] sm:$0xff] %v6182_v29 }
 0x393   : > { %2599 = vperm.xlu1 %4592, %v8384_v10   ;;  %3011 = vperm.xlu0 %4594, %v8391_v4  }
 0x395   : > { %v6186_v30 = vpop.permute.xlu1 %2231  ;;  %v6188_v22 = vpop.permute.xlu0 %2635 }
 0x396   : > { %8525 = vst [vmem:[#allocation254_spill] sm:$0xff] %v6186_v30  ;;  %8526 = vst [vmem:[#allocation255_spill] sm:$0xff] %v6188_v22 }
 0x397   : > { %2607 = vperm.xlu1 %4592, %v8387_v49   ;;  %3019 = vperm.xlu0 %4594, %v8394_v44  }
 0x399   : > { %v6192_v45 = vpop.permute.xlu1 %2239  ;;  %v6194_v40 = vpop.permute.xlu0 %2643 }
 0x39a   : > { %8527 = vst [vmem:[#allocation256_spill] sm:$0xff] %v6192_v45  ;;  %8528 = vst [vmem:[#allocation257_spill] sm:$0xff] %v6194_v40 }
 0x39b   : > { %2615 = vperm.xlu1 %4592, %v8390_v58   ;;  %3027 = vperm.xlu0 %4594, %v8397_v57  }
 0x39d   : > { %v6198_v29 = vpop.permute.xlu1 %2247  ;;  %v6200_v1 = vpop.permute.xlu0 %2651 }
 0x39e   : > { %8529 = vst [vmem:[#allocation258_spill] sm:$0xff] %v6198_v29  ;;  %8530 = vst [vmem:[#allocation259_spill] sm:$0xff] %v6200_v1 }
 0x39f   : > { %2623 = vperm.xlu1 %4592, %v8391_v4   ;;  %3035 = vperm.xlu0 %4594, %v5515_v13  }
 0x3a1   : > { %v6204_v22 = vpop.permute.xlu1 %2255  ;;  %v6206_v30 = vpop.permute.xlu0 %2659 }
 0x3a2   : > { %8531 = vst [vmem:[#allocation260_spill] sm:$0xff] %v6204_v22  ;;  %8532 = vst [vmem:[#allocation261_spill] sm:$0xff] %v6206_v30 }
 0x3a3   : > { %2631 = vperm.xlu1 %4592, %v8394_v44   ;;  %3043 = vperm.xlu0 %4594, %v5525_v33  }
 0x3a5   : > { %v6210_v40 = vpop.permute.xlu1 %2263  ;;  %v6212_v45 = vpop.permute.xlu0 %2667 }
 0x3a6   : > { %8533 = vst [vmem:[#allocation262_spill] sm:$0xff] %v6210_v40  ;;  %8534 = vst [vmem:[#allocation263_spill] sm:$0xff] %v6212_v45 }
 0x3a7   : > { %2639 = vperm.xlu1 %4592, %v8397_v57   ;;  %3051 = vperm.xlu0 %4594, %v5531_v7  }
 0x3a9   : > { %v6216_v1 = vpop.permute.xlu1 %2271  ;;  %v6218_v29 = vpop.permute.xlu0 %2675 }
 0x3aa   : > { %8535 = vst [vmem:[#allocation264_spill] sm:$0xff] %v6216_v1  ;;  %8536 = vst [vmem:[#allocation265_spill] sm:$0xff] %v6218_v29  ;;  %v8541_v1 = vld [vmem:[#allocation52_spill] sm:$0xff] }
 0x3ab   : > { %2647 = vperm.xlu1 %4592, %v5515_v13   ;;  %3059 = vperm.xlu0 %4594, %v5537_v38  }
 0x3ad   : > { %v6222_v30 = vpop.permute.xlu1 %2279  ;;  %v6224_v22 = vpop.permute.xlu0 %2683 }
 0x3ae   : > { %8537 = vst [vmem:[#allocation266_spill] sm:$0xff] %v6222_v30  ;;  %8538 = vst [vmem:[#allocation267_spill] sm:$0xff] %v6224_v22  ;;  %v8172_v30 = vmov 5  }
 0x3af   : > { %2655 = vperm.xlu1 %4592, %v5525_v33   ;;  %3067 = vperm.xlu0 %4594, %v8404_v32  }
 0x3b1   : > { %v6228_v45 = vpop.permute.xlu1 %2287  ;;  %v6230_v40 = vpop.permute.xlu0 %2691 }
 0x3b2   : > { %8539 = vst [vmem:[#allocation268_spill] sm:$0xff] %v6228_v45  ;;  %8540 = vst [vmem:[#allocation269_spill] sm:$0xff] %v6230_v40 }
 0x3b3   : > { %2663 = vperm.xlu1 %4592, %v5531_v7   ;;  %3075 = vperm.xlu0 %4594, %v8541_v1  }
 0x3b5   : > { %v6234_v29 = vpop.permute.xlu1 %2295 }
 0x3b6   : > { %8542 = vst [vmem:[#allocation270_spill] sm:$0xff] %v6234_v29  ;;  %v6236_v34 = vpop.permute.xlu0 %2831 }
 0x3b7   : > { %8543 = vst [vmem:[#allocation271_spill] sm:$0xff] %v6236_v34  ;;  %2671 = vperm.xlu1 %4592, %v5537_v38   ;;  %4595 = vset.pattern.permute.xlu0 %v8172_v30  ;;  %v8550_v38 = vmov 4  }
 0x3b8   : > { %3215 = vperm.xlu0 %4595, %v5148_v17  }
 0x3b9   : > { %v6241_v22 = vpop.permute.xlu1 %2303 }
 0x3ba   : > { %8544 = vst [vmem:[#allocation272_spill] sm:$0xff] %v6241_v22  ;;  %v6243_v45 = vpop.permute.xlu0 %2843 }
 0x3bb   : > { %8545 = vst [vmem:[#allocation273_spill] sm:$0xff] %v6243_v45  ;;  %2679 = vperm.xlu1 %4592, %v8404_v32  }
 0x3bc   : > { %3227 = vperm.xlu0 %4595, %v5176_v11  }
 0x3be   : > { %v6247_v40 = vpop.permute.xlu1 %2443  ;;  %v6249_v29 = vpop.permute.xlu0 %2851 }
 0x3bf   : > { %8546 = vst [vmem:[#allocation274_spill] sm:$0xff] %v6247_v40  ;;  %8547 = vst [vmem:[#allocation275_spill] sm:$0xff] %v6249_v29  ;;  %2687 = vperm.xlu1 %4592, %v8541_v1  }
 0x3c0   : > { %3235 = vperm.xlu0 %4595, %v5190_v50  }
 0x3c2   : > { %v6253_v34 = vpop.permute.xlu1 %2447  ;;  %v6255_v30 = vpop.permute.xlu0 %2859 }
 0x3c3   : > { %8548 = vst [vmem:[#allocation276_spill] sm:$0xff] %v6253_v34  ;;  %8549 = vst [vmem:[#allocation277_spill] sm:$0xff] %v6255_v30  ;;  %4593 = vset.pattern.permute.xlu1 %v8550_v38 }
 0x3c4   : > { %2827 = vperm.xlu1 %4593, %v5148_v17   ;;  %3243 = vperm.xlu0 %4595, %v5204_v23  }
 0x3c6   : > { %v6260_v45 = vpop.permute.xlu1 %2455  ;;  %v6262_v22 = vpop.permute.xlu0 %2867 }
 0x3c7   : > { %8551 = vst [vmem:[#allocation278_spill] sm:$0xff] %v6260_v45  ;;  %8552 = vst [vmem:[#allocation279_spill] sm:$0xff] %v6262_v22 }
 0x3c8   : > { %2835 = vperm.xlu1 %4593, %v5168_v48   ;;  %3251 = vperm.xlu0 %4595, %v5218_v8  }
 0x3ca   : > { %v6266_v29 = vpop.permute.xlu1 %2463  ;;  %v6268_v40 = vpop.permute.xlu0 %2875 }
 0x3cb   : > { %8553 = vst [vmem:[#allocation280_spill] sm:$0xff] %v6266_v29  ;;  %8554 = vst [vmem:[#allocation281_spill] sm:$0xff] %v6268_v40 }
 0x3cc   : > { %2839 = vperm.xlu1 %4593, %v5176_v11   ;;  %3259 = vperm.xlu0 %4595, %v5232_v0  }
 0x3ce   : > { %v6272_v38 = vpop.permute.xlu1 %2471  ;;  %v6274_v30 = vpop.permute.xlu0 %2883 }
 0x3cf   : > { %8555 = vst [vmem:[#allocation282_spill] sm:$0xff] %v6272_v38  ;;  %8556 = vst [vmem:[#allocation283_spill] sm:$0xff] %v6274_v30 }
 0x3d0   : > { %2847 = vperm.xlu1 %4593, %v5190_v50   ;;  %3267 = vperm.xlu0 %4595, %v5246_v51  }
 0x3d2   : > { %v6278_v22 = vpop.permute.xlu1 %2479  ;;  %v6280_v45 = vpop.permute.xlu0 %2891 }
 0x3d3   : > { %8557 = vst [vmem:[#allocation284_spill] sm:$0xff] %v6278_v22  ;;  %8558 = vst [vmem:[#allocation285_spill] sm:$0xff] %v6280_v45 }
 0x3d4   : > { %2855 = vperm.xlu1 %4593, %v5204_v23   ;;  %3275 = vperm.xlu0 %4595, %v5260_v5  }
 0x3d6   : > { %v6284_v40 = vpop.permute.xlu1 %2487  ;;  %v6286_v29 = vpop.permute.xlu0 %2899 }
 0x3d7   : > { %8559 = vst [vmem:[#allocation286_spill] sm:$0xff] %v6284_v40  ;;  %8560 = vst [vmem:[#allocation287_spill] sm:$0xff] %v6286_v29 }
 0x3d8   : > { %2863 = vperm.xlu1 %4593, %v5218_v8   ;;  %3283 = vperm.xlu0 %4595, %v5274_v37  }
 0x3da   : > { %v6290_v30 = vpop.permute.xlu1 %2495  ;;  %v6292_v38 = vpop.permute.xlu0 %2907 }
 0x3db   : > { %8561 = vst [vmem:[#allocation288_spill] sm:$0xff] %v6290_v30  ;;  %8562 = vst [vmem:[#allocation289_spill] sm:$0xff] %v6292_v38 }
 0x3dc   : > { %2871 = vperm.xlu1 %4593, %v5232_v0   ;;  %3291 = vperm.xlu0 %4595, %v5288_v61  }
 0x3de   : > { %v6296_v45 = vpop.permute.xlu1 %2503  ;;  %v6298_v22 = vpop.permute.xlu0 %2915 }
 0x3df   : > { %8563 = vst [vmem:[#allocation290_spill] sm:$0xff] %v6296_v45  ;;  %8564 = vst [vmem:[#allocation291_spill] sm:$0xff] %v6298_v22 }
 0x3e0   : > { %2879 = vperm.xlu1 %4593, %v5246_v51   ;;  %3299 = vperm.xlu0 %4595, %v5302_v35  }
 0x3e2   : > { %v6302_v29 = vpop.permute.xlu1 %2511  ;;  %v6304_v40 = vpop.permute.xlu0 %2923 }
 0x3e3   : > { %8565 = vst [vmem:[#allocation292_spill] sm:$0xff] %v6302_v29  ;;  %8566 = vst [vmem:[#allocation293_spill] sm:$0xff] %v6304_v40 }
 0x3e4   : > { %2887 = vperm.xlu1 %4593, %v5260_v5   ;;  %3307 = vperm.xlu0 %4595, %v5316_v2  }
 0x3e6   : > { %v6308_v38 = vpop.permute.xlu1 %2519  ;;  %v6310_v30 = vpop.permute.xlu0 %2931 }
 0x3e7   : > { %8567 = vst [vmem:[#allocation294_spill] sm:$0xff] %v6308_v38  ;;  %8568 = vst [vmem:[#allocation295_spill] sm:$0xff] %v6310_v30 }
 0x3e8   : > { %2895 = vperm.xlu1 %4593, %v5274_v37   ;;  %3315 = vperm.xlu0 %4595, %v5330_v36  }
 0x3ea   : > { %v6314_v22 = vpop.permute.xlu1 %2527  ;;  %v6316_v45 = vpop.permute.xlu0 %2939 }
 0x3eb   : > { %8569 = vst [vmem:[#allocation296_spill] sm:$0xff] %v6314_v22  ;;  %8570 = vst [vmem:[#allocation297_spill] sm:$0xff] %v6316_v45 }
 0x3ec   : > { %2903 = vperm.xlu1 %4593, %v5288_v61   ;;  %3323 = vperm.xlu0 %4595, %v5344_v55  }
 0x3ee   : > { %v6320_v40 = vpop.permute.xlu1 %2535  ;;  %v6322_v29 = vpop.permute.xlu0 %2947 }
 0x3ef   : > { %8571 = vst [vmem:[#allocation298_spill] sm:$0xff] %v6320_v40  ;;  %8572 = vst [vmem:[#allocation299_spill] sm:$0xff] %v6322_v29 }
 0x3f0   : > { %2911 = vperm.xlu1 %4593, %v5302_v35   ;;  %3331 = vperm.xlu0 %4595, %v5358_v54  }
 0x3f2   : > { %v6326_v30 = vpop.permute.xlu1 %2543  ;;  %v6328_v38 = vpop.permute.xlu0 %2955 }
 0x3f3   : > { %8573 = vst [vmem:[#allocation300_spill] sm:$0xff] %v6326_v30  ;;  %8574 = vst [vmem:[#allocation301_spill] sm:$0xff] %v6328_v38 }
 0x3f4   : > { %2919 = vperm.xlu1 %4593, %v5316_v2   ;;  %3339 = vperm.xlu0 %4595, %v8440_v46  }
 0x3f6   : > { %v6332_v45 = vpop.permute.xlu1 %2551  ;;  %v6334_v22 = vpop.permute.xlu0 %2963 }
 0x3f7   : > { %8575 = vst [vmem:[#allocation302_spill] sm:$0xff] %v6332_v45  ;;  %8576 = vst [vmem:[#allocation303_spill] sm:$0xff] %v6334_v22 }
 0x3f8   : > { %2927 = vperm.xlu1 %4593, %v5330_v36   ;;  %3347 = vperm.xlu0 %4595, %v5386_v60  }
 0x3fa   : > { %v6338_v29 = vpop.permute.xlu1 %2559  ;;  %v6340_v40 = vpop.permute.xlu0 %2971 }
 0x3fb   : > { %8577 = vst [vmem:[#allocation304_spill] sm:$0xff] %v6338_v29  ;;  %8578 = vst [vmem:[#allocation305_spill] sm:$0xff] %v6340_v40 }
 0x3fc   : > { %2935 = vperm.xlu1 %4593, %v5344_v55   ;;  %3355 = vperm.xlu0 %4595, %v5400_v63  }
 0x3fe   : > { %v6344_v38 = vpop.permute.xlu1 %2567  ;;  %v6346_v30 = vpop.permute.xlu0 %2979 }
 0x3ff   : > { %8579 = vst [vmem:[#allocation306_spill] sm:$0xff] %v6344_v38  ;;  %8580 = vst [vmem:[#allocation307_spill] sm:$0xff] %v6346_v30 }
 0x400   : > { %2943 = vperm.xlu1 %4593, %v5358_v54   ;;  %3363 = vperm.xlu0 %4595, %v5414_v19  }
 0x402   : > { %v6350_v22 = vpop.permute.xlu1 %2575  ;;  %v6352_v45 = vpop.permute.xlu0 %2987 }
 0x403   : > { %8581 = vst [vmem:[#allocation308_spill] sm:$0xff] %v6350_v22  ;;  %8582 = vst [vmem:[#allocation309_spill] sm:$0xff] %v6352_v45  ;;  %v8587_v22 = vld [vmem:[#allocation11_spill] sm:$0xff] }
 0x404   : > { %2951 = vperm.xlu1 %4593, %v8440_v46   ;;  %3371 = vperm.xlu0 %4595, %v5428_v16  }
 0x406   : > { %v6356_v40 = vpop.permute.xlu1 %2583  ;;  %v6358_v29 = vpop.permute.xlu0 %2995 }
 0x407   : > { %8583 = vst [vmem:[#allocation310_spill] sm:$0xff] %v6356_v40  ;;  %8584 = vst [vmem:[#allocation311_spill] sm:$0xff] %v6358_v29  ;;  %v8590_v40 = vld [vmem:[#allocation13_spill] sm:$0xff] }
 0x408   : > { %2959 = vperm.xlu1 %4593, %v5386_v60   ;;  %3379 = vperm.xlu0 %4595, %v5442_v28  }
 0x40a   : > { %v6362_v30 = vpop.permute.xlu1 %2591  ;;  %v6364_v38 = vpop.permute.xlu0 %3003 }
 0x40b   : > { %8585 = vst [vmem:[#allocation312_spill] sm:$0xff] %v6362_v30  ;;  %8586 = vst [vmem:[#allocation313_spill] sm:$0xff] %v6364_v38  ;;  %v8593_v30 = vld [vmem:[#allocation15_spill] sm:$0xff] }
 0x40c   : > { %2967 = vperm.xlu1 %4593, %v5400_v63   ;;  %3387 = vperm.xlu0 %4595, %v8587_v22  }
 0x40e   : > { %v6368_v45 = vpop.permute.xlu1 %2599  ;;  %v6370_v34 = vpop.permute.xlu0 %3011 }
 0x40f   : > { %8588 = vst [vmem:[#allocation11_spill] sm:$0xff] %v6368_v45  ;;  %8589 = vst [vmem:[#allocation314_spill] sm:$0xff] %v6370_v34  ;;  %v8596_v45 = vld [vmem:[#allocation18_spill] sm:$0xff] }
 0x410   : > { %2975 = vperm.xlu1 %4593, %v5414_v19   ;;  %3395 = vperm.xlu0 %4595, %v8590_v40  }
 0x412   : > { %v6374_v29 = vpop.permute.xlu1 %2607  ;;  %v6376_v60 = vpop.permute.xlu0 %3019 }
 0x413   : > { %8591 = vst [vmem:[#allocation13_spill] sm:$0xff] %v6374_v29  ;;  %8592 = vst [vmem:[#allocation315_spill] sm:$0xff] %v6376_v60  ;;  %v8599_v29 = vld [vmem:[#allocation20_spill] sm:$0xff] }
 0x414   : > { %2983 = vperm.xlu1 %4593, %v5428_v16   ;;  %3403 = vperm.xlu0 %4595, %v8593_v30  }
 0x416   : > { %v6380_v38 = vpop.permute.xlu1 %2615  ;;  %v6382_v63 = vpop.permute.xlu0 %3027 }
 0x417   : > { %8594 = vst [vmem:[#allocation15_spill] sm:$0xff] %v6380_v38  ;;  %8595 = vst [vmem:[#allocation316_spill] sm:$0xff] %v6382_v63 }
 0x418   : > { %2991 = vperm.xlu1 %4593, %v5442_v28   ;;  %3411 = vperm.xlu0 %4595, %v8596_v45  }
 0x41a   : > { %v6386_v34 = vpop.permute.xlu1 %2623  ;;  %v6388_v19 = vpop.permute.xlu0 %3035 }
 0x41b   : > { %8597 = vst [vmem:[#allocation317_spill] sm:$0xff] %v6386_v34  ;;  %8598 = vst [vmem:[#allocation318_spill] sm:$0xff] %v6388_v19 }
 0x41c   : > { %2999 = vperm.xlu1 %4593, %v8587_v22   ;;  %3419 = vperm.xlu0 %4595, %v8599_v29  }
 0x41e   : > { %v6392_v60 = vpop.permute.xlu1 %2631  ;;  %v6394_v16 = vpop.permute.xlu0 %3043 }
 0x41f   : > { %8600 = vst [vmem:[#allocation20_spill] sm:$0xff] %v6392_v60  ;;  %8601 = vst [vmem:[#allocation319_spill] sm:$0xff] %v6394_v16 }
 0x420   : > { %3007 = vperm.xlu1 %4593, %v8590_v40   ;;  %3427 = vperm.xlu0 %4595, %v8464_v25  }
 0x422   : > { %v6398_v63 = vpop.permute.xlu1 %2639  ;;  %v6400_v38 = vpop.permute.xlu0 %3051 }
 0x423   : > { %8602 = vst [vmem:[#allocation320_spill] sm:$0xff] %v6398_v63  ;;  %8603 = vst [vmem:[#allocation321_spill] sm:$0xff] %v6400_v38 }
 0x424   : > { %3015 = vperm.xlu1 %4593, %v8593_v30   ;;  %3435 = vperm.xlu0 %4595, %v8467_v43  }
 0x426   : > { %v6404_v19 = vpop.permute.xlu1 %2647  ;;  %v6406_v34 = vpop.permute.xlu0 %3059 }
 0x427   : > { %8604 = vst [vmem:[#allocation322_spill] sm:$0xff] %v6404_v19  ;;  %8605 = vst [vmem:[#allocation323_spill] sm:$0xff] %v6406_v34  ;;  %v8610_v19 = vld [vmem:[#allocation51_spill] sm:$0xff] }
 0x428   : > { %3023 = vperm.xlu1 %4593, %v8596_v45   ;;  %3443 = vperm.xlu0 %4595, %v8470_v42  }
 0x42a   : > { %v6410_v16 = vpop.permute.xlu1 %2655  ;;  %v6412_v60 = vpop.permute.xlu0 %3067 }
 0x42b   : > { %8606 = vst [vmem:[#allocation324_spill] sm:$0xff] %v6410_v16  ;;  %8607 = vst [vmem:[#allocation325_spill] sm:$0xff] %v6412_v60 }
 0x42c   : > { %3031 = vperm.xlu1 %4593, %v8599_v29   ;;  %3451 = vperm.xlu0 %4595, %v8473_v47  }
 0x42e   : > { %v6416_v38 = vpop.permute.xlu1 %2663  ;;  %v6418_v63 = vpop.permute.xlu0 %3075 }
 0x42f   : > { %8608 = vst [vmem:[#allocation326_spill] sm:$0xff] %v6416_v38  ;;  %8609 = vst [vmem:[#allocation327_spill] sm:$0xff] %v6418_v63  ;;  %v8184_v38 = vmov 6  }
 0x430   : > { %3039 = vperm.xlu1 %4593, %v8464_v25   ;;  %3459 = vperm.xlu0 %4595, %v8610_v19  }
 0x432   : > { %v6422_v34 = vpop.permute.xlu1 %2671 }
 0x433   : > { %8611 = vst [vmem:[#allocation51_spill] sm:$0xff] %v6422_v34  ;;  %v6424_v45 = vpop.permute.xlu0 %3215 }
 0x434   : > { %8612 = vst [vmem:[#allocation328_spill] sm:$0xff] %v6424_v45  ;;  %3047 = vperm.xlu1 %4593, %v8467_v43   ;;  %3467 = vperm.xlu0 %4595, %v5684_v52  }
 0x436   : > { %v6428_v60 = vpop.permute.xlu1 %2679 }
 0x437   : > { %8613 = vst [vmem:[#allocation329_spill] sm:$0xff] %v6428_v60  ;;  %v6430_v16 = vpop.permute.xlu0 %3227 }
 0x438   : > { %8614 = vst [vmem:[#allocation330_spill] sm:$0xff] %v6430_v16  ;;  %3055 = vperm.xlu1 %4593, %v8470_v42   ;;  %4598 = vset.pattern.permute.xlu0 %v8184_v38 }
 0x439   : > { %3607 = vperm.xlu0 %4598, %v5159_v14  }
 0x43a   : > { %v6435_v63 = vpop.permute.xlu1 %2687 }
 0x43b   : > { %8615 = vst [vmem:[#allocation331_spill] sm:$0xff] %v6435_v63  ;;  %v6437_v34 = vpop.permute.xlu0 %3235 }
 0x43c   : > { %8616 = vst [vmem:[#allocation332_spill] sm:$0xff] %v6437_v34  ;;  %3063 = vperm.xlu1 %4593, %v8473_v47   ;;  %v8622_v47 = vmov 5  }
 0x43d   : > { %3619 = vperm.xlu0 %4598, %v5181_v41  }
 0x43f   : > { %v6441_v45 = vpop.permute.xlu1 %2827  ;;  %v6443_v60 = vpop.permute.xlu0 %3243 }
 0x440   : > { %8617 = vst [vmem:[#allocation333_spill] sm:$0xff] %v6441_v45  ;;  %8618 = vst [vmem:[#allocation334_spill] sm:$0xff] %v6443_v60  ;;  %3071 = vperm.xlu1 %4593, %v8610_v19  }
 0x441   : > { %3627 = vperm.xlu0 %4598, %v5195_v20  }
 0x443   : > { %v6447_v16 = vpop.permute.xlu1 %2835  ;;  %v6449_v38 = vpop.permute.xlu0 %3251 }
 0x444   : > { %8619 = vst [vmem:[#allocation335_spill] sm:$0xff] %v6447_v16  ;;  %8620 = vst [vmem:[#allocation336_spill] sm:$0xff] %v6449_v38  ;;  %3079 = vperm.xlu1 %4593, %v5684_v52  }
 0x445   : > { %3635 = vperm.xlu0 %4598, %v5209_v26  }
 0x447   : > { %v6453_v63 = vpop.permute.xlu1 %2839  ;;  %v6455_v34 = vpop.permute.xlu0 %3259 }
 0x448   : > { %8621 = vst [vmem:[#allocation337_spill] sm:$0xff] %v6455_v34  ;;  %4596 = vset.pattern.permute.xlu1 %v8622_v47 }
 0x449   : > { %3219 = vperm.xlu1 %4596, %v5159_v14   ;;  %3643 = vperm.xlu0 %4598, %v5223_v39  }
 0x44b   : > { %v6460_v60 = vpop.permute.xlu1 %2847  ;;  %v6462_v45 = vpop.permute.xlu0 %3267 }
 0x44c   : > { %8623 = vst [vmem:[#allocation338_spill] sm:$0xff] %v6462_v45 }
 0x44d   : > { %3223 = vperm.xlu1 %4596, %v5168_v48   ;;  %3651 = vperm.xlu0 %4598, %v5237_v53  }
 0x44f   : > { %v6466_v16 = vpop.permute.xlu1 %2855  ;;  %v6468_v38 = vpop.permute.xlu0 %3275 }
 0x450   : > { %8624 = vst [vmem:[#allocation339_spill] sm:$0xff] %v6468_v38 }
 0x451   : > { %3231 = vperm.xlu1 %4596, %v5181_v41   ;;  %3659 = vperm.xlu0 %4598, %v5251_v56  }
 0x453   : > { %v6472_v47 = vpop.permute.xlu1 %2863  ;;  %v6474_v34 = vpop.permute.xlu0 %3283 }
 0x454   : > { %8625 = vst [vmem:[#allocation340_spill] sm:$0xff] %v6474_v34 }
 0x455   : > { %3239 = vperm.xlu1 %4596, %v5195_v20   ;;  %3667 = vperm.xlu0 %4598, %v5265_v59  }
 0x457   : > { %v6478_v45 = vpop.permute.xlu1 %2871  ;;  %v6480_v14 = vpop.permute.xlu0 %3291 }
 0x458   : > { %8626 = vst [vmem:[#allocation341_spill] sm:$0xff] %v6480_v14 }
 0x459   : > { %3247 = vperm.xlu1 %4596, %v5209_v26   ;;  %3675 = vperm.xlu0 %4598, %v5279_v62  }
 0x45b   : > { %v6484_v38 = vpop.permute.xlu1 %2879  ;;  %v6486_v41 = vpop.permute.xlu0 %3299 }
 0x45c   : > { %8627 = vst [vmem:[#allocation342_spill] sm:$0xff] %v6486_v41 }
 0x45d   : > { %3255 = vperm.xlu1 %4596, %v5223_v39   ;;  %3683 = vperm.xlu0 %4598, %v5293_v3  }
 0x45f   : > { %v6490_v34 = vpop.permute.xlu1 %2887  ;;  %v6492_v20 = vpop.permute.xlu0 %3307 }
 0x460   : > { %8628 = vst [vmem:[#allocation343_spill] sm:$0xff] %v6492_v20 }
 0x461   : > { %3263 = vperm.xlu1 %4596, %v5237_v53   ;;  %3691 = vperm.xlu0 %4598, %v5307_v6  }
 0x463   : > { %v6496_v14 = vpop.permute.xlu1 %2895  ;;  %v6498_v26 = vpop.permute.xlu0 %3315 }
 0x464   : > { %8629 = vst [vmem:[#allocation344_spill] sm:$0xff] %v6498_v26 }
 0x465   : > { %3271 = vperm.xlu1 %4596, %v5251_v56   ;;  %3699 = vperm.xlu0 %4598, %v5321_v9  }
 0x467   : > { %v6502_v41 = vpop.permute.xlu1 %2903  ;;  %v6504_v39 = vpop.permute.xlu0 %3323 }
 0x468   : > { %8630 = vst [vmem:[#allocation345_spill] sm:$0xff] %v6504_v39 }
 0x469   : > { %3279 = vperm.xlu1 %4596, %v5265_v59   ;;  %3707 = vperm.xlu0 %4598, %v5335_v12  }
 0x46b   : > { %v6508_v20 = vpop.permute.xlu1 %2911  ;;  %v6510_v53 = vpop.permute.xlu0 %3331 }
 0x46c   : > { %8631 = vst [vmem:[#allocation346_spill] sm:$0xff] %v6510_v53 }
 0x46d   : > { %3287 = vperm.xlu1 %4596, %v5279_v62   ;;  %3715 = vperm.xlu0 %4598, %v5349_v15  }
 0x46f   : > { %v6514_v26 = vpop.permute.xlu1 %2919  ;;  %v6516_v56 = vpop.permute.xlu0 %3339 }
 0x470   : > { %8632 = vst [vmem:[#allocation347_spill] sm:$0xff] %v6516_v56 }
 0x471   : > { %3295 = vperm.xlu1 %4596, %v5293_v3   ;;  %3723 = vperm.xlu0 %4598, %v5363_v18  }
 0x473   : > { %v6520_v39 = vpop.permute.xlu1 %2927  ;;  %v6522_v59 = vpop.permute.xlu0 %3347 }
 0x474   : > { %8633 = vst [vmem:[#allocation348_spill] sm:$0xff] %v6522_v59 }
 0x475   : > { %3303 = vperm.xlu1 %4596, %v5307_v6   ;;  %3731 = vperm.xlu0 %4598, %v5377_v21  }
 0x477   : > { %v6526_v53 = vpop.permute.xlu1 %2935  ;;  %v6528_v62 = vpop.permute.xlu0 %3355 }
 0x478   : > { %8634 = vst [vmem:[#allocation349_spill] sm:$0xff] %v6528_v62 }
 0x479   : > { %3311 = vperm.xlu1 %4596, %v5321_v9   ;;  %3739 = vperm.xlu0 %4598, %v5391_v24  }
 0x47b   : > { %v6532_v56 = vpop.permute.xlu1 %2943  ;;  %v6534_v3 = vpop.permute.xlu0 %3363 }
 0x47c   : > { %8635 = vst [vmem:[#allocation350_spill] sm:$0xff] %v6534_v3 }
 0x47d   : > { %3319 = vperm.xlu1 %4596, %v5335_v12   ;;  %3747 = vperm.xlu0 %4598, %v5405_v27  }
 0x47f   : > { %v6538_v59 = vpop.permute.xlu1 %2951  ;;  %v6540_v6 = vpop.permute.xlu0 %3371 }
 0x480   : > { %8636 = vst [vmem:[#allocation351_spill] sm:$0xff] %v6540_v6 }
 0x481   : > { %3327 = vperm.xlu1 %4596, %v5349_v15   ;;  %3755 = vperm.xlu0 %4598, %v8382_v31  }
 0x483   : > { %v6544_v62 = vpop.permute.xlu1 %2959  ;;  %v6546_v9 = vpop.permute.xlu0 %3379 }
 0x484   : > { %8637 = vst [vmem:[#allocation352_spill] sm:$0xff] %v6546_v9 }
 0x485   : > { %3335 = vperm.xlu1 %4596, %v5363_v18   ;;  %3763 = vperm.xlu0 %4598, %v8384_v10  }
 0x487   : > { %v6550_v3 = vpop.permute.xlu1 %2967  ;;  %v6552_v12 = vpop.permute.xlu0 %3387 }
 0x488   : > { %8638 = vst [vmem:[#allocation353_spill] sm:$0xff] %v6552_v12 }
 0x489   : > { %3343 = vperm.xlu1 %4596, %v5377_v21   ;;  %3771 = vperm.xlu0 %4598, %v8387_v49  }
 0x48b   : > { %v6556_v6 = vpop.permute.xlu1 %2975  ;;  %v6558_v15 = vpop.permute.xlu0 %3395 }
 0x48c   : > { %8639 = vst [vmem:[#allocation354_spill] sm:$0xff] %v6558_v15 }
 0x48d   : > { %3351 = vperm.xlu1 %4596, %v5391_v24   ;;  %3779 = vperm.xlu0 %4598, %v8390_v58  }
 0x48f   : > { %v6562_v9 = vpop.permute.xlu1 %2983  ;;  %v6564_v18 = vpop.permute.xlu0 %3403 }
 0x490   : > { %8640 = vst [vmem:[#allocation355_spill] sm:$0xff] %v6564_v18 }
 0x491   : > { %3359 = vperm.xlu1 %4596, %v5405_v27   ;;  %3787 = vperm.xlu0 %4598, %v8391_v4  }
 0x493   : > { %v6568_v12 = vpop.permute.xlu1 %2991  ;;  %v6570_v21 = vpop.permute.xlu0 %3411 }
 0x494   : > { %8641 = vst [vmem:[#allocation356_spill] sm:$0xff] %v6570_v21 }
 0x495   : > { %3367 = vperm.xlu1 %4596, %v8382_v31   ;;  %3795 = vperm.xlu0 %4598, %v8394_v44  }
 0x497   : > { %v6574_v15 = vpop.permute.xlu1 %2999  ;;  %v6576_v24 = vpop.permute.xlu0 %3419 }
 0x498   : > { %8642 = vst [vmem:[#allocation357_spill] sm:$0xff] %v6576_v24 }
 0x499   : > { %3375 = vperm.xlu1 %4596, %v8384_v10   ;;  %3803 = vperm.xlu0 %4598, %v8397_v57  }
 0x49b   : > { %v6580_v18 = vpop.permute.xlu1 %3007  ;;  %v6582_v27 = vpop.permute.xlu0 %3427 }
 0x49c   : > { %8643 = vst [vmem:[#allocation358_spill] sm:$0xff] %v6582_v27 }
 0x49d   : > { %3383 = vperm.xlu1 %4596, %v8387_v49   ;;  %3811 = vperm.xlu0 %4598, %v5515_v13  }
 0x49f   : > { %v6586_v21 = vpop.permute.xlu1 %3015  ;;  %v6588_v31 = vpop.permute.xlu0 %3435 }
 0x4a0   : > { %8644 = vst [vmem:[#allocation359_spill] sm:$0xff] %v6586_v21  ;;  %8645 = vst [vmem:[#allocation360_spill] sm:$0xff] %v6588_v31  ;;  %v8650_v21 = vld [vmem:[#allocation48_spill] sm:$0xff] }
 0x4a1   : > { %3391 = vperm.xlu1 %4596, %v8390_v58   ;;  %3819 = vperm.xlu0 %4598, %v5525_v33  }
 0x4a3   : > { %v6592_v24 = vpop.permute.xlu1 %3023  ;;  %v6594_v10 = vpop.permute.xlu0 %3443 }
 0x4a4   : > { %8646 = vst [vmem:[#allocation361_spill] sm:$0xff] %v6592_v24  ;;  %8647 = vst [vmem:[#allocation362_spill] sm:$0xff] %v6594_v10  ;;  %v8754_v24 = vld [vmem:[#allocation211_spill] sm:$0xff] }
 0x4a5   : > { %3399 = vperm.xlu1 %4596, %v8391_v4   ;;  %3827 = vperm.xlu0 %4598, %v5531_v7  }
 0x4a7   : > { %v6598_v27 = vpop.permute.xlu1 %3031  ;;  %v6600_v49 = vpop.permute.xlu0 %3451 }
 0x4a8   : > { %8648 = vst [vmem:[#allocation363_spill] sm:$0xff] %v6598_v27  ;;  %8649 = vst [vmem:[#allocation364_spill] sm:$0xff] %v6600_v49  ;;  %v8753_v27 = vld [vmem:[#allocation99_spill] sm:$0xff] }
 0x4a9   : > { %3407 = vperm.xlu1 %4596, %v8394_v44   ;;  %3835 = vperm.xlu0 %4598, %v8650_v21  }
 0x4ab   : > { %v6604_v31 = vpop.permute.xlu1 %3039  ;;  %v6606_v58 = vpop.permute.xlu0 %3459 }
 0x4ac   : > { %8651 = vst [vmem:[#allocation365_spill] sm:$0xff] %v6604_v31  ;;  %8652 = vst [vmem:[#allocation366_spill] sm:$0xff] %v6606_v58  ;;  %v8212_v31 = vmov 7  }
 0x4ad   : > { %3415 = vperm.xlu1 %4596, %v8397_v57   ;;  %3843 = vperm.xlu0 %4598, %v8404_v32  }
 0x4af   : > { %v6610_v10 = vpop.permute.xlu1 %3047  ;;  %v6612_v4 = vpop.permute.xlu0 %3467 }
 0x4b0   : > { %8653 = vst [vmem:[#allocation367_spill] sm:$0xff] %v6610_v10  ;;  %8654 = vst [vmem:[#allocation368_spill] sm:$0xff] %v6612_v4 }
 0x4b1   : > { %3423 = vperm.xlu1 %4596, %v5515_v13   ;;  %3851 = vperm.xlu0 %4598, %v8541_v1  }
 0x4b3   : > { %v6616_v49 = vpop.permute.xlu1 %3055 }
 0x4b4   : > { %8655 = vst [vmem:[#allocation369_spill] sm:$0xff] %v6616_v49  ;;  %v6618_v44 = vpop.permute.xlu0 %3607 }
 0x4b5   : > { %8656 = vst [vmem:[#allocation370_spill] sm:$0xff] %v6618_v44  ;;  %3431 = vperm.xlu1 %4596, %v5525_v33   ;;  %4599 = vset.pattern.permute.xlu0 %v8212_v31  ;;  %v8667_v33 = vmov 6  }
 0x4b6   : > { %3991 = vperm.xlu0 %4599, %v5148_v17  }
 0x4b7   : > { %v6623_v58 = vpop.permute.xlu1 %3063 }
 0x4b8   : > { %8657 = vst [vmem:[#allocation371_spill] sm:$0xff] %v6623_v58  ;;  %v6625_v57 = vpop.permute.xlu0 %3619 }
 0x4b9   : > { %8658 = vst [vmem:[#allocation372_spill] sm:$0xff] %v6625_v57  ;;  %3439 = vperm.xlu1 %4596, %v5531_v7  }
 0x4ba   : > { %4003 = vperm.xlu0 %4599, %v5176_v11  }
 0x4bb   : > { %v6629_v4 = vpop.permute.xlu1 %3071 }
 0x4bc   : > { %8659 = vst [vmem:[#allocation373_spill] sm:$0xff] %v6629_v4  ;;  %v6631_v13 = vpop.permute.xlu0 %3627 }
 0x4bd   : > { %8660 = vst [vmem:[#allocation374_spill] sm:$0xff] %v6631_v13  ;;  %3447 = vperm.xlu1 %4596, %v8650_v21  }
 0x4be   : > { %4011 = vperm.xlu0 %4599, %v5190_v50  }
 0x4bf   : > { %v6635_v44 = vpop.permute.xlu1 %3079 }
 0x4c0   : > { %8661 = vst [vmem:[#allocation375_spill] sm:$0xff] %v6635_v44  ;;  %v6637_v31 = vpop.permute.xlu0 %3635 }
 0x4c1   : > { %8662 = vst [vmem:[#allocation376_spill] sm:$0xff] %v6637_v31  ;;  %3455 = vperm.xlu1 %4596, %v8404_v32  }
 0x4c2   : > { %4019 = vperm.xlu0 %4599, %v5204_v23  }
 0x4c4   : > { %v6641_v57 = vpop.permute.xlu1 %3219  ;;  %v6643_v7 = vpop.permute.xlu0 %3643 }
 0x4c5   : > { %8663 = vst [vmem:[#allocation377_spill] sm:$0xff] %v6641_v57  ;;  %8664 = vst [vmem:[#allocation378_spill] sm:$0xff] %v6643_v7  ;;  %3463 = vperm.xlu1 %4596, %v8541_v1  }
 0x4c6   : > { %4027 = vperm.xlu0 %4599, %v5218_v8  }
 0x4c8   : > { %v6647_v13 = vpop.permute.xlu1 %3223  ;;  %v6649_v21 = vpop.permute.xlu0 %3651 }
 0x4c9   : > { %8665 = vst [vmem:[#allocation379_spill] sm:$0xff] %v6647_v13  ;;  %8666 = vst [vmem:[#allocation380_spill] sm:$0xff] %v6649_v21  ;;  %4597 = vset.pattern.permute.xlu1 %v8667_v33 }
 0x4ca   : > { %3603 = vperm.xlu1 %4597, %v5148_v17   ;;  %4035 = vperm.xlu0 %4599, %v5232_v0  }
 0x4cc   : > { %v6654_v31 = vpop.permute.xlu1 %3231  ;;  %v6656_v32 = vpop.permute.xlu0 %3659 }
 0x4cd   : > { %8668 = vst [vmem:[#allocation381_spill] sm:$0xff] %v6654_v31  ;;  %8669 = vst [vmem:[#allocation382_spill] sm:$0xff] %v6656_v32 }
 0x4ce   : > { %3611 = vperm.xlu1 %4597, %v5168_v48   ;;  %4043 = vperm.xlu0 %4599, %v5246_v51  }
 0x4d0   : > { %v6660_v7 = vpop.permute.xlu1 %3239  ;;  %v6662_v1 = vpop.permute.xlu0 %3667 }
 0x4d1   : > { %8670 = vst [vmem:[#allocation383_spill] sm:$0xff] %v6660_v7  ;;  %8671 = vst [vmem:[#allocation384_spill] sm:$0xff] %v6662_v1  ;;  %v8739_v7 = vld [vmem:[#allocation212_spill] sm:$0xff] }
 0x4d2   : > { %3615 = vperm.xlu1 %4597, %v5176_v11   ;;  %4051 = vperm.xlu0 %4599, %v5260_v5  }
 0x4d4   : > { %v6666_v33 = vpop.permute.xlu1 %3247  ;;  %v6668_v17 = vpop.permute.xlu0 %3675 }
 0x4d5   : > { %8672 = vst [vmem:[#allocation385_spill] sm:$0xff] %v6666_v33  ;;  %8673 = vst [vmem:[#allocation386_spill] sm:$0xff] %v6668_v17 }
 0x4d6   : > { %3623 = vperm.xlu1 %4597, %v5190_v50   ;;  %4059 = vperm.xlu0 %4599, %v5274_v37  }
 0x4d8   : > { %v6672_v32 = vpop.permute.xlu1 %3255  ;;  %v6674_v21 = vpop.permute.xlu0 %3683 }
 0x4d9   : > { %8674 = vst [vmem:[#allocation387_spill] sm:$0xff] %v6672_v32  ;;  %8675 = vst [vmem:[#allocation388_spill] sm:$0xff] %v6674_v21 }
 0x4da   : > { %3631 = vperm.xlu1 %4597, %v5204_v23   ;;  %4067 = vperm.xlu0 %4599, %v5288_v61  }
 0x4dc   : > { %v6678_v1 = vpop.permute.xlu1 %3263  ;;  %v6680_v11 = vpop.permute.xlu0 %3691 }
 0x4dd   : > { %8676 = vst [vmem:[#allocation389_spill] sm:$0xff] %v6678_v1  ;;  %8677 = vst [vmem:[#allocation390_spill] sm:$0xff] %v6680_v11 }
 0x4de   : > { %3639 = vperm.xlu1 %4597, %v5218_v8   ;;  %4075 = vperm.xlu0 %4599, %v5302_v35  }
 0x4e0   : > { %v6684_v17 = vpop.permute.xlu1 %3271  ;;  %v6686_v50 = vpop.permute.xlu0 %3699 }
 0x4e1   : > { %8678 = vst [vmem:[#allocation391_spill] sm:$0xff] %v6684_v17  ;;  %8679 = vst [vmem:[#allocation392_spill] sm:$0xff] %v6686_v50 }
 0x4e2   : > { %3647 = vperm.xlu1 %4597, %v5232_v0   ;;  %4083 = vperm.xlu0 %4599, %v5316_v2  }
 0x4e4   : > { %v6690_v21 = vpop.permute.xlu1 %3279  ;;  %v6692_v23 = vpop.permute.xlu0 %3707 }
 0x4e5   : > { %8680 = vst [vmem:[#allocation393_spill] sm:$0xff] %v6690_v21  ;;  %8681 = vst [vmem:[#allocation394_spill] sm:$0xff] %v6692_v23 }
 0x4e6   : > { %3655 = vperm.xlu1 %4597, %v5246_v51   ;;  %4091 = vperm.xlu0 %4599, %v5330_v36  }
 0x4e8   : > { %v6696_v11 = vpop.permute.xlu1 %3287  ;;  %v6698_v8 = vpop.permute.xlu0 %3715 }
 0x4e9   : > { %8682 = vst [vmem:[#allocation395_spill] sm:$0xff] %v6696_v11  ;;  %8683 = vst [vmem:[#allocation396_spill] sm:$0xff] %v6698_v8 }
 0x4ea   : > { %3663 = vperm.xlu1 %4597, %v5260_v5   ;;  %4099 = vperm.xlu0 %4599, %v5344_v55  }
 0x4ec   : > { %v6702_v50 = vpop.permute.xlu1 %3295  ;;  %v6704_v0 = vpop.permute.xlu0 %3723 }
 0x4ed   : > { %8684 = vst [vmem:[#allocation397_spill] sm:$0xff] %v6702_v50  ;;  %8685 = vst [vmem:[#allocation398_spill] sm:$0xff] %v6704_v0  ;;  %v8690_v50 = vld [vmem:[#allocation40_spill] sm:$0xff] }
 0x4ee   : > { %3671 = vperm.xlu1 %4597, %v5274_v37   ;;  %4107 = vperm.xlu0 %4599, %v5358_v54  }
 0x4f0   : > { %v6708_v23 = vpop.permute.xlu1 %3303  ;;  %v6710_v51 = vpop.permute.xlu0 %3731 }
 0x4f1   : > { %8686 = vst [vmem:[#allocation399_spill] sm:$0xff] %v6708_v23  ;;  %8687 = vst [vmem:[#allocation400_spill] sm:$0xff] %v6710_v51  ;;  %v8693_v23 = vld [vmem:[#allocation42_spill] sm:$0xff] }
 0x4f2   : > { %3679 = vperm.xlu1 %4597, %v5288_v61   ;;  %4115 = vperm.xlu0 %4599, %v8440_v46  }
 0x4f4   : > { %v6714_v8 = vpop.permute.xlu1 %3311  ;;  %v6716_v5 = vpop.permute.xlu0 %3739 }
 0x4f5   : > { %8688 = vst [vmem:[#allocation401_spill] sm:$0xff] %v6714_v8  ;;  %8689 = vst [vmem:[#allocation402_spill] sm:$0xff] %v6716_v5  ;;  %v8696_v8 = vld [vmem:[#allocation5_spill] sm:$0xff] }
 0x4f6   : > { %3687 = vperm.xlu1 %4597, %v5302_v35   ;;  %4123 = vperm.xlu0 %4599, %v8690_v50  }
 0x4f8   : > { %v6720_v0 = vpop.permute.xlu1 %3319  ;;  %v6722_v37 = vpop.permute.xlu0 %3747 }
 0x4f9   : > { %8691 = vst [vmem:[#allocation40_spill] sm:$0xff] %v6720_v0  ;;  %8692 = vst [vmem:[#allocation403_spill] sm:$0xff] %v6722_v37  ;;  %v8699_v0 = vld [vmem:[#allocation6_spill] sm:$0xff] }
 0x4fa   : > { %3695 = vperm.xlu1 %4597, %v5316_v2   ;;  %4131 = vperm.xlu0 %4599, %v8693_v23  }
 0x4fc   : > { %v6726_v51 = vpop.permute.xlu1 %3327  ;;  %v6728_v61 = vpop.permute.xlu0 %3755 }
 0x4fd   : > { %8694 = vst [vmem:[#allocation42_spill] sm:$0xff] %v6726_v51  ;;  %8695 = vst [vmem:[#allocation404_spill] sm:$0xff] %v6728_v61 }
 0x4fe   : > { %3703 = vperm.xlu1 %4597, %v5330_v36   ;;  %4139 = vperm.xlu0 %4599, %v8696_v8  }
 0x500   : > { %v6732_v5 = vpop.permute.xlu1 %3335  ;;  %v6734_v35 = vpop.permute.xlu0 %3763 }
 0x501   : > { %8697 = vst [vmem:[#allocation5_spill] sm:$0xff] %v6732_v5  ;;  %8698 = vst [vmem:[#allocation405_spill] sm:$0xff] %v6734_v35 }
 0x502   : > { %3711 = vperm.xlu1 %4597, %v5344_v55   ;;  %4147 = vperm.xlu0 %4599, %v8699_v0  }
 0x504   : > { %v6738_v37 = vpop.permute.xlu1 %3343  ;;  %v6740_v2 = vpop.permute.xlu0 %3771 }
 0x505   : > { %8700 = vst [vmem:[#allocation6_spill] sm:$0xff] %v6738_v37  ;;  %8701 = vst [vmem:[#allocation406_spill] sm:$0xff] %v6740_v2  ;;  %v8731_v37 = vld [vmem:[#allocation208_spill] sm:$0xff] }
 0x506   : > { %3719 = vperm.xlu1 %4597, %v5358_v54   ;;  %4155 = vperm.xlu0 %4599, %v5442_v28  }
 0x508   : > { %v6744_v61 = vpop.permute.xlu1 %3351  ;;  %v6746_v36 = vpop.permute.xlu0 %3779 }
 0x509   : > { %8702 = vst [vmem:[#allocation407_spill] sm:$0xff] %v6744_v61  ;;  %8703 = vst [vmem:[#allocation408_spill] sm:$0xff] %v6746_v36 }
 0x50a   : > { %3727 = vperm.xlu1 %4597, %v8440_v46   ;;  %4163 = vperm.xlu0 %4599, %v8587_v22  }
 0x50c   : > { %v6750_v35 = vpop.permute.xlu1 %3359  ;;  %v6752_v55 = vpop.permute.xlu0 %3787 }
 0x50d   : > { %8704 = vst [vmem:[#allocation409_spill] sm:$0xff] %v6750_v35  ;;  %8705 = vst [vmem:[#allocation410_spill] sm:$0xff] %v6752_v55  ;;  %v8710_v35 = vld [vmem:[#allocation18_spill] sm:$0xff] }
 0x50e   : > { %3735 = vperm.xlu1 %4597, %v8690_v50   ;;  %4171 = vperm.xlu0 %4599, %v8590_v40  }
 0x510   : > { %v6756_v2 = vpop.permute.xlu1 %3367  ;;  %v6758_v54 = vpop.permute.xlu0 %3795 }
 0x511   : > { %8706 = vst [vmem:[#allocation411_spill] sm:$0xff] %v6756_v2  ;;  %8707 = vst [vmem:[#allocation412_spill] sm:$0xff] %v6758_v54 }
 0x512   : > { %3743 = vperm.xlu1 %4597, %v8693_v23   ;;  %4179 = vperm.xlu0 %4599, %v8593_v30  }
 0x514   : > { %v6762_v36 = vpop.permute.xlu1 %3375  ;;  %v6764_v46 = vpop.permute.xlu0 %3803 }
 0x515   : > { %8708 = vst [vmem:[#allocation413_spill] sm:$0xff] %v6762_v36  ;;  %8709 = vst [vmem:[#allocation414_spill] sm:$0xff] %v6764_v46 }
 0x516   : > { %3751 = vperm.xlu1 %4597, %v8696_v8   ;;  %4187 = vperm.xlu0 %4599, %v8710_v35  }
 0x518   : > { %v6768_v55 = vpop.permute.xlu1 %3383  ;;  %v6770_v50 = vpop.permute.xlu0 %3811 }
 0x519   : > { %8711 = vst [vmem:[#allocation18_spill] sm:$0xff] %v6768_v55  ;;  %8712 = vst [vmem:[#allocation415_spill] sm:$0xff] %v6770_v50 }
 0x51a   : > { %3759 = vperm.xlu1 %4597, %v8699_v0   ;;  %4195 = vperm.xlu0 %4599, %v8599_v29  }
 0x51c   : > { %v6774_v54 = vpop.permute.xlu1 %3391  ;;  %v6776_v23 = vpop.permute.xlu0 %3819 }
 0x51d   : > { %8713 = vst [vmem:[#allocation416_spill] sm:$0xff] %v6774_v54  ;;  %8714 = vst [vmem:[#allocation417_spill] sm:$0xff] %v6776_v23 }
 0x51e   : > { %3767 = vperm.xlu1 %4597, %v5442_v28   ;;  %4203 = vperm.xlu0 %4599, %v8464_v25  }
 0x520   : > { %v6780_v46 = vpop.permute.xlu1 %3399  ;;  %v6782_v8 = vpop.permute.xlu0 %3827 }
 0x521   : > { %8715 = vst [vmem:[#allocation418_spill] sm:$0xff] %v6780_v46  ;;  %8716 = vst [vmem:[#allocation419_spill] sm:$0xff] %v6782_v8  ;;  %v8721_v46 = vld [vmem:[#allocation49_spill] sm:$0xff] }
 0x522   : > { %3775 = vperm.xlu1 %4597, %v8587_v22   ;;  %4211 = vperm.xlu0 %4599, %v8467_v43  }
 0x524   : > { %v6786_v50 = vpop.permute.xlu1 %3407  ;;  %v6788_v0 = vpop.permute.xlu0 %3835 }
 0x525   : > { %8717 = vst [vmem:[#allocation420_spill] sm:$0xff] %v6786_v50  ;;  %8718 = vst [vmem:[#allocation421_spill] sm:$0xff] %v6788_v0  ;;  %v291_v0 = vld [vmem:[%s8118_s3] sm:$0xff] }
 0x526   : > { %3783 = vperm.xlu1 %4597, %v8590_v40   ;;  %4219 = vperm.xlu0 %4599, %v8470_v42   ;;  %v8724_v40 = vld [vmem:[#allocation17_spill] sm:$0xff] }
 0x527   : > { %v2696_v2 = vsub.s32 3, %v8724_v40 }
 0x528   : > { %v6792_v23 = vpop.permute.xlu1 %3415  ;;  %v6794_v28 = vpop.permute.xlu0 %3843 }
 0x529   : > { %8719 = vst [vmem:[#allocation422_spill] sm:$0xff] %v6792_v23  ;;  %8720 = vst [vmem:[#allocation423_spill] sm:$0xff] %v6794_v28  ;;  %v8725_v23 = vsub.s32 0, %v8724_v40  ;;  %v6847_v17 = vrot.slane %v291_v0, %v2696_v2 }
 0x52a   : > { %3791 = vperm.xlu1 %4597, %v8593_v30   ;;  %4227 = vperm.xlu0 %4599, %v8721_v46  }
 0x52b   : > { %v6809_v50 = vrot.slane %v291_v0, %v8725_v23  ;;  %v6829_v23 = vld [vmem:[%s8119_s4] ss:$0 sm:$0xff] }
 0x52c   : > { %v6798_v8 = vpop.permute.xlu1 %3423  ;;  %v6800_v22 = vpop.permute.xlu0 %3851 }
 0x52d   : > { %8722 = vst [vmem:[#allocation49_spill] sm:$0xff] %v6798_v8  ;;  %8723 = vst [vmem:[#allocation424_spill] sm:$0xff] %v6800_v22  ;;  %v2308_v8 = vsub.s32 2, %v8724_v40  ;;  %v8727_v22 = vsub.s32 1, %v8724_v40 }
 0x52e   : > { %3799 = vperm.xlu1 %4597, %v8710_v35   ;;  %4235 = vperm.xlu0 %4599, %v8610_v19   ;;  %v8728_v35 = vld [vmem:[#allocation73_spill] sm:$0xff] }
 0x52f   : > { %v6818_v54 = vrot.slane %v291_v0, %v8727_v22  ;;  %v1528_v55 = vmul.f32 %v6809_v50, %v8728_v35  ;;  %v8730_v22 = vld [vmem:[#allocation92_spill] sm:$0xff]  ;;  %v3084_v35 = vsub.s32 4, %v8724_v40 }
 0x530   : > { %v6811_v28 = vpop.permute.xlu1 %3431 }
 0x531   : > { %8726 = vst [vmem:[#allocation17_spill] sm:$0xff] %v6811_v28  ;;  %v6813_v30 = vpop.permute.xlu0 %3991  ;;  %v1922_v61 = vmul.f32 %v6818_v54, %v8730_v22  ;;  %v8733_v22 = vld [vmem:[#allocation78_spill] sm:$0xff]  ;;  %v6853_v32 = vrot.slane %v291_v0, %v3084_v35 }
 0x532   : > { %3807 = vperm.xlu1 %4597, %v8599_v29   ;;  %4243 = vperm.xlu0 %4599, %v5684_v52   ;;  %v6836_v29 = vrot.slane %v291_v0, %v2308_v8  ;;  %v3472_v8 = vsub.s32 5, %v8724_v40 }
 0x534   : > { %v6824_v36 = vpop.permute.xlu1 %3439  ;;  %v2310_v5 = vmul.f32 %v6836_v29, %v8731_v37  ;;  %v6873_v31 = vrot.slane %v291_v0, %v3472_v8  ;;  %v8743_v8 = vld [vmem:[#allocation214_spill] sm:$0xff] }
 0x535   : > { %8729 = vst [vmem:[#allocation73_spill] sm:$0xff] %v6824_v36  ;;  %v6831_v28 = vpop.permute.xlu0 %4003  ;;  %v1598_v36 = vadd.f32 %v6829_v23, %v1528_v55 }
 0x536   : > { %3815 = vperm.xlu1 %4597, %v8464_v25   ;;  %v1531_v25 = vmul.f32 %v6809_v50, %v8733_v22  ;;  %v3860_v22 = vsub.s32 6, %v8724_v40 }
 0x537   : > { %v1986_v21 = vadd.f32 %v1922_v61, %v1598_v36  ;;  %v8736_v61 = vld [vmem:[#allocation207_spill] sm:$0xff]  ;;  %v8737_v36 = vld [vmem:[#allocation333_spill] sm:$0xff] }
 0x538   : > { %v6843_v51 = vpop.permute.xlu1 %3447  ;;  %v2698_v2 = vmul.f32 %v6847_v17, %v8736_v61  ;;  %v6890_v4 = vrot.slane %v291_v0, %v3860_v22 }
 0x539   : > { %8732 = vst [vmem:[#allocation92_spill] sm:$0xff] %v6843_v51  ;;  %v6845_v11 = vpop.permute.xlu0 %4011  ;;  %v2374_v1 = vadd.f32 %v2310_v5, %v1986_v21  ;;  %v8735_v51 = vld [vmem:[#allocation94_spill] sm:$0xff]  ;;  %v4248_v21 = vsub.s32 7, %v8724_v40  ;;  %v8738_v5 = vld [vmem:[#allocation80_spill] sm:$0xff] }
 0x53a   : > { %3823 = vperm.xlu1 %4597, %v8467_v43   ;;  %v1925_v33 = vmul.f32 %v6818_v54, %v8735_v51  ;;  %v3086_v43 = vmul.f32 %v6853_v32, %v8737_v36  ;;  %v1533_v35 = vmul.f32 %v6809_v50, %v8738_v5  ;;  %v2313_v51 = vmul.f32 %v6836_v29, %v8739_v7  ;;  %v8741_v36 = vld [vmem:[#allocation96_spill] sm:$0xff] }
 0x53b   : > { %v2762_v61 = vadd.f32 %v2698_v2, %v2374_v1  ;;  %v2315_v1 = vmul.f32 %v6836_v29, %v8743_v8 }
 0x53c   : > { %v6855_v55 = vpop.permute.xlu1 %3455  ;;  %v1603_v5 = vadd.f32 %v6829_v23, %v1533_v35 }
 0x53d   : > { %8734 = vst [vmem:[#allocation208_spill] sm:$0xff] %v6855_v55  ;;  %v6857_v37 = vpop.permute.xlu0 %4019  ;;  %v1601_v55 = vadd.f32 %v6829_v23, %v1531_v25  ;;  %v3150_v40 = vadd.f32 %v3086_v43, %v2762_v61  ;;  %v8742_v25 = vld [vmem:[#allocation83_spill] sm:$0xff] }
 0x53e   : > { %3831 = vperm.xlu1 %4597, %v8470_v42   ;;  %v1927_v42 = vmul.f32 %v6818_v54, %v8741_v36  ;;  %v1535_v7 = vmul.f32 %v6809_v50, %v8742_v25  ;;  %v8746_v43 = vld [vmem:[#allocation75_spill] sm:$0xff]  ;;  %v8747_v25 = vld [vmem:[#allocation97_spill] sm:$0xff] }
 0x53f   : > { %v1989_v44 = vadd.f32 %v1925_v33, %v1601_v55  ;;  %v6892_v33 = vrot.slane %v291_v0, %v4248_v21  ;;  %v8745_v55 = vld [vmem:[#allocation53_spill] sm:$0xff]  ;;  %v1530_v35 = vmul.f32 %v6809_v50, %v8746_v43  ;;  %v1929_v58 = vmul.f32 %v6818_v54, %v8747_v25 }
 0x540   : > { %v6875_v13 = vpop.permute.xlu1 %3463  ;;  %v1991_v61 = vadd.f32 %v1927_v42, %v1603_v5  ;;  %v3089_v0 = vmul.f32 %v6853_v32, %v6453_v63  ;;  %v1605_v5 = vadd.f32 %v6829_v23, %v1535_v7  ;;  %v2703_v7 = vmul.f32 %v6847_v17, %v8754_v24 }
 0x541   : > { %8740 = vst [vmem:[#allocation78_spill] sm:$0xff] %v6875_v13  ;;  %v6879_v57 = vpop.permute.xlu0 %4027  ;;  %v2377_v2 = vadd.f32 %v2313_v51, %v1989_v44  ;;  %v8744_v13 = vld [vmem:[#allocation328_spill] sm:$0xff]  ;;  %v8748_v44 = vld [vmem:[#allocation209_spill] sm:$0xff]  ;;  %v8749_v51 = vld [vmem:[#allocation54_spill] sm:$0xff] }
 0x542   : > { %3839 = vperm.xlu1 %4597, %v8721_v46   ;;  %v3474_v36 = vmul.f32 %v6873_v31, %v8744_v13  ;;  %v1529_v46 = vmul.f32 %v6809_v50, %v8745_v55  ;;  %v2701_v13 = vmul.f32 %v6847_v17, %v8748_v44  ;;  %v1532_v42 = vmul.f32 %v6809_v50, %v8749_v51  ;;  %v8750_v55 = vld [vmem:[#allocation85_spill] sm:$0xff]  ;;  %v8751_v44 = vld [vmem:[#allocation216_spill] sm:$0xff] }
 0x543   : > { %v1537_v43 = vmul.f32 %v6809_v50, %v8750_v55  ;;  %v2379_v25 = vadd.f32 %v2315_v1, %v1991_v61  ;;  %v2317_v63 = vmul.f32 %v6836_v29, %v8751_v44  ;;  %v1931_v51 = vmul.f32 %v6818_v54, %v8753_v27  ;;  %v8759_v44 = vld [vmem:[#allocation55_spill] sm:$0xff] }
 0x544   : > { %v3538_v22 = vadd.f32 %v3474_v36, %v3150_v40  ;;  %v2765_v10 = vadd.f32 %v2701_v13, %v2377_v2  ;;  %v4250_v40 = vmul.f32 %v6892_v33, %v6813_v30  ;;  %v3091_v1 = vmul.f32 %v6853_v32, %v6460_v60 }
 0x545   : > { %v3604_v8 = vpop.permute.xlu1 %3603  ;;  %v6900_v49 = vpop.permute.xlu0 %4035  ;;  %v6934_v30 = vadd.f32 %v6829_v23, %v1529_v46  ;;  %v1993_v13 = vadd.f32 %v1929_v58, %v1605_v5  ;;  %v6938_v27 = vadd.f32 %v6829_v23, %v1530_v35  ;;  %v6941_v24 = vadd.f32 %v6829_v23, %v1532_v42  ;;  %v8763_v42 = vld [vmem:[#allocation101_spill] sm:$0xff] }
 0x546   : > { %v3862_v21 = vmul.f32 %v6890_v4, %v3604_v8  ;;  %3847 = vperm.xlu1 %4597, %v8610_v19   ;;  %v8752_v8 = vld [vmem:[#allocation88_spill] sm:$0xff]  ;;  %v1607_v60 = vadd.f32 %v6829_v23, %v1537_v43  ;;  %v2767_v55 = vadd.f32 %v2703_v7, %v2379_v25  ;;  %v1933_v5 = vmul.f32 %v6818_v54, %v8763_v42 }
 0x547   : > { %v1539_v19 = vmul.f32 %v6809_v50, %v8752_v8  ;;  %8756 = vst [vmem:[#allocation207_spill] sm:$0xff] %v6934_v30  ;;  %8757 = vst [vmem:[#allocation333_spill] sm:$0xff] %v6938_v27  ;;  %v6946_v8 = vmul.f32 %v6809_v50, %v8759_v44  ;;  %v2381_v46 = vadd.f32 %v2317_v63, %v1993_v13  ;;  %v8764_v63 = vld [vmem:[#allocation213_spill] sm:$0xff]  ;;  %v8772_v27 = vld [vmem:[#allocation215_spill] sm:$0xff] }
 0x548   : > { %v3926_v36 = vadd.f32 %v3862_v21, %v3538_v22  ;;  %v3153_v22 = vadd.f32 %v3089_v0, %v2765_v10  ;;  %8758 = vst [vmem:[#allocation80_spill] sm:$0xff] %v6941_v24  ;;  %v8762_v10 = vld [vmem:[#allocation330_spill] sm:$0xff]  ;;  %v1995_v0 = vadd.f32 %v1931_v51, %v1607_v60  ;;  %v3155_v43 = vadd.f32 %v3091_v1, %v2767_v55  ;;  %v8768_v55 = vld [vmem:[#allocation220_spill] sm:$0xff] }
 0x549   : > { %v6929_v61 = vpop.permute.xlu1 %3611  ;;  %v6931_v2 = vpop.permute.xlu0 %4043  ;;  %8760 = vst [vmem:[#allocation212_spill] sm:$0xff] %v6946_v8  ;;  %v1609_v35 = vadd.f32 %v6829_v23, %v1539_v19  ;;  %v3093_v7 = vmul.f32 %v6853_v32, %v6466_v16  ;;  %v8766_v19 = vld [vmem:[#allocation90_spill] sm:$0xff]  ;;  %v2321_v44 = vmul.f32 %v6836_v29, %v8768_v55 }
 0x54a   : > { %8755 = vst [vmem:[#allocation94_spill] sm:$0xff] %v6929_v61  ;;  %v4314_v21 = vadd.f32 %v4250_v40, %v3926_v36  ;;  %3855 = vperm.xlu1 %4597, %v5684_v52   ;;  %v8761_v61 = vld [vmem:[#allocation218_spill] sm:$0xff]  ;;  %v3477_v52 = vmul.f32 %v6873_v31, %v8762_v10  ;;  %v2705_v36 = vmul.f32 %v6847_v17, %v8764_v63  ;;  %v8769_v10 = vld [vmem:[#allocation332_spill] sm:$0xff]  ;;  %v8770_v63 = vld [vmem:[#allocation23_spill] sm:$0xff] }
 0x54b   : > { %v2319_v58 = vmul.f32 %v6836_v29, %v8761_v61  ;;  %v1541_v51 = vmul.f32 %v6809_v50, %v8766_v19  ;;  %v8767_v60 = vld [vmem:[#allocation22_spill] sm:$0xff]  ;;  %v3479_v42 = vmul.f32 %v6873_v31, %v8769_v10 }
 0x54c   : > { %4378 = vst [vmem:[%s6953_s6] sm:$0xff] %v4314_v21  ;;  %v3541_v61 = vadd.f32 %v3477_v52, %v3153_v22  ;;  %v8765_v21 = vmov 7   ;;  %v1543_v1 = vmul.f32 %v6809_v50, %v8767_v60  ;;  %v2769_v22 = vadd.f32 %v2705_v36, %v2381_v46  ;;  %v8771_v24 = vld [vmem:[#allocation102_spill] sm:$0xff] }
 0x54d   : > { %v3616_v25 = vpop.permute.xlu1 %3615  ;;  %v6959_v40 = vpop.permute.xlu0 %4051  ;;  %v2383_v16 = vadd.f32 %v2319_v58, %v1995_v0  ;;  %v4253_v52 = vmul.f32 %v6892_v33, %v6831_v28  ;;  %v1935_v19 = vmul.f32 %v6818_v54, %v8771_v24  ;;  %v2707_v60 = vmul.f32 %v6847_v17, %v8772_v27 }
 0x54e   : > { %v3865_v13 = vmul.f32 %v6890_v4, %v3616_v25  ;;  %4600 = vset.pattern.permute.xlu1 %v8765_v21  ;;  %v1997_v21 = vadd.f32 %v1933_v5, %v1609_v35  ;;  %v3543_v30 = vadd.f32 %v3479_v42, %v3155_v43  ;;  %v3157_v10 = vadd.f32 %v3093_v7, %v2769_v22  ;;  %v8773_v5 = vld [vmem:[#allocation222_spill] sm:$0xff]  ;;  %v8775_v42 = vld [vmem:[#allocation104_spill] sm:$0xff] }
 0x54f   : > { %3995 = vperm.xlu1 %4600, %v8770_v63   ;;  %v3095_v46 = vmul.f32 %v6853_v32, %v6472_v47  ;;  %v1611_v35 = vadd.f32 %v6829_v23, %v1541_v51  ;;  %v1613_v0 = vadd.f32 %v6829_v23, %v1543_v1  ;;  %v2323_v27 = vmul.f32 %v6836_v29, %v8773_v5  ;;  %v8774_v43 = vld [vmem:[#allocation334_spill] sm:$0xff]  ;;  %v8776_v1 = vld [vmem:[#allocation217_spill] sm:$0xff]  ;;  %v8781_v5 = vld [vmem:[#allocation336_spill] sm:$0xff] }
 0x550   : > { %v3929_v25 = vadd.f32 %v3865_v13, %v3541_v61  ;;  %v2385_v24 = vadd.f32 %v2321_v44, %v1997_v21  ;;  %v3481_v36 = vmul.f32 %v6873_v31, %v8774_v43  ;;  %v2771_v7 = vadd.f32 %v2707_v60, %v2383_v16 }
 0x551   : > { %v3624_v55 = vpop.permute.xlu1 %3623  ;;  %v6982_v8 = vpop.permute.xlu0 %4059  ;;  %v4255_v47 = vmul.f32 %v6892_v33, %v6845_v11  ;;  %v1999_v13 = vadd.f32 %v1935_v19, %v1611_v35  ;;  %v1937_v51 = vmul.f32 %v6818_v54, %v8775_v42  ;;  %v2709_v44 = vmul.f32 %v6847_v17, %v8776_v1  ;;  %v8778_v19 = vld [vmem:[#allocation95_spill] sm:$0xff]  ;;  %v8780_v35 = vld [vmem:[#allocation224_spill] sm:$0xff] }
 0x552   : > { %v4317_v58 = vadd.f32 %v4253_v52, %v3929_v25  ;;  %v3867_v28 = vmul.f32 %v6890_v4, %v3624_v55  ;;  %v3159_v16 = vadd.f32 %v3095_v46, %v2771_v7  ;;  %v3545_v25 = vadd.f32 %v3481_v36, %v3157_v10  ;;  %v8782_v7 = vld [vmem:[#allocation106_spill] sm:$0xff] }
 0x553   : > { %3999 = vperm.xlu1 %4600, %v5168_v48   ;;  %v3097_v48 = vmul.f32 %v6853_v32, %v6478_v45  ;;  %v1547_v60 = vmul.f32 %v6809_v50, %v8778_v19  ;;  %v2387_v55 = vadd.f32 %v2323_v27, %v1999_v13  ;;  %v2325_v45 = vmul.f32 %v6836_v29, %v8780_v35  ;;  %v8787_v35 = vld [vmem:[#allocation107_spill] sm:$0xff] }
 0x554   : > { %4381 = vst [vmem:[%s6953_s6 + $0x18] sm:$0xff] %v4317_v58  ;;  %v3931_v61 = vadd.f32 %v3867_v28, %v3543_v30  ;;  %v8777_v30 = vld [vmem:[#allocation93_spill] sm:$0xff]  ;;  %v2773_v58 = vadd.f32 %v2709_v44, %v2385_v24  ;;  %v8779_v28 = vld [vmem:[#allocation24_spill] sm:$0xff]  ;;  %v3483_v46 = vmul.f32 %v6873_v31, %v8781_v5  ;;  %v4257_v10 = vmul.f32 %v6892_v33, %v6857_v37 }
 0x555   : > { %v3632_v63 = vpop.permute.xlu1 %3631  ;;  %v7003_v22 = vpop.permute.xlu0 %4067  ;;  %v1545_v21 = vmul.f32 %v6809_v50, %v8777_v30  ;;  %v2001_v36 = vadd.f32 %v1937_v51, %v1613_v0  ;;  %v3099_v1 = vmul.f32 %v6853_v32, %v6484_v38  ;;  %v1617_v51 = vadd.f32 %v6829_v23, %v1547_v60  ;;  %v8786_v30 = vld [vmem:[#allocation25_spill] sm:$0xff] }
 0x556   : > { %v4319_v52 = vadd.f32 %v4255_v47, %v3931_v61  ;;  %v3869_v11 = vmul.f32 %v6890_v4, %v3632_v63  ;;  %v1939_v47 = vmul.f32 %v6818_v54, %v8782_v7  ;;  %v8783_v61 = vld [vmem:[#allocation219_spill] sm:$0xff]  ;;  %v3161_v27 = vadd.f32 %v3097_v48, %v2773_v58  ;;  %v8788_v60 = vld [vmem:[#allocation221_spill] sm:$0xff] }
 0x557   : > { %4007 = vperm.xlu1 %4600, %v8779_v28   ;;  %v2711_v24 = vmul.f32 %v6847_v17, %v8783_v61  ;;  %v3547_v63 = vadd.f32 %v3483_v46, %v3159_v16  ;;  %v1615_v0 = vadd.f32 %v6829_v23, %v1545_v21  ;;  %v2389_v19 = vadd.f32 %v2325_v45, %v2001_v36  ;;  %v8789_v36 = vld [vmem:[#allocation98_spill] sm:$0xff]  ;;  %v8790_v61 = vld [vmem:[#allocation100_spill] sm:$0xff] }
 0x558   : > { %4383 = vst [vmem:[%s6953_s6 + $0x28] sm:$0xff] %v4319_v52  ;;  %v3933_v43 = vadd.f32 %v3869_v11, %v3545_v25  ;;  %v8784_v52 = vld [vmem:[#allocation226_spill] sm:$0xff]  ;;  %v8785_v11 = vld [vmem:[#allocation337_spill] sm:$0xff]  ;;  %v4259_v38 = vmul.f32 %v6892_v33, %v6879_v57  ;;  %v1941_v21 = vmul.f32 %v6818_v54, %v8787_v35  ;;  %v2713_v5 = vmul.f32 %v6847_v17, %v8788_v60 }
 0x559   : > { %v3640_v13 = vpop.permute.xlu1 %3639  ;;  %v7022_v42 = vpop.permute.xlu0 %4075  ;;  %v2327_v25 = vmul.f32 %v6836_v29, %v8784_v52  ;;  %v3485_v48 = vmul.f32 %v6873_v31, %v8785_v11  ;;  %v2775_v58 = vadd.f32 %v2711_v24, %v2387_v55  ;;  %v2003_v28 = vadd.f32 %v1939_v47, %v1615_v0 }
 0x55a   : > { %v4321_v44 = vadd.f32 %v4257_v10, %v3933_v43  ;;  %v3871_v37 = vmul.f32 %v6890_v4, %v3640_v13  ;;  %v3101_v55 = vmul.f32 %v6853_v32, %v6490_v34  ;;  %v1549_v47 = vmul.f32 %v6809_v50, %v8789_v36 }
 0x55b   : > { %4015 = vperm.xlu1 %4600, %v8786_v30   ;;  %v3549_v10 = vadd.f32 %v3485_v48, %v3161_v27  ;;  %v3163_v7 = vadd.f32 %v3099_v1, %v2775_v58  ;;  %v1551_v24 = vmul.f32 %v6809_v50, %v8790_v61  ;;  %v2391_v13 = vadd.f32 %v2327_v25, %v2003_v28  ;;  %v8792_v27 = vld [vmem:[#allocation26_spill] sm:$0xff]  ;;  %v8794_v48 = vld [vmem:[#allocation109_spill] sm:$0xff]  ;;  %v8795_v58 = vld [vmem:[#allocation223_spill] sm:$0xff] }
 0x55c   : > { %4385 = vst [vmem:[%s6953_s6 + $0x38] sm:$0xff] %v4321_v44  ;;  %v3935_v16 = vadd.f32 %v3871_v37, %v3547_v63  ;;  %v8791_v44 = vld [vmem:[#allocation228_spill] sm:$0xff]  ;;  %v8793_v37 = vld [vmem:[#allocation338_spill] sm:$0xff]  ;;  %v2777_v0 = vadd.f32 %v2713_v5, %v2389_v19  ;;  %v4261_v34 = vmul.f32 %v6892_v33, %v6900_v49  ;;  %v2005_v11 = vadd.f32 %v1941_v21, %v1617_v51 }
 0x55d   : > { %v3648_v46 = vpop.permute.xlu1 %3647  ;;  %v7041_v43 = vpop.permute.xlu0 %4083  ;;  %v2329_v63 = vmul.f32 %v6836_v29, %v8791_v44  ;;  %v3487_v1 = vmul.f32 %v6873_v31, %v8793_v37  ;;  %v1943_v30 = vmul.f32 %v6818_v54, %v8794_v48  ;;  %v2715_v25 = vmul.f32 %v6847_v17, %v8795_v58  ;;  %v8799_v44 = vld [vmem:[#allocation111_spill] sm:$0xff]  ;;  %v8802_v48 = vld [vmem:[#allocation105_spill] sm:$0xff]  ;;  %v8803_v58 = vld [vmem:[#allocation232_spill] sm:$0xff] }
 0x55e   : > { %v4323_v45 = vadd.f32 %v4259_v38, %v3935_v16  ;;  %v3873_v57 = vmul.f32 %v6890_v4, %v3648_v46  ;;  %v3103_v38 = vmul.f32 %v6853_v32, %v6496_v14  ;;  %v3165_v19 = vadd.f32 %v3101_v55, %v2777_v0  ;;  %v8798_v14 = vld [vmem:[#allocation339_spill] sm:$0xff] }
 0x55f   : > { %4023 = vperm.xlu1 %4600, %v8792_v27   ;;  %v3551_v60 = vadd.f32 %v3487_v1, %v3163_v7  ;;  %v1619_v51 = vadd.f32 %v6829_v23, %v1549_v47  ;;  %v1621_v21 = vadd.f32 %v6829_v23, %v1551_v24  ;;  %v2393_v5 = vadd.f32 %v2329_v63, %v2005_v11  ;;  %v8800_v24 = vld [vmem:[#allocation225_spill] sm:$0xff] }
 0x560   : > { %4387 = vst [vmem:[%s6953_s6 + $0x48] sm:$0xff] %v4323_v45  ;;  %v3937_v52 = vadd.f32 %v3873_v57, %v3549_v10  ;;  %v2779_v46 = vadd.f32 %v2715_v25, %v2391_v13  ;;  %v8796_v10 = vld [vmem:[#allocation27_spill] sm:$0xff]  ;;  %v8797_v45 = vld [vmem:[#allocation230_spill] sm:$0xff]  ;;  %v3489_v36 = vmul.f32 %v6873_v31, %v8798_v14  ;;  %v4263_v55 = vmul.f32 %v6892_v33, %v6931_v2 }
 0x561   : > { %v3656_v16 = vpop.permute.xlu1 %3655  ;;  %v7064_v28 = vpop.permute.xlu0 %4091  ;;  %v2331_v57 = vmul.f32 %v6836_v29, %v8797_v45  ;;  %v2007_v61 = vadd.f32 %v1943_v30, %v1619_v51  ;;  %v1945_v47 = vmul.f32 %v6818_v54, %v8799_v44  ;;  %v2717_v13 = vmul.f32 %v6847_v17, %v8800_v24  ;;  %v8807_v45 = vld [vmem:[#allocation227_spill] sm:$0xff]  ;;  %v8808_v24 = vld [vmem:[#allocation234_spill] sm:$0xff] }
 0x562   : > { %v4325_v35 = vadd.f32 %v4261_v34, %v3937_v52  ;;  %v3875_v49 = vmul.f32 %v6890_v4, %v3656_v16  ;;  %v3167_v63 = vadd.f32 %v3103_v38, %v2779_v46  ;;  %v3105_v1 = vmul.f32 %v6853_v32, %v6502_v41  ;;  %v8801_v52 = vld [vmem:[#allocation103_spill] sm:$0xff]  ;;  %v8804_v38 = vld [vmem:[#allocation340_spill] sm:$0xff] }
 0x563   : > { %4031 = vperm.xlu1 %4600, %v8796_v10   ;;  %v3553_v34 = vadd.f32 %v3489_v36, %v3165_v19  ;;  %v1553_v11 = vmul.f32 %v6809_v50, %v8801_v52  ;;  %v1555_v30 = vmul.f32 %v6809_v50, %v8802_v48  ;;  %v2333_v25 = vmul.f32 %v6836_v29, %v8803_v58  ;;  %v8806_v46 = vld [vmem:[#allocation112_spill] sm:$0xff]  ;;  %v8811_v52 = vld [vmem:[#allocation114_spill] sm:$0xff]  ;;  %v8812_v48 = vld [vmem:[#allocation229_spill] sm:$0xff] }
 0x564   : > { %4389 = vst [vmem:[%s6953_s6 + $0x58] sm:$0xff] %v4325_v35  ;;  %v3939_v7 = vadd.f32 %v3875_v49, %v3551_v60  ;;  %v3491_v16 = vmul.f32 %v6873_v31, %v8804_v38  ;;  %v8805_v35 = vld [vmem:[#allocation28_spill] sm:$0xff]  ;;  %v2395_v60 = vadd.f32 %v2331_v57, %v2007_v61  ;;  %v2781_v41 = vadd.f32 %v2717_v13, %v2393_v5 }
 0x565   : > { %v3664_v27 = vpop.permute.xlu1 %3663  ;;  %v7081_v37 = vpop.permute.xlu0 %4099  ;;  %v4265_v19 = vmul.f32 %v6892_v33, %v6959_v40  ;;  %v2009_v51 = vadd.f32 %v1945_v47, %v1621_v21  ;;  %v1947_v10 = vmul.f32 %v6818_v54, %v8806_v46  ;;  %v2719_v14 = vmul.f32 %v6847_v17, %v8807_v45  ;;  %v8815_v45 = vld [vmem:[#allocation30_spill] sm:$0xff] }
 0x566   : > { %v4327_v0 = vadd.f32 %v4263_v55, %v3939_v7  ;;  %v3877_v2 = vmul.f32 %v6890_v4, %v3664_v27  ;;  %v3555_v55 = vadd.f32 %v3491_v16, %v3167_v63  ;;  %v3169_v44 = vadd.f32 %v3105_v1, %v2781_v41  ;;  %v8809_v27 = vld [vmem:[#allocation29_spill] sm:$0xff]  ;;  %v8813_v41 = vld [vmem:[#allocation108_spill] sm:$0xff] }
 0x567   : > { %4039 = vperm.xlu1 %4600, %v8805_v35   ;;  %v3107_v5 = vmul.f32 %v6853_v32, %v6508_v20  ;;  %v1623_v21 = vadd.f32 %v6829_v23, %v1553_v11  ;;  %v1625_v61 = vadd.f32 %v6829_v23, %v1555_v30  ;;  %v2397_v47 = vadd.f32 %v2333_v25, %v2009_v51  ;;  %v8810_v63 = vld [vmem:[#allocation341_spill] sm:$0xff] }
 0x568   : > { %4391 = vst [vmem:[%s6953_s6 + $0x68] sm:$0xff] %v4327_v0  ;;  %v3941_v49 = vadd.f32 %v3877_v2, %v3553_v34  ;;  %v2335_v13 = vmul.f32 %v6836_v29, %v8808_v24  ;;  %v3493_v0 = vmul.f32 %v6873_v31, %v8810_v63  ;;  %v2783_v1 = vadd.f32 %v2719_v14, %v2395_v60  ;;  %v8816_v14 = vld [vmem:[#allocation236_spill] sm:$0xff]  ;;  %v8819_v24 = vld [vmem:[#allocation231_spill] sm:$0xff] }
 0x569   : > { %v3672_v36 = vpop.permute.xlu1 %3671  ;;  %v7102_v7 = vpop.permute.xlu0 %4107  ;;  %v4267_v20 = vmul.f32 %v6892_v33, %v6982_v8  ;;  %v2011_v2 = vadd.f32 %v1947_v10, %v1623_v21  ;;  %v1949_v11 = vmul.f32 %v6818_v54, %v8811_v52  ;;  %v2721_v30 = vmul.f32 %v6847_v17, %v8812_v48 }
 0x56a   : > { %v4329_v57 = vadd.f32 %v4265_v19, %v3941_v49  ;;  %v3879_v40 = vmul.f32 %v6890_v4, %v3672_v36  ;;  %v3109_v58 = vmul.f32 %v6853_v32, %v6514_v26  ;;  %v3171_v16 = vadd.f32 %v3107_v5, %v2783_v1  ;;  %v8814_v49 = vld [vmem:[#allocation110_spill] sm:$0xff] }
 0x56b   : > { %4047 = vperm.xlu1 %4600, %v8809_v27   ;;  %v3557_v60 = vadd.f32 %v3493_v0, %v3169_v44  ;;  %v1557_v19 = vmul.f32 %v6809_v50, %v8813_v41  ;;  %v1559_v51 = vmul.f32 %v6809_v50, %v8814_v49  ;;  %v2399_v46 = vadd.f32 %v2335_v13, %v2011_v2  ;;  %v8817_v36 = vld [vmem:[#allocation342_spill] sm:$0xff]  ;;  %v8824_v41 = vld [vmem:[#allocation233_spill] sm:$0xff] }
 0x56c   : > { %4393 = vst [vmem:[%s6953_s6 + $0x78] sm:$0xff] %v4329_v57  ;;  %v3943_v34 = vadd.f32 %v3879_v40, %v3555_v55  ;;  %v2785_v10 = vadd.f32 %v2721_v30, %v2397_v47  ;;  %v2337_v26 = vmul.f32 %v6836_v29, %v8816_v14  ;;  %v3495_v55 = vmul.f32 %v6873_v31, %v8817_v36  ;;  %v8818_v40 = vld [vmem:[#allocation116_spill] sm:$0xff]  ;;  %v8820_v2 = vld [vmem:[#allocation238_spill] sm:$0xff]  ;;  %v8822_v30 = vld [vmem:[#allocation31_spill] sm:$0xff] }
 0x56d   : > { %v3680_v25 = vpop.permute.xlu1 %3679  ;;  %v7123_v38 = vpop.permute.xlu0 %4115  ;;  %v4269_v44 = vmul.f32 %v6892_v33, %v7003_v22  ;;  %v2013_v57 = vadd.f32 %v1949_v11, %v1625_v61  ;;  %v1951_v21 = vmul.f32 %v6818_v54, %v8818_v40  ;;  %v2723_v47 = vmul.f32 %v6847_v17, %v8819_v24  ;;  %v8821_v11 = vld [vmem:[#allocation343_spill] sm:$0xff]  ;;  %v8829_v24 = vld [vmem:[#allocation344_spill] sm:$0xff] }
 0x56e   : > { %v4331_v35 = vadd.f32 %v4267_v20, %v3943_v34  ;;  %v3881_v8 = vmul.f32 %v6890_v4, %v3680_v25  ;;  %v3173_v13 = vadd.f32 %v3109_v58, %v2785_v10  ;;  %v3111_v0 = vmul.f32 %v6853_v32, %v6520_v39 }
 0x56f   : > { %4055 = vperm.xlu1 %4600, %v8815_v45   ;;  %v3559_v20 = vadd.f32 %v3495_v55, %v3171_v16  ;;  %v1627_v61 = vadd.f32 %v6829_v23, %v1557_v19  ;;  %v1629_v34 = vadd.f32 %v6829_v23, %v1559_v51  ;;  %v2339_v52 = vmul.f32 %v6836_v29, %v8820_v2  ;;  %v8826_v55 = vld [vmem:[#allocation115_spill] sm:$0xff] }
 0x570   : > { %4395 = vst [vmem:[%s6953_s6 + $0x88] sm:$0xff] %v4331_v35  ;;  %v3945_v5 = vadd.f32 %v3881_v8, %v3557_v60  ;;  %v3497_v48 = vmul.f32 %v6873_v31, %v8821_v11  ;;  %v2401_v58 = vadd.f32 %v2337_v26, %v2013_v57  ;;  %v2787_v25 = vadd.f32 %v2723_v47, %v2399_v46  ;;  %v8823_v60 = vld [vmem:[#allocation117_spill] sm:$0xff]  ;;  %v8827_v57 = vld [vmem:[#allocation240_spill] sm:$0xff] }
 0x571   : > { %v3688_v27 = vpop.permute.xlu1 %3687  ;;  %v7142_v63 = vpop.permute.xlu0 %4123  ;;  %v4271_v39 = vmul.f32 %v6892_v33, %v7022_v42  ;;  %v2015_v35 = vadd.f32 %v1951_v21, %v1627_v61  ;;  %v1953_v8 = vmul.f32 %v6818_v54, %v8823_v60  ;;  %v2725_v19 = vmul.f32 %v6847_v17, %v8824_v41  ;;  %v8825_v26 = vld [vmem:[#allocation113_spill] sm:$0xff]  ;;  %v8828_v21 = vld [vmem:[#allocation32_spill] sm:$0xff]  ;;  %v8833_v60 = vld [vmem:[#allocation242_spill] sm:$0xff] }
 0x572   : > { %v4333_v1 = vadd.f32 %v4269_v44, %v3945_v5  ;;  %v3883_v22 = vmul.f32 %v6890_v4, %v3688_v27  ;;  %v3561_v51 = vadd.f32 %v3497_v48, %v3173_v13  ;;  %v3175_v45 = vadd.f32 %v3111_v0, %v2787_v25 }
 0x573   : > { %4063 = vperm.xlu1 %4600, %v8822_v30   ;;  %v3113_v46 = vmul.f32 %v6853_v32, %v6526_v53  ;;  %v1561_v36 = vmul.f32 %v6809_v50, %v8825_v26  ;;  %v1563_v44 = vmul.f32 %v6809_v50, %v8826_v55  ;;  %v2403_v5 = vadd.f32 %v2339_v52, %v2015_v35  ;;  %v8832_v35 = vld [vmem:[#allocation33_spill] sm:$0xff] }
 0x574   : > { %4397 = vst [vmem:[%s6953_s6 + $0x98] sm:$0xff] %v4333_v1  ;;  %v3947_v16 = vadd.f32 %v3883_v22, %v3559_v20  ;;  %v2341_v40 = vmul.f32 %v6836_v29, %v8827_v57  ;;  %v3499_v47 = vmul.f32 %v6873_v31, %v8829_v24  ;;  %v2789_v13 = vadd.f32 %v2725_v19, %v2401_v58  ;;  %v8830_v1 = vld [vmem:[#allocation119_spill] sm:$0xff]  ;;  %v8838_v24 = vld [vmem:[#allocation120_spill] sm:$0xff] }
 0x575   : > { %v3696_v49 = vpop.permute.xlu1 %3695  ;;  %v7161_v10 = vpop.permute.xlu0 %4131  ;;  %v4273_v53 = vmul.f32 %v6892_v33, %v7041_v43  ;;  %v2017_v0 = vadd.f32 %v1953_v8, %v1629_v34  ;;  %v1955_v20 = vmul.f32 %v6818_v54, %v8830_v1  ;;  %v8831_v22 = vld [vmem:[#allocation235_spill] sm:$0xff]  ;;  %v3115_v2 = vmul.f32 %v6853_v32, %v6532_v56  ;;  %v8834_v56 = vld [vmem:[#allocation345_spill] sm:$0xff]  ;;  %v8841_v1 = vld [vmem:[#allocation34_spill] sm:$0xff] }
 0x576   : > { %v4335_v14 = vadd.f32 %v4271_v39, %v3947_v16  ;;  %v3885_v42 = vmul.f32 %v6890_v4, %v3696_v49  ;;  %v2727_v61 = vmul.f32 %v6847_v17, %v8831_v22  ;;  %v3177_v48 = vadd.f32 %v3113_v46, %v2789_v13  ;;  %v8839_v13 = vld [vmem:[#allocation244_spill] sm:$0xff] }
 0x577   : > { %4071 = vperm.xlu1 %4600, %v8828_v21   ;;  %v3563_v58 = vadd.f32 %v3499_v47, %v3175_v45  ;;  %v1631_v34 = vadd.f32 %v6829_v23, %v1561_v36  ;;  %v1633_v25 = vadd.f32 %v6829_v23, %v1563_v44  ;;  %v2405_v39 = vadd.f32 %v2341_v40, %v2017_v0  ;;  %v8835_v45 = vld [vmem:[#allocation121_spill] sm:$0xff]  ;;  %v8837_v40 = vld [vmem:[#allocation118_spill] sm:$0xff] }
 0x578   : > { %4399 = vst [vmem:[%s6953_s6 + $0xa8] sm:$0xff] %v4335_v14  ;;  %v3949_v27 = vadd.f32 %v3885_v42, %v3561_v51  ;;  %v2791_v16 = vadd.f32 %v2727_v61, %v2403_v5  ;;  %v2343_v8 = vmul.f32 %v6836_v29, %v8833_v60  ;;  %v3501_v41 = vmul.f32 %v6873_v31, %v8834_v56  ;;  %v8836_v14 = vld [vmem:[#allocation237_spill] sm:$0xff]  ;;  %v8844_v56 = vld [vmem:[#allocation246_spill] sm:$0xff] }
 0x579   : > { %v3704_v52 = vpop.permute.xlu1 %3703  ;;  %v7184_v11 = vpop.permute.xlu0 %4139  ;;  %v4275_v19 = vmul.f32 %v6892_v33, %v7064_v28  ;;  %v2019_v51 = vadd.f32 %v1955_v20, %v1631_v34  ;;  %v1957_v46 = vmul.f32 %v6818_v54, %v8835_v45  ;;  %v2729_v42 = vmul.f32 %v6847_v17, %v8836_v14 }
 0x57a   : > { %v4337_v30 = vadd.f32 %v4273_v53, %v3949_v27  ;;  %v3887_v43 = vmul.f32 %v6890_v4, %v3704_v52  ;;  %v3179_v26 = vadd.f32 %v3115_v2, %v2791_v16  ;;  %v3117_v44 = vmul.f32 %v6853_v32, %v6538_v59  ;;  %v8840_v27 = vld [vmem:[#allocation346_spill] sm:$0xff] }
 0x57b   : > { %4079 = vperm.xlu1 %4600, %v8832_v35   ;;  %v3565_v57 = vadd.f32 %v3501_v41, %v3177_v48  ;;  %v1565_v21 = vmul.f32 %v6809_v50, %v8837_v40  ;;  %v1567_v47 = vmul.f32 %v6809_v50, %v8838_v24  ;;  %v2345_v53 = vmul.f32 %v6836_v29, %v8839_v13  ;;  %v8842_v52 = vld [vmem:[#allocation122_spill] sm:$0xff] }
 0x57c   : > { %4401 = vst [vmem:[%s6953_s6 + $0xb8] sm:$0xff] %v4337_v30  ;;  %v3951_v49 = vadd.f32 %v3887_v43, %v3563_v58  ;;  %v3503_v0 = vmul.f32 %v6873_v31, %v8840_v27  ;;  %v2407_v20 = vadd.f32 %v2343_v8, %v2019_v51  ;;  %v2793_v59 = vadd.f32 %v2729_v42, %v2405_v39  ;;  %v8843_v30 = vld [vmem:[#allocation239_spill] sm:$0xff] }
 0x57d   : > { %v3712_v36 = vpop.permute.xlu1 %3711  ;;  %v7201_v55 = vpop.permute.xlu0 %4147  ;;  %v4277_v22 = vmul.f32 %v6892_v33, %v7081_v37  ;;  %v2021_v2 = vadd.f32 %v1957_v46, %v1633_v25  ;;  %v1959_v48 = vmul.f32 %v6818_v54, %v8842_v52  ;;  %v2731_v58 = vmul.f32 %v6847_v17, %v8843_v30  ;;  %v8846_v51 = vld [vmem:[#allocation347_spill] sm:$0xff]  ;;  %v8854_v30 = vld [vmem:[#allocation126_spill] sm:$0xff] }
 0x57e   : > { %v4339_v5 = vadd.f32 %v4275_v19, %v3951_v49  ;;  %v3889_v28 = vmul.f32 %v6890_v4, %v3712_v36  ;;  %v3567_v34 = vadd.f32 %v3503_v0, %v3179_v26  ;;  %v3181_v16 = vadd.f32 %v3117_v44, %v2793_v59  ;;  %v8845_v49 = vld [vmem:[#allocation35_spill] sm:$0xff]  ;;  %v8847_v26 = vld [vmem:[#allocation124_spill] sm:$0xff]  ;;  %v8848_v44 = vld [vmem:[#allocation241_spill] sm:$0xff] }
 0x57f   : > { %4087 = vperm.xlu1 %4600, %v8841_v1   ;;  %v3119_v35 = vmul.f32 %v6853_v32, %v6544_v62  ;;  %v1635_v37 = vadd.f32 %v6829_v23, %v1565_v21  ;;  %v1637_v25 = vadd.f32 %v6829_v23, %v1567_v47  ;;  %v2409_v8 = vadd.f32 %v2345_v53, %v2021_v2  ;;  %v8850_v53 = vld [vmem:[#allocation125_spill] sm:$0xff]  ;;  %v8852_v59 = vld [vmem:[#allocation248_spill] sm:$0xff] }
 0x580   : > { %4403 = vst [vmem:[%s6953_s6 + $0xc8] sm:$0xff] %v4339_v5  ;;  %v3953_v61 = vadd.f32 %v3889_v28, %v3565_v57  ;;  %v2347_v41 = vmul.f32 %v6836_v29, %v8844_v56  ;;  %v3505_v45 = vmul.f32 %v6873_v31, %v8846_v51  ;;  %v2795_v46 = vadd.f32 %v2731_v58, %v2407_v20  ;;  %v8851_v20 = vld [vmem:[#allocation36_spill] sm:$0xff]  ;;  %v8857_v51 = vld [vmem:[#allocation349_spill] sm:$0xff] }
 0x581   : > { %v3720_v43 = vpop.permute.xlu1 %3719  ;;  %v7229_v19 = vpop.permute.xlu0 %4155  ;;  %v4279_v62 = vmul.f32 %v6892_v33, %v7102_v7  ;;  %v2023_v42 = vadd.f32 %v1959_v48, %v1635_v37  ;;  %v1961_v36 = vmul.f32 %v6818_v54, %v8847_v26  ;;  %v2733_v5 = vmul.f32 %v6847_v17, %v8848_v44  ;;  %v8849_v7 = vld [vmem:[#allocation123_spill] sm:$0xff] }
 0x582   : > { %v4341_v39 = vadd.f32 %v4277_v22, %v3953_v61  ;;  %v3891_v60 = vmul.f32 %v6890_v4, %v3720_v43  ;;  %v3121_v57 = vmul.f32 %v6853_v32, %v6550_v3  ;;  %v3183_v40 = vadd.f32 %v3119_v35, %v2795_v46  ;;  %v8853_v3 = vld [vmem:[#allocation348_spill] sm:$0xff]  ;;  %v8855_v43 = vld [vmem:[#allocation243_spill] sm:$0xff]  ;;  %v8858_v46 = vld [vmem:[#allocation37_spill] sm:$0xff] }
 0x583   : > { %4095 = vperm.xlu1 %4600, %v8845_v49   ;;  %v3569_v24 = vadd.f32 %v3505_v45, %v3181_v16  ;;  %v1569_v13 = vmul.f32 %v6809_v50, %v8849_v7  ;;  %v1571_v27 = vmul.f32 %v6809_v50, %v8850_v53  ;;  %v2411_v0 = vadd.f32 %v2347_v41, %v2023_v42  ;;  %v8856_v41 = vld [vmem:[#allocation250_spill] sm:$0xff] }
 0x584   : > { %4405 = vst [vmem:[%s6953_s6 + $0xd8] sm:$0xff] %v4341_v39  ;;  %v3955_v14 = vadd.f32 %v3891_v60, %v3567_v34  ;;  %v2797_v1 = vadd.f32 %v2733_v5, %v2409_v8  ;;  %v2349_v22 = vmul.f32 %v6836_v29, %v8852_v59  ;;  %v3507_v61 = vmul.f32 %v6873_v31, %v8853_v3  ;;  %v8860_v5 = vld [vmem:[#allocation245_spill] sm:$0xff]  ;;  %v8862_v53 = vld [vmem:[#allocation130_spill] sm:$0xff] }
 0x585   : > { %v3728_v28 = vpop.permute.xlu1 %3727  ;;  %v4281_v2 = vmul.f32 %v6892_v33, %v7123_v38  ;;  %v2025_v48 = vadd.f32 %v1961_v36, %v1637_v25  ;;  %v1963_v58 = vmul.f32 %v6818_v54, %v8854_v30  ;;  %v2735_v34 = vmul.f32 %v6847_v17, %v8855_v43  ;;  %v7260_v35 = vpop.permute.xlu0 %4163  ;;  %v8859_v36 = vld [vmem:[#allocation127_spill] sm:$0xff]  ;;  %v8865_v3 = vld [vmem:[#allocation350_spill] sm:$0xff]  ;;  %v8866_v30 = vld [vmem:[#allocation129_spill] sm:$0xff] }
 0x586   : > { %v4343_v21 = vadd.f32 %v4279_v62, %v3955_v14  ;;  %v3893_v47 = vmul.f32 %v6890_v4, %v3728_v28  ;;  %v3185_v16 = vadd.f32 %v3121_v57, %v2797_v1  ;;  %v3123_v60 = vmul.f32 %v6853_v32, %v6556_v6  ;;  %v8863_v1 = vld [vmem:[#allocation252_spill] sm:$0xff]  ;;  %v8867_v43 = vld [vmem:[#allocation247_spill] sm:$0xff] }
 0x587   : > { %4103 = vperm.xlu1 %4600, %v8851_v20   ;;  %v3571_v8 = vadd.f32 %v3507_v61, %v3183_v40  ;;  %v1639_v25 = vadd.f32 %v6829_v23, %v1569_v13  ;;  %v1641_v56 = vadd.f32 %v6829_v23, %v1571_v27  ;;  %v2351_v49 = vmul.f32 %v6836_v29, %v8856_v41 }
 0x588   : > { %4407 = vst [vmem:[%s6953_s6 + $0xe8] sm:$0xff] %v4343_v21  ;;  %v3957_v52 = vadd.f32 %v3893_v47, %v3569_v24  ;;  %v3509_v45 = vmul.f32 %v6873_v31, %v8857_v51  ;;  %v2413_v62 = vadd.f32 %v2349_v22, %v2025_v48  ;;  %v2799_v14 = vadd.f32 %v2735_v34, %v2411_v0  ;;  %v8864_v22 = vld [vmem:[#allocation39_spill] sm:$0xff]  ;;  %v8869_v51 = vld [vmem:[#allocation254_spill] sm:$0xff] }
 0x589   : > { %v3736_v39 = vpop.permute.xlu1 %3735  ;;  %v4283_v6 = vmul.f32 %v6892_v33, %v7142_v63  ;;  %v2027_v26 = vadd.f32 %v1963_v58, %v1639_v25  ;;  %v1965_v44 = vmul.f32 %v6818_v54, %v8859_v36  ;;  %v2737_v57 = vmul.f32 %v6847_v17, %v8860_v5  ;;  %v8861_v63 = vld [vmem:[#allocation128_spill] sm:$0xff]  ;;  %v7288_v59 = vpop.permute.xlu0 %4171  ;;  %v8872_v36 = vld [vmem:[#allocation249_spill] sm:$0xff] }
 0x58a   : > { %v4345_v37 = vadd.f32 %v4281_v2, %v3957_v52  ;;  %v3895_v38 = vmul.f32 %v6890_v4, %v3736_v39  ;;  %v3573_v40 = vadd.f32 %v3509_v45, %v3185_v16  ;;  %v3187_v21 = vadd.f32 %v3123_v60, %v2799_v14 }
 0x58b   : > { %4111 = vperm.xlu1 %4600, %v8858_v46   ;;  %v3125_v24 = vmul.f32 %v6853_v32, %v6562_v9  ;;  %v1573_v13 = vmul.f32 %v6809_v50, %v8861_v63  ;;  %v1575_v27 = vmul.f32 %v6809_v50, %v8862_v53  ;;  %v2415_v0 = vadd.f32 %v2351_v49, %v2027_v26  ;;  %v8868_v49 = vld [vmem:[#allocation41_spill] sm:$0xff]  ;;  %v8870_v46 = vld [vmem:[#allocation351_spill] sm:$0xff]  ;;  %v8874_v63 = vld [vmem:[#allocation134_spill] sm:$0xff] }
 0x58c   : > { %4409 = vst [vmem:[%s6953_s6 + $0xf8] sm:$0xff] %v4345_v37  ;;  %v3959_v42 = vadd.f32 %v3895_v38, %v3571_v8  ;;  %v2353_v20 = vmul.f32 %v6836_v29, %v8863_v1  ;;  %v3511_v9 = vmul.f32 %v6873_v31, %v8865_v3  ;;  %v2801_v61 = vadd.f32 %v2737_v57, %v2413_v62  ;;  %v8875_v53 = vld [vmem:[#allocation256_spill] sm:$0xff] }
 0x58d   : > { %v3744_v28 = vpop.permute.xlu1 %3743  ;;  %v4285_v2 = vmul.f32 %v6892_v33, %v7161_v10  ;;  %v2029_v48 = vadd.f32 %v1965_v44, %v1641_v56  ;;  %v1967_v58 = vmul.f32 %v6818_v54, %v8866_v30  ;;  %v2739_v34 = vmul.f32 %v6847_v17, %v8867_v43  ;;  %v7317_v57 = vpop.permute.xlu0 %4179 }
 0x58e   : > { %v4347_v47 = vadd.f32 %v4283_v6, %v3959_v42  ;;  %v3897_v7 = vmul.f32 %v6890_v4, %v3744_v28  ;;  %v3127_v16 = vmul.f32 %v6853_v32, %v6568_v12  ;;  %v3189_v60 = vadd.f32 %v3125_v24, %v2801_v61  ;;  %v8871_v42 = vld [vmem:[#allocation131_spill] sm:$0xff] }
 0x58f   : > { %4119 = vperm.xlu1 %4600, %v8864_v22   ;;  %v3575_v8 = vadd.f32 %v3511_v9, %v3187_v21  ;;  %v1643_v10 = vadd.f32 %v6829_v23, %v1573_v13  ;;  %v1645_v25 = vadd.f32 %v6829_v23, %v1575_v27  ;;  %v2417_v56 = vadd.f32 %v2353_v20, %v2029_v48  ;;  %v8877_v20 = vld [vmem:[#allocation43_spill] sm:$0xff] }
 0x590   : > { %4411 = vst [vmem:[%s6953_s6 + $0x108] sm:$0xff] %v4347_v47  ;;  %v3961_v52 = vadd.f32 %v3897_v7, %v3573_v40  ;;  %v2803_v41 = vadd.f32 %v2739_v34, %v2415_v0  ;;  %v2355_v45 = vmul.f32 %v6836_v29, %v8869_v51  ;;  %v3513_v12 = vmul.f32 %v6873_v31, %v8870_v46  ;;  %v8873_v47 = vld [vmem:[#allocation132_spill] sm:$0xff]  ;;  %v8879_v48 = vld [vmem:[#allocation251_spill] sm:$0xff] }
 0x591   : > { %v3752_v39 = vpop.permute.xlu1 %3751  ;;  %v4287_v62 = vmul.f32 %v6892_v33, %v7184_v11  ;;  %v2031_v6 = vadd.f32 %v1967_v58, %v1643_v10  ;;  %v1969_v26 = vmul.f32 %v6818_v54, %v8871_v42  ;;  %v2741_v44 = vmul.f32 %v6847_v17, %v8872_v36  ;;  %v8876_v0 = vld [vmem:[#allocation352_spill] sm:$0xff] }
 0x592   : > { %v4349_v37 = vadd.f32 %v4285_v2, %v3961_v52  ;;  %v3899_v38 = vmul.f32 %v6890_v4, %v3752_v39  ;;  %v3191_v5 = vadd.f32 %v3127_v16, %v2803_v41  ;;  %v3129_v40 = vmul.f32 %v6853_v32, %v6574_v15  ;;  %v8878_v2 = vld [vmem:[#allocation133_spill] sm:$0xff] }
 0x593   : > { %4127 = vperm.xlu1 %4600, %v8868_v49   ;;  %v3577_v24 = vadd.f32 %v3513_v12, %v3189_v60  ;;  %v1577_v7 = vmul.f32 %v6809_v50, %v8873_v47  ;;  %v1579_v13 = vmul.f32 %v6809_v50, %v8874_v63  ;;  %v2357_v27 = vmul.f32 %v6836_v29, %v8875_v53  ;;  %v8882_v41 = vld [vmem:[#allocation353_spill] sm:$0xff]  ;;  %v8883_v12 = vld [vmem:[#allocation135_spill] sm:$0xff]  ;;  %v8889_v63 = vld [vmem:[#allocation260_spill] sm:$0xff] }
 0x594   : > { %4413 = vst [vmem:[%s6953_s6 + $0x118] sm:$0xff] %v4349_v37  ;;  %v3963_v14 = vadd.f32 %v3899_v38, %v3575_v8  ;;  %v3515_v1 = vmul.f32 %v6873_v31, %v8876_v0  ;;  %v2419_v22 = vadd.f32 %v2355_v45, %v2031_v6  ;;  %v2805_v15 = vadd.f32 %v2741_v44, %v2417_v56  ;;  %v8880_v38 = vld [vmem:[#allocation258_spill] sm:$0xff]  ;;  %v8881_v56 = vld [vmem:[#allocation7_spill] sm:$0xff] }
 0x595   : > { %v3760_v28 = vpop.permute.xlu1 %3759  ;;  %v4289_v3 = vmul.f32 %v6892_v33, %v7201_v55  ;;  %v2033_v61 = vadd.f32 %v1969_v26, %v1645_v25  ;;  %v1971_v52 = vmul.f32 %v6818_v54, %v8878_v2  ;;  %v2743_v30 = vmul.f32 %v6847_v17, %v8879_v48  ;;  %v7345_v25 = vpop.permute.xlu0 %4187  ;;  %v8885_v6 = vld [vmem:[#allocation359_spill] sm:$0xff]  ;;  %v8890_v53 = vld [vmem:[#allocation354_spill] sm:$0xff]  ;;  %v8893_v48 = vld [vmem:[#allocation361_spill] sm:$0xff] }
 0x596   : > { %v4351_v21 = vadd.f32 %v4287_v62, %v3963_v14  ;;  %v3901_v11 = vmul.f32 %v6890_v4, %v3760_v28  ;;  %v3579_v43 = vadd.f32 %v3515_v1, %v3191_v5  ;;  %v3193_v34 = vadd.f32 %v3129_v40, %v2805_v15  ;;  %v8884_v62 = vld [vmem:[#allocation253_spill] sm:$0xff] }
 0x597   : > { %4135 = vperm.xlu1 %4600, %v8877_v20   ;;  %v3131_v16 = vmul.f32 %v6853_v32, %v6580_v18  ;;  %v1647_v55 = vadd.f32 %v6829_v23, %v1577_v7  ;;  %v1649_v37 = vadd.f32 %v6829_v23, %v1579_v13  ;;  %v2421_v8 = vadd.f32 %v2357_v27, %v2033_v61  ;;  %v8888_v7 = vld [vmem:[#allocation9_spill] sm:$0xff] }
 0x598   : > { %4415 = vst [vmem:[%s6953_s6 + $0x128] sm:$0xff] %v4351_v21  ;;  %v3965_v9 = vadd.f32 %v3901_v11, %v3577_v24  ;;  %v2359_v10 = vmul.f32 %v6836_v29, %v8880_v38  ;;  %v3517_v49 = vmul.f32 %v6873_v31, %v8882_v41  ;;  %v2807_v51 = vadd.f32 %v2743_v30, %v2419_v22  ;;  %v8887_v21 = vld [vmem:[#allocation138_spill] sm:$0xff]  ;;  %v8891_v22 = vld [vmem:[#allocation137_spill] sm:$0xff]  ;;  %v8896_v38 = vld [vmem:[#allocation8_spill] sm:$0xff] }
 0x599   : > { %v3768_v58 = vpop.permute.xlu1 %3767  ;;  %v4291_v18 = vmul.f32 %v6892_v33, %v7229_v19  ;;  %v2035_v46 = vadd.f32 %v1971_v52, %v1647_v55  ;;  %v1973_v23 = vmul.f32 %v6818_v54, %v8883_v12  ;;  %v2745_v14 = vmul.f32 %v6847_v17, %v8884_v62  ;;  %v8886_v19 = vld [vmem:[#allocation136_spill] sm:$0xff]  ;;  %v7376_v2 = vpop.permute.xlu0 %4195 }
 0x59a   : > { %v4353_v39 = vadd.f32 %v4289_v3, %v3965_v9  ;;  %v3903_v60 = vmul.f32 %v6890_v4, %v3768_v58  ;;  %v3133_v42 = vmul.f32 %v6853_v32, %v8885_v6  ;;  %v3195_v36 = vadd.f32 %v3131_v16, %v2807_v51  ;;  %v8892_v3 = vld [vmem:[#allocation255_spill] sm:$0xff] }
 0x59b   : > { %4143 = vperm.xlu1 %4600, %v8881_v56   ;;  %v3581_v5 = vadd.f32 %v3517_v49, %v3193_v34  ;;  %v1581_v40 = vmul.f32 %v6809_v50, %v8886_v19  ;;  %v1583_v24 = vmul.f32 %v6809_v50, %v8887_v21  ;;  %v2423_v11 = vadd.f32 %v2359_v10, %v2035_v46  ;;  %v7384_v34 = vld [vmem:[%s8119_s4] ss:$0 sm:$0xff]  ;;  %v8899_v6 = vld [vmem:[#allocation363_spill] sm:$0xff] }
 0x59c   : > { %4417 = vst [vmem:[%s6953_s6 + $0x138] sm:$0xff] %v4353_v39  ;;  %v3967_v45 = vadd.f32 %v3903_v60, %v3579_v43  ;;  %v2809_v47 = vadd.f32 %v2745_v14, %v2421_v8  ;;  %v2361_v13 = vmul.f32 %v6836_v29, %v8889_v63  ;;  %v3519_v27 = vmul.f32 %v6873_v31, %v8890_v53  ;;  %v8894_v60 = vld [vmem:[#allocation262_spill] sm:$0xff]  ;;  %v8898_v46 = vld [vmem:[#allocation257_spill] sm:$0xff] }
 0x59d   : > { %v3776_v26 = vpop.permute.xlu1 %3775  ;;  %v4293_v0 = vmul.f32 %v6892_v33, %v7260_v35  ;;  %v2037_v20 = vadd.f32 %v1973_v23, %v1649_v37  ;;  %v1975_v15 = vmul.f32 %v6818_v54, %v8891_v22  ;;  %v2747_v9 = vmul.f32 %v6847_v17, %v8892_v3  ;;  %v8895_v37 = vld [vmem:[#allocation355_spill] sm:$0xff] }
 0x59e   : > { %v4355_v44 = vadd.f32 %v4291_v18, %v3967_v45  ;;  %v3905_v28 = vmul.f32 %v6890_v4, %v3776_v26  ;;  %v3197_v61 = vadd.f32 %v3133_v42, %v2809_v47  ;;  %v3135_v30 = vmul.f32 %v6853_v32, %v8893_v48  ;;  %v8897_v18 = vld [vmem:[#allocation139_spill] sm:$0xff]  ;;  %v8904_v47 = vld [vmem:[#allocation356_spill] sm:$0xff] }
 0x59f   : > { %4151 = vperm.xlu1 %4600, %v8888_v7   ;;  %v3583_v43 = vadd.f32 %v3519_v27, %v3195_v36  ;;  %v1651_v16 = vadd.f32 %v7384_v34, %v1581_v40  ;;  %v1653_v39 = vadd.f32 %v7384_v34, %v1583_v24  ;;  %v2363_v55 = vmul.f32 %v6836_v29, %v8894_v60  ;;  %v8902_v40 = vld [vmem:[#allocation264_spill] sm:$0xff]  ;;  %v7409_v24 = vpop.permute.xlu0 %4203  ;;  %v8910_v60 = vld [vmem:[#allocation266_spill] sm:$0xff] }
 0x5a0   : > { %4419 = vst [vmem:[%s6953_s6 + $0x148] sm:$0xff] %v4355_v44  ;;  %v3969_v1 = vadd.f32 %v3905_v28, %v3581_v5  ;;  %v3521_v8 = vmul.f32 %v6873_v31, %v8895_v37  ;;  %v2425_v10 = vadd.f32 %v2361_v13, %v2037_v20  ;;  %v2811_v56 = vadd.f32 %v2747_v9, %v2423_v11  ;;  %v8901_v5 = vld [vmem:[#allocation142_spill] sm:$0xff]  ;;  %v8906_v20 = vld [vmem:[#allocation259_spill] sm:$0xff]  ;;  %v8911_v37 = vld [vmem:[#allocation357_spill] sm:$0xff] }
 0x5a1   : > { %v3784_v52 = vpop.permute.xlu1 %3783  ;;  %v4295_v41 = vmul.f32 %v6892_v33, %v7288_v59  ;;  %v2039_v51 = vadd.f32 %v1975_v15, %v1651_v16  ;;  %v1977_v45 = vmul.f32 %v6818_v54, %v8897_v18  ;;  %v2749_v12 = vmul.f32 %v6847_v17, %v8898_v46  ;;  %v8900_v59 = vld [vmem:[#allocation140_spill] sm:$0xff]  ;;  %v8903_v11 = vld [vmem:[#allocation10_spill] sm:$0xff]  ;;  %v8907_v15 = vld [vmem:[#allocation365_spill] sm:$0xff] }
 0x5a2   : > { %v4357_v58 = vadd.f32 %v4293_v0, %v3969_v1  ;;  %v3907_v35 = vmul.f32 %v6890_v4, %v3784_v52  ;;  %v3585_v62 = vadd.f32 %v3521_v8, %v3197_v61  ;;  %v3199_v14 = vadd.f32 %v3135_v30, %v2811_v56  ;;  %v8905_v0 = vld [vmem:[#allocation141_spill] sm:$0xff] }
 0x5a3   : > { %4159 = vperm.xlu1 %4600, %v8896_v38   ;;  %v3137_v42 = vmul.f32 %v6853_v32, %v8899_v6  ;;  %v1585_v44 = vmul.f32 %v6809_v50, %v8900_v59  ;;  %v1587_v28 = vmul.f32 %v6809_v50, %v8901_v5  ;;  %v2427_v19 = vadd.f32 %v2363_v55, %v2039_v51 }
 0x5a4   : > { %4421 = vst [vmem:[%s6953_s6 + $0x158] sm:$0xff] %v4357_v58  ;;  %v3971_v49 = vadd.f32 %v3907_v35, %v3583_v43  ;;  %v2365_v21 = vmul.f32 %v6836_v29, %v8902_v40  ;;  %v3523_v7 = vmul.f32 %v6873_v31, %v8904_v47  ;;  %v2813_v63 = vadd.f32 %v2749_v12, %v2425_v10  ;;  %v8908_v58 = vld [vmem:[#allocation143_spill] sm:$0xff]  ;;  %v8918_v47 = vld [vmem:[#allocation145_spill] sm:$0xff] }
 0x5a5   : > { %v3792_v23 = vpop.permute.xlu1 %3791  ;;  %v4297_v13 = vmul.f32 %v6892_v33, %v7317_v57  ;;  %v2041_v27 = vadd.f32 %v1977_v45, %v1653_v39  ;;  %v1979_v1 = vmul.f32 %v6818_v54, %v8905_v0  ;;  %v2751_v22 = vmul.f32 %v6847_v17, %v8906_v20  ;;  %v8909_v39 = vld [vmem:[#allocation12_spill] sm:$0xff]  ;;  %v4212_v45 = vpop.permute.xlu0 %4211  ;;  %v8913_v12 = vld [vmem:[#allocation367_spill] sm:$0xff] }
 0x5a6   : > { %v4359_v26 = vadd.f32 %v4295_v41, %v3971_v49  ;;  %v3909_v36 = vmul.f32 %v6890_v4, %v3792_v23  ;;  %v3139_v3 = vmul.f32 %v6853_v32, %v8907_v15  ;;  %v3201_v61 = vadd.f32 %v3137_v42, %v2813_v63  ;;  %v8912_v49 = vld [vmem:[#allocation261_spill] sm:$0xff]  ;;  %v8919_v63 = vld [vmem:[#allocation146_spill] sm:$0xff] }
 0x5a7   : > { %4167 = vperm.xlu1 %4600, %v8903_v11   ;;  %v3587_v48 = vadd.f32 %v3523_v7, %v3199_v14  ;;  %v1655_v57 = vadd.f32 %v7384_v34, %v1585_v44  ;;  %v1981_v43 = vmul.f32 %v6818_v54, %v8908_v58  ;;  %v2429_v35 = vadd.f32 %v2365_v21, %v2041_v27  ;;  %v8916_v44 = vld [vmem:[#allocation358_spill] sm:$0xff] }
 0x5a8   : > { %4423 = vst [vmem:[%s6953_s6 + $0x168] sm:$0xff] %v4359_v26  ;;  %v3973_v53 = vadd.f32 %v3909_v36, %v3585_v62  ;;  %v2815_v16 = vadd.f32 %v2751_v22, %v2427_v19  ;;  %v2367_v55 = vmul.f32 %v6836_v29, %v8910_v60  ;;  %v3525_v8 = vmul.f32 %v6873_v31, %v8911_v37  ;;  %v8915_v36 = vld [vmem:[#allocation268_spill] sm:$0xff]  ;;  %v8921_v22 = vld [vmem:[#allocation369_spill] sm:$0xff] }
 0x5a9   : > { %v3800_v9 = vpop.permute.xlu1 %3799  ;;  %v4299_v38 = vmul.f32 %v6892_v33, %v7345_v25  ;;  %v1657_v56 = vadd.f32 %v7384_v34, %v1587_v28  ;;  %v2043_v41 = vadd.f32 %v1979_v1, %v1655_v57  ;;  %v2753_v51 = vmul.f32 %v6847_v17, %v8912_v49  ;;  %v8914_v25 = vld [vmem:[#allocation144_spill] sm:$0xff]  ;;  %v8917_v28 = vld [vmem:[#allocation14_spill] sm:$0xff]  ;;  %v4220_v58 = vpop.permute.xlu0 %4219 }
 0x5aa   : > { %v4361_v52 = vadd.f32 %v4297_v13, %v3973_v53  ;;  %v3911_v30 = vmul.f32 %v6890_v4, %v3800_v9  ;;  %v3203_v18 = vadd.f32 %v3139_v3, %v2815_v16  ;;  %v3141_v23 = vmul.f32 %v6853_v32, %v8913_v12  ;;  %v8920_v53 = vld [vmem:[#allocation263_spill] sm:$0xff]  ;;  %v8922_v9 = vld [vmem:[#allocation212_spill] sm:$0xff] }
 0x5ab   : > { %4175 = vperm.xlu1 %4600, %v8909_v39   ;;  %v3589_v14 = vadd.f32 %v3525_v8, %v3201_v61  ;;  %v1589_v42 = vmul.f32 %v6809_v50, %v8914_v25  ;;  %v2045_v26 = vadd.f32 %v1981_v43, %v1657_v56  ;;  %v2369_v59 = vmul.f32 %v6836_v29, %v8915_v36  ;;  %v8924_v43 = vld [vmem:[#allocation16_spill] sm:$0xff]  ;;  %v8927_v56 = vld [vmem:[#allocation371_spill] sm:$0xff] }
 0x5ac   : > { %4425 = vst [vmem:[%s6953_s6 + $0x178] sm:$0xff] %v4361_v52  ;;  %v3975_v10 = vadd.f32 %v3911_v30, %v3587_v48  ;;  %v3527_v5 = vmul.f32 %v6873_v31, %v8916_v44  ;;  %v2431_v19 = vadd.f32 %v2367_v55, %v2043_v41  ;;  %v2817_v40 = vadd.f32 %v2753_v51, %v2429_v35  ;;  %v8923_v30 = vld [vmem:[#allocation270_spill] sm:$0xff]  ;;  %v8925_v35 = vld [vmem:[#allocation360_spill] sm:$0xff] }
 0x5ad   : > { %v3808_v46 = vpop.permute.xlu1 %3807  ;;  %v4301_v21 = vmul.f32 %v6892_v33, %v7376_v2  ;;  %v1983_v7 = vmul.f32 %v6818_v54, %v8918_v47  ;;  %v1591_v13 = vmul.f32 %v6809_v50, %v8919_v63  ;;  %v2755_v27 = vmul.f32 %v6847_v17, %v8920_v53  ;;  %v4228_v63 = vpop.permute.xlu0 %4227  ;;  %v8935_v53 = vld [vmem:[#allocation373_spill] sm:$0xff] }
 0x5ae   : > { %v4363_v62 = vadd.f32 %v4299_v38, %v3975_v10  ;;  %v3913_v6 = vmul.f32 %v6890_v4, %v3808_v46  ;;  %v3591_v1 = vadd.f32 %v3527_v5, %v3203_v18  ;;  %v3205_v20 = vadd.f32 %v3141_v23, %v2817_v40  ;;  %v8926_v38 = vld [vmem:[#allocation265_spill] sm:$0xff]  ;;  %v8928_v23 = vld [vmem:[#allocation147_spill] sm:$0xff] }
 0x5af   : > { %4183 = vperm.xlu1 %4600, %v8917_v28   ;;  %v3143_v15 = vmul.f32 %v6853_v32, %v8921_v22  ;;  %v7462_v61 = vadd.f32 %v7384_v34, %v8922_v9  ;;  %v1659_v52 = vadd.f32 %v7384_v34, %v1589_v42  ;;  %v2433_v48 = vadd.f32 %v2369_v59, %v2045_v26  ;;  %v8930_v42 = vld [vmem:[#allocation19_spill] sm:$0xff]  ;;  %v8931_v26 = vld [vmem:[#allocation272_spill] sm:$0xff]  ;;  %v8932_v59 = vld [vmem:[#allocation362_spill] sm:$0xff] }
 0x5b0   : > { %4427 = vst [vmem:[%s6953_s6 + $0x188] sm:$0xff] %v4363_v62  ;;  %v3977_v11 = vadd.f32 %v3913_v6, %v3589_v14  ;;  %v2371_v57 = vmul.f32 %v6836_v29, %v8923_v30  ;;  %v3529_v16 = vmul.f32 %v6873_v31, %v8925_v35  ;;  %v2819_v39 = vadd.f32 %v2755_v27, %v2431_v19  ;;  %v8929_v62 = vld [vmem:[#allocation148_spill] sm:$0xff] }
 0x5b1   : > { %v3816_v0 = vpop.permute.xlu1 %3815  ;;  %v4303_v60 = vmul.f32 %v6892_v33, %v7409_v24  ;;  %v2047_v37 = vadd.f32 %v1983_v7, %v1659_v52  ;;  %v1661_v8 = vadd.f32 %v7384_v34, %v1591_v13  ;;  %v2757_v10 = vmul.f32 %v6847_v17, %v8926_v38  ;;  %v8933_v19 = vld [vmem:[#allocation56_spill] sm:$0xff] }
 0x5b2   : > { %v4365_v3 = vadd.f32 %v4301_v21, %v3977_v11  ;;  %v3915_v2 = vmul.f32 %v6890_v4, %v3816_v0  ;;  %v3145_v41 = vmul.f32 %v6853_v32, %v8927_v56  ;;  %v3207_v51 = vadd.f32 %v3143_v15, %v2819_v39  ;;  %v8934_v11 = vld [vmem:[#allocation267_spill] sm:$0xff]  ;;  %v8937_v15 = vld [vmem:[#allocation149_spill] sm:$0xff]  ;;  %v8939_v52 = vld [vmem:[#allocation364_spill] sm:$0xff] }
 0x5b3   : > { %4191 = vperm.xlu1 %4600, %v8924_v43   ;;  %v3593_v46 = vadd.f32 %v3529_v16, %v3205_v20  ;;  %v1985_v24 = vmul.f32 %v6818_v54, %v8928_v23  ;;  %v1923_v14 = vmul.f32 %v6818_v54, %v8929_v62  ;;  %v2435_v6 = vadd.f32 %v2371_v57, %v2047_v37  ;;  %v8936_v20 = vld [vmem:[#allocation207_spill] sm:$0xff]  ;;  %v8940_v30 = vld [vmem:[#allocation44_spill] sm:$0xff] }
 0x5b4   : > { %4429 = vst [vmem:[%s6953_s6 + $0x198] sm:$0xff] %v4365_v3  ;;  %v3979_v55 = vadd.f32 %v3915_v2, %v3591_v1  ;;  %v2821_v25 = vadd.f32 %v2757_v10, %v2433_v48  ;;  %v2373_v36 = vmul.f32 %v6836_v29, %v8931_v26  ;;  %v3531_v44 = vmul.f32 %v6873_v31, %v8932_v59  ;;  %v8938_v2 = vld [vmem:[#allocation150_spill] sm:$0xff]  ;;  %v8941_v39 = vld [vmem:[#allocation152_spill] sm:$0xff] }
 0x5b5   : > { %v3824_v49 = vpop.permute.xlu1 %3823  ;;  %v4305_v5 = vmul.f32 %v6892_v33, %v4212_v45  ;;  %v7492_v40 = vmul.f32 %v6809_v50, %v8933_v19  ;;  %v2049_v21 = vadd.f32 %v1985_v24, %v1661_v8  ;;  %v2759_v47 = vmul.f32 %v6847_v17, %v8934_v11  ;;  %v8943_v8 = vld [vmem:[#allocation274_spill] sm:$0xff]  ;;  %v8946_v24 = vld [vmem:[#allocation151_spill] sm:$0xff] }
 0x5b6   : > { %v4367_v18 = vadd.f32 %v4303_v60, %v3979_v55  ;;  %v3917_v12 = vmul.f32 %v6890_v4, %v3824_v49  ;;  %v3209_v7 = vadd.f32 %v3145_v41, %v2821_v25  ;;  %v3147_v27 = vmul.f32 %v6853_v32, %v8935_v53  ;;  %v8942_v55 = vld [vmem:[#allocation269_spill] sm:$0xff]  ;;  %v8944_v49 = vld [vmem:[#allocation375_spill] sm:$0xff]  ;;  %v4236_v25 = vpop.permute.xlu0 %4235  ;;  %v8949_v26 = vld [vmem:[#allocation366_spill] sm:$0xff] }
 0x5b7   : > { %4199 = vperm.xlu1 %4600, %v8930_v42   ;;  %v3595_v1 = vadd.f32 %v3531_v44, %v3207_v51  ;;  %v1987_v22 = vadd.f32 %v1923_v14, %v8936_v20  ;;  %v2311_v3 = vmul.f32 %v6836_v29, %v8937_v15  ;;  %v1924_v9 = vmul.f32 %v6818_v54, %v8938_v2  ;;  %v8947_v14 = vld [vmem:[#allocation154_spill] sm:$0xff]  ;;  %v8953_v20 = vld [vmem:[#allocation271_spill] sm:$0xff]  ;;  %v8954_v15 = vld [vmem:[#allocation276_spill] sm:$0xff] }
 0x5b8   : > { %4431 = vst [vmem:[%s6953_s6 + $0x1a8] sm:$0xff] %v4367_v18  ;;  %v3981_v28 = vadd.f32 %v3917_v12, %v3593_v46  ;;  %v3533_v48 = vmul.f32 %v6873_v31, %v8939_v52  ;;  %v2437_v57 = vadd.f32 %v2373_v36, %v2049_v21  ;;  %v2823_v43 = vadd.f32 %v2759_v47, %v2435_v6  ;;  %v8945_v12 = vld [vmem:[#allocation333_spill] sm:$0xff]  ;;  %v8948_v42 = vld [vmem:[#allocation46_spill] sm:$0xff]  ;;  %v8956_v52 = vld [vmem:[#allocation48_spill] sm:$0xff] }
 0x5b9   : > { %v3832_v13 = vpop.permute.xlu1 %3831  ;;  %v4307_v35 = vmul.f32 %v6892_v33, %v4220_v58  ;;  %v1926_v60 = vmul.f32 %v6818_v54, %v8941_v39  ;;  %v2761_v37 = vmul.f32 %v6847_v17, %v8942_v55  ;;  %v2699_v38 = vmul.f32 %v6847_v17, %v8943_v8  ;;  %v8951_v21 = vld [vmem:[#allocation153_spill] sm:$0xff]  ;;  %v8952_v47 = vld [vmem:[#allocation210_spill] sm:$0xff] }
 0x5ba   : > { %v4369_v0 = vadd.f32 %v4305_v5, %v3981_v28  ;;  %v3919_v45 = vmul.f32 %v6890_v4, %v3832_v13  ;;  %v3597_v56 = vadd.f32 %v3533_v48, %v3209_v7  ;;  %v3211_v41 = vadd.f32 %v3147_v27, %v2823_v43  ;;  %v8950_v28 = vld [vmem:[#allocation80_spill] sm:$0xff]  ;;  %v8955_v2 = vld [vmem:[#allocation377_spill] sm:$0xff]  ;;  %v8957_v48 = vld [vmem:[#allocation278_spill] sm:$0xff]  ;;  %v4244_v8 = vpop.permute.xlu0 %4243 }
 0x5bb   : > { %4207 = vperm.xlu1 %4600, %v8940_v30   ;;  %v3149_v51 = vmul.f32 %v6853_v32, %v8944_v49  ;;  %v2375_v46 = vadd.f32 %v2311_v3, %v1987_v22  ;;  %v1988_v23 = vadd.f32 %v1924_v9, %v8945_v12  ;;  %v2314_v62 = vmul.f32 %v6836_v29, %v8946_v24  ;;  %v8962_v24 = vld [vmem:[#allocation50_spill] sm:$0xff] }
 0x5bc   : > { %4433 = vst [vmem:[%s6953_s6 + $0x1b8] sm:$0xff] %v4369_v0  ;;  %v3983_v16 = vadd.f32 %v3919_v45, %v3595_v1  ;;  %v1928_v6 = vmul.f32 %v6818_v54, %v8947_v14  ;;  %v3535_v36 = vmul.f32 %v6873_v31, %v8949_v26  ;;  %v2825_v59 = vadd.f32 %v2761_v37, %v2437_v57  ;;  %v8958_v57 = vld [vmem:[#allocation368_spill] sm:$0xff] }
 0x5bd   : > { %v3840_v10 = vpop.permute.xlu1 %3839  ;;  %v4309_v44 = vmul.f32 %v6892_v33, %v4228_v63  ;;  %v1990_v19 = vadd.f32 %v1926_v60, %v8950_v28  ;;  %v2316_v11 = vmul.f32 %v6836_v29, %v8951_v21  ;;  %v2312_v7 = vmul.f32 %v6836_v29, %v8952_v47  ;;  %v8963_v26 = vld [vmem:[#allocation280_spill] sm:$0xff]  ;;  %v8966_v28 = vld [vmem:[#allocation158_spill] sm:$0xff]  ;;  %v8967_v21 = vld [vmem:[#allocation273_spill] sm:$0xff] }
 0x5be   : > { %v4371_v18 = vadd.f32 %v4307_v35, %v3983_v16  ;;  %v3921_v58 = vmul.f32 %v6890_v4, %v3840_v10  ;;  %v2763_v13 = vadd.f32 %v2699_v38, %v2375_v46  ;;  %v3213_v27 = vadd.f32 %v3149_v51, %v2825_v59  ;;  %v8959_v16 = vld [vmem:[#allocation156_spill] sm:$0xff]  ;;  %v8960_v10 = vld [vmem:[#allocation335_spill] sm:$0xff]  ;;  %v8964_v59 = vld [vmem:[#allocation370_spill] sm:$0xff] }
 0x5bf   : > { %4215 = vperm.xlu1 %4600, %v8948_v42   ;;  %v3599_v1 = vadd.f32 %v3535_v36, %v3211_v41  ;;  %v1992_v63 = vadd.f32 %v1928_v6, %v7462_v61  ;;  %v3087_v22 = vmul.f32 %v6853_v32, %v8953_v20  ;;  %v2700_v3 = vmul.f32 %v6847_v17, %v8954_v15  ;;  %v8970_v20 = vld [vmem:[#allocation52_spill] sm:$0xff]  ;;  %v8971_v15 = vld [vmem:[#allocation58_spill] sm:$0xff] }
 0x5c0   : > { %4435 = vst [vmem:[%s6953_s6 + $0x1c8] sm:$0xff] %v4371_v18  ;;  %v3985_v5 = vadd.f32 %v3921_v58, %v3597_v56  ;;  %v3475_v9 = vmul.f32 %v6873_v31, %v8955_v2  ;;  %v2702_v30 = vmul.f32 %v6847_v17, %v8957_v48  ;;  %v3537_v43 = vmul.f32 %v6873_v31, %v8958_v57  ;;  %v8961_v58 = vld [vmem:[#allocation57_spill] sm:$0xff]  ;;  %v8972_v2 = vld [vmem:[#allocation155_spill] sm:$0xff] }
 0x5c1   : > { %v3848_v53 = vpop.permute.xlu1 %3847  ;;  %v4311_v35 = vmul.f32 %v6892_v33, %v4236_v25  ;;  %v1930_v39 = vmul.f32 %v6818_v54, %v8959_v16  ;;  %v2376_v60 = vadd.f32 %v2312_v7, %v1988_v23  ;;  %v2378_v55 = vadd.f32 %v2314_v62, %v1990_v19  ;;  %v8974_v16 = vld [vmem:[#allocation160_spill] sm:$0xff] }
 0x5c2   : > { %v4373_v0 = vadd.f32 %v4309_v44, %v3985_v5  ;;  %v3923_v45 = vmul.f32 %v6890_v4, %v3848_v53  ;;  %v3151_v37 = vadd.f32 %v3087_v22, %v2763_v13  ;;  %v3088_v56 = vmul.f32 %v6853_v32, %v8960_v10  ;;  %v8965_v44 = vld [vmem:[#allocation379_spill] sm:$0xff]  ;;  %v8968_v53 = vld [vmem:[#allocation381_spill] sm:$0xff] }
 0x5c3   : > { %4223 = vperm.xlu1 %4600, %v8956_v52   ;;  %v3601_v49 = vadd.f32 %v3537_v43, %v3213_v27  ;;  %v1606_v18 = vadd.f32 %v7384_v34, %v7492_v40  ;;  %v1538_v46 = vmul.f32 %v6809_v50, %v8961_v58  ;;  %v2380_v12 = vadd.f32 %v2316_v11, %v1992_v63  ;;  %v8976_v10 = vld [vmem:[#allocation383_spill] sm:$0xff] }
 0x5c4   : > { %4437 = vst [vmem:[%s6953_s6 + $0x1d8] sm:$0xff] %v4373_v0  ;;  %v3987_v61 = vadd.f32 %v3923_v45, %v3599_v1  ;;  %v3539_v23 = vadd.f32 %v3475_v9, %v3151_v37  ;;  %v2764_v62 = vadd.f32 %v2700_v3, %v2376_v60  ;;  %v2766_v14 = vadd.f32 %v2702_v30, %v2378_v55  ;;  %v8969_v0 = vld [vmem:[#allocation94_spill] sm:$0xff]  ;;  %v8975_v60 = vld [vmem:[#allocation275_spill] sm:$0xff] }
 0x5c5   : > { %v3856_v38 = vpop.permute.xlu1 %3855  ;;  %v4313_v6 = vmul.f32 %v6892_v33, %v4244_v8  ;;  %v1994_v42 = vadd.f32 %v1930_v39, %v1606_v18  ;;  %v2704_v36 = vmul.f32 %v6847_v17, %v8963_v26  ;;  %v3863_v40 = vmul.f32 %v6890_v4, %v8964_v59  ;;  %v8973_v30 = vld [vmem:[#allocation282_spill] sm:$0xff]  ;;  %v8977_v18 = vld [vmem:[#allocation59_spill] sm:$0xff] }
 0x5c6   : > { %v4375_v41 = vadd.f32 %v4311_v35, %v3987_v61  ;;  %v3925_v51 = vmul.f32 %v6890_v4, %v3856_v38  ;;  %v3476_v5 = vmul.f32 %v6873_v31, %v8965_v44  ;;  %v1932_v19 = vmul.f32 %v6818_v54, %v8966_v28 }
 0x5c7   : > { %4231 = vperm.xlu1 %4600, %v8962_v24   ;;  %v3090_v11 = vmul.f32 %v6853_v32, %v8967_v21  ;;  %v3152_v47 = vadd.f32 %v3088_v56, %v2764_v62  ;;  %v3478_v27 = vmul.f32 %v6873_v31, %v8968_v53  ;;  %v3864_v1 = vmul.f32 %v6890_v4, %v8969_v0  ;;  %v8983_v21 = vld [vmem:[#allocation385_spill] sm:$0xff]  ;;  %v8984_v53 = vld [vmem:[#allocation60_spill] sm:$0xff]  ;;  %v8985_v0 = vld [vmem:[#allocation159_spill] sm:$0xff] }
 0x5c8   : > { %4439 = vst [vmem:[%s6953_s6 + $0x1e8] sm:$0xff] %v4375_v41  ;;  %v3989_v25 = vadd.f32 %v3925_v51, %v3601_v49  ;;  %v3927_v45 = vadd.f32 %v3863_v40, %v3539_v23  ;;  %v1608_v22 = vadd.f32 %v7384_v34, %v1538_v46  ;;  %v1540_v3 = vmul.f32 %v6809_v50, %v8971_v15  ;;  %v8978_v46 = vld [vmem:[#allocation157_spill] sm:$0xff]  ;;  %v8979_v23 = vld [vmem:[#allocation284_spill] sm:$0xff] }
 0x5c9   : > { %v2318_v9 = vmul.f32 %v6836_v29, %v8972_v2  ;;  %v3154_v52 = vadd.f32 %v3090_v11, %v2766_v14  ;;  %v2768_v48 = vadd.f32 %v2704_v36, %v2380_v12  ;;  %v2706_v57 = vmul.f32 %v6847_v17, %v8973_v30  ;;  %v8980_v14 = vld [vmem:[#allocation372_spill] sm:$0xff]  ;;  %v8981_v36 = vld [vmem:[#allocation162_spill] sm:$0xff]  ;;  %v8982_v40 = vld [vmem:[#allocation277_spill] sm:$0xff] }
 0x5ca   : > { %v4377_v7 = vadd.f32 %v4313_v6, %v3989_v25  ;;  %v3996_v13 = vpop.permute.xlu1 %3995  ;;  %v3540_v43 = vadd.f32 %v3476_v5, %v3152_v47  ;;  %v1996_v61 = vadd.f32 %v1932_v19, %v1608_v22  ;;  %v1934_v39 = vmul.f32 %v6818_v54, %v8974_v16  ;;  %v8987_v22 = vld [vmem:[#allocation374_spill] sm:$0xff]  ;;  %v8989_v30 = vld [vmem:[#allocation279_spill] sm:$0xff] }
 0x5cb   : > { %v4251_v63 = vmul.f32 %v6892_v33, %v3996_v13  ;;  %4239 = vperm.xlu1 %4600, %v8970_v20   ;;  %v3092_v55 = vmul.f32 %v6853_v32, %v8975_v60  ;;  %v2382_v37 = vadd.f32 %v2318_v9, %v1994_v42  ;;  %v3542_v38 = vadd.f32 %v3478_v27, %v3154_v52  ;;  %v8988_v52 = vld [vmem:[#allocation164_spill] sm:$0xff]  ;;  %v8990_v16 = vld [vmem:[#allocation387_spill] sm:$0xff] }
 0x5cc   : > { %4441 = vst [vmem:[%s6953_s6 + $0x1f8] sm:$0xff] %v4377_v7  ;;  %v3480_v56 = vmul.f32 %v6873_v31, %v8976_v10  ;;  %v3928_v41 = vadd.f32 %v3864_v1, %v3540_v43  ;;  %v1610_v51 = vadd.f32 %v7384_v34, %v1540_v3  ;;  %v1542_v58 = vmul.f32 %v6809_v50, %v8977_v18  ;;  %v8992_v10 = vld [vmem:[#allocation161_spill] sm:$0xff] }
 0x5cd   : > { %v4315_v35 = vadd.f32 %v4251_v63, %v3927_v45  ;;  %v2320_v12 = vmul.f32 %v6836_v29, %v8978_v46  ;;  %v2708_v24 = vmul.f32 %v6847_v17, %v8979_v23  ;;  %v2770_v62 = vadd.f32 %v2706_v57, %v2382_v37  ;;  %v8986_v63 = vld [vmem:[#allocation286_spill] sm:$0xff] }
 0x5ce   : > { %v4000_v8 = vpop.permute.xlu1 %3999  ;;  %v3866_v6 = vmul.f32 %v6890_v4, %v8980_v14  ;;  %v3156_v25 = vadd.f32 %v3092_v55, %v2768_v48  ;;  %v1998_v26 = vadd.f32 %v1934_v39, %v1610_v51  ;;  %v1936_v59 = vmul.f32 %v6818_v54, %v8981_v36  ;;  %v8993_v51 = vld [vmem:[#allocation288_spill] sm:$0xff]  ;;  %v8996_v14 = vld [vmem:[#allocation281_spill] sm:$0xff] }
 0x5cf   : > { %4379 = vst [vmem:[%s6953_s6 + $0x8] sm:$0xff] %v4315_v35  ;;  %v4252_v49 = vmul.f32 %v6892_v33, %v4000_v8  ;;  %v3094_v44 = vmul.f32 %v6853_v32, %v8982_v40  ;;  %v2384_v5 = vadd.f32 %v2320_v12, %v1996_v61  ;;  %v3482_v11 = vmul.f32 %v6873_v31, %v8983_v21  ;;  %v8991_v8 = vld [vmem:[#allocation61_spill] sm:$0xff]  ;;  %v8999_v21 = vld [vmem:[#allocation163_spill] sm:$0xff] }
 0x5d0   : > { %v3544_v19 = vadd.f32 %v3480_v56, %v3156_v25  ;;  %v3930_v47 = vadd.f32 %v3866_v6, %v3542_v38  ;;  %v1612_v13 = vadd.f32 %v7384_v34, %v1542_v58  ;;  %v1544_v27 = vmul.f32 %v6809_v50, %v8984_v53  ;;  %v8994_v58 = vld [vmem:[#allocation376_spill] sm:$0xff]  ;;  %v8997_v36 = vld [vmem:[#allocation389_spill] sm:$0xff]  ;;  %v9001_v53 = vld [vmem:[#allocation378_spill] sm:$0xff] }
 0x5d1   : > { %v4316_v42 = vadd.f32 %v4252_v49, %v3928_v41  ;;  %v2322_v1 = vmul.f32 %v6836_v29, %v8985_v0  ;;  %v2772_v45 = vadd.f32 %v2708_v24, %v2384_v5  ;;  %v2710_v20 = vmul.f32 %v6847_v17, %v8986_v63  ;;  %v8995_v24 = vld [vmem:[#allocation166_spill] sm:$0xff]  ;;  %v9002_v63 = vld [vmem:[#allocation168_spill] sm:$0xff] }
 0x5d2   : > { %v4008_v28 = vpop.permute.xlu1 %4007  ;;  %v3868_v15 = vmul.f32 %v6890_v4, %v8987_v22  ;;  %v3158_v3 = vadd.f32 %v3094_v44, %v2770_v62  ;;  %v2000_v9 = vadd.f32 %v1936_v59, %v1612_v13  ;;  %v1938_v48 = vmul.f32 %v6818_v54, %v8988_v52  ;;  %v9003_v22 = vld [vmem:[#allocation283_spill] sm:$0xff] }
 0x5d3   : > { %4380 = vst [vmem:[%s6953_s6 + $0x10] sm:$0xff] %v4316_v42  ;;  %v4254_v7 = vmul.f32 %v6892_v33, %v4008_v28  ;;  %v3096_v57 = vmul.f32 %v6853_v32, %v8989_v30  ;;  %v2386_v43 = vadd.f32 %v2322_v1, %v1998_v26  ;;  %v3484_v39 = vmul.f32 %v6873_v31, %v8990_v16  ;;  %v8998_v28 = vld [vmem:[#allocation62_spill] sm:$0xff]  ;;  %v9004_v52 = vld [vmem:[#allocation391_spill] sm:$0xff]  ;;  %v9006_v16 = vld [vmem:[#allocation165_spill] sm:$0xff] }
 0x5d4   : > { %v3546_v61 = vadd.f32 %v3482_v11, %v3158_v3  ;;  %v3932_v60 = vadd.f32 %v3868_v15, %v3544_v19  ;;  %v1614_v37 = vadd.f32 %v7384_v34, %v1544_v27  ;;  %v1546_v38 = vmul.f32 %v6809_v50, %v8991_v8  ;;  %v9008_v8 = vld [vmem:[#allocation380_spill] sm:$0xff] }
 0x5d5   : > { %v4318_v2 = vadd.f32 %v4254_v7, %v3930_v47  ;;  %v2324_v56 = vmul.f32 %v6836_v29, %v8992_v10  ;;  %v3160_v41 = vadd.f32 %v3096_v57, %v2772_v45  ;;  %v2774_v49 = vadd.f32 %v2710_v20, %v2386_v43  ;;  %v9000_v47 = vld [vmem:[#allocation290_spill] sm:$0xff] }
 0x5d6   : > { %v4016_v35 = vpop.permute.xlu1 %4015  ;;  %v2712_v18 = vmul.f32 %v6847_v17, %v8993_v51  ;;  %v3870_v46 = vmul.f32 %v6890_v4, %v8994_v58  ;;  %v2002_v23 = vadd.f32 %v1938_v48, %v1614_v37  ;;  %v1940_v62 = vmul.f32 %v6818_v54, %v8995_v24  ;;  %v9011_v24 = vld [vmem:[#allocation393_spill] sm:$0xff] }
 0x5d7   : > { %4382 = vst [vmem:[%s6953_s6 + $0x20] sm:$0xff] %v4318_v2  ;;  %v4256_v55 = vmul.f32 %v6892_v33, %v4016_v35  ;;  %v3098_v6 = vmul.f32 %v6853_v32, %v8996_v14  ;;  %v2388_v25 = vadd.f32 %v2324_v56, %v2000_v9  ;;  %v3548_v26 = vadd.f32 %v3484_v39, %v3160_v41  ;;  %v9005_v35 = vld [vmem:[#allocation63_spill] sm:$0xff] }
 0x5d8   : > { %v3486_v59 = vmul.f32 %v6873_v31, %v8997_v36  ;;  %v3934_v40 = vadd.f32 %v3870_v46, %v3546_v61  ;;  %v1616_v5 = vadd.f32 %v7384_v34, %v1546_v38  ;;  %v1548_v19 = vmul.f32 %v6809_v50, %v8998_v28  ;;  %v9013_v36 = vld [vmem:[#allocation167_spill] sm:$0xff] }
 0x5d9   : > { %v4320_v12 = vadd.f32 %v4256_v55, %v3932_v60  ;;  %v2326_v11 = vmul.f32 %v6836_v29, %v8999_v21  ;;  %v2714_v7 = vmul.f32 %v6847_v17, %v9000_v47  ;;  %v2776_v13 = vadd.f32 %v2712_v18, %v2388_v25  ;;  %v9007_v55 = vld [vmem:[#allocation292_spill] sm:$0xff]  ;;  %v9010_v18 = vld [vmem:[#allocation285_spill] sm:$0xff] }
 0x5da   : > { %v4024_v42 = vpop.permute.xlu1 %4023  ;;  %v3872_v27 = vmul.f32 %v6890_v4, %v9001_v53  ;;  %v3162_v0 = vadd.f32 %v3098_v6, %v2774_v49  ;;  %v2004_v45 = vadd.f32 %v1940_v62, %v1616_v5  ;;  %v1942_v20 = vmul.f32 %v6818_v54, %v9002_v63  ;;  %v9009_v49 = vld [vmem:[#allocation170_spill] sm:$0xff]  ;;  %v9017_v53 = vld [vmem:[#allocation287_spill] sm:$0xff] }
 0x5db   : > { %4384 = vst [vmem:[%s6953_s6 + $0x30] sm:$0xff] %v4320_v12  ;;  %v4258_v44 = vmul.f32 %v6892_v33, %v4024_v42  ;;  %v3100_v15 = vmul.f32 %v6853_v32, %v9003_v22  ;;  %v2390_v3 = vadd.f32 %v2326_v11, %v2002_v23  ;;  %v3488_v48 = vmul.f32 %v6873_v31, %v9004_v52  ;;  %v9012_v42 = vld [vmem:[#allocation64_spill] sm:$0xff]  ;;  %v9014_v5 = vld [vmem:[#allocation294_spill] sm:$0xff]  ;;  %v9018_v63 = vld [vmem:[#allocation395_spill] sm:$0xff] }
 0x5dc   : > { %v3550_v9 = vadd.f32 %v3486_v59, %v3162_v0  ;;  %v3936_v30 = vadd.f32 %v3872_v27, %v3548_v26  ;;  %v1618_v43 = vadd.f32 %v7384_v34, %v1548_v19  ;;  %v1550_v61 = vmul.f32 %v6809_v50, %v9005_v35  ;;  %v9015_v19 = vld [vmem:[#allocation382_spill] sm:$0xff]  ;;  %v9020_v52 = vld [vmem:[#allocation169_spill] sm:$0xff]  ;;  %v9022_v35 = vld [vmem:[#allocation384_spill] sm:$0xff] }
 0x5dd   : > { %v4322_v1 = vadd.f32 %v4258_v44, %v3934_v40  ;;  %v2328_v39 = vmul.f32 %v6836_v29, %v9006_v16  ;;  %v2778_v60 = vadd.f32 %v2714_v7, %v2390_v3  ;;  %v2716_v37 = vmul.f32 %v6847_v17, %v9007_v55  ;;  %v9016_v7 = vld [vmem:[#allocation172_spill] sm:$0xff]  ;;  %v9023_v55 = vld [vmem:[#allocation174_spill] sm:$0xff] }
 0x5de   : > { %v4032_v2 = vpop.permute.xlu1 %4031  ;;  %v3874_v38 = vmul.f32 %v6890_v4, %v9008_v8  ;;  %v3164_v10 = vadd.f32 %v3100_v15, %v2776_v13  ;;  %v2006_v41 = vadd.f32 %v1942_v20, %v1618_v43  ;;  %v1944_v51 = vmul.f32 %v6818_v54, %v9009_v49  ;;  %v9024_v8 = vld [vmem:[#allocation289_spill] sm:$0xff] }
 0x5df   : > { %4386 = vst [vmem:[%s6953_s6 + $0x40] sm:$0xff] %v4322_v1  ;;  %v4260_v57 = vmul.f32 %v6892_v33, %v4032_v2  ;;  %v3102_v58 = vmul.f32 %v6853_v32, %v9010_v18  ;;  %v2392_v46 = vadd.f32 %v2328_v39, %v2004_v45  ;;  %v3490_v62 = vmul.f32 %v6873_v31, %v9011_v24  ;;  %v9019_v2 = vld [vmem:[#allocation65_spill] sm:$0xff]  ;;  %v9027_v24 = vld [vmem:[#allocation171_spill] sm:$0xff] }
 0x5e0   : > { %v3552_v23 = vadd.f32 %v3488_v48, %v3164_v10  ;;  %v3938_v14 = vadd.f32 %v3874_v38, %v3550_v9  ;;  %v1620_v25 = vadd.f32 %v7384_v34, %v1550_v61  ;;  %v1552_v26 = vmul.f32 %v6809_v50, %v9012_v42  ;;  %v9025_v49 = vld [vmem:[#allocation397_spill] sm:$0xff]  ;;  %v9029_v42 = vld [vmem:[#allocation386_spill] sm:$0xff] }
 0x5e1   : > { %v4324_v56 = vadd.f32 %v4260_v57, %v3936_v30  ;;  %v2330_v59 = vmul.f32 %v6836_v29, %v9013_v36  ;;  %v3166_v40 = vadd.f32 %v3102_v58, %v2778_v60  ;;  %v2780_v44 = vadd.f32 %v2716_v37, %v2392_v46  ;;  %v9021_v30 = vld [vmem:[#allocation296_spill] sm:$0xff] }
 0x5e2   : > { %v4040_v12 = vpop.permute.xlu1 %4039  ;;  %v2718_v28 = vmul.f32 %v6847_v17, %v9014_v5  ;;  %v3876_v21 = vmul.f32 %v6890_v4, %v9015_v19  ;;  %v2008_v47 = vadd.f32 %v1944_v51, %v1620_v25  ;;  %v1946_v13 = vmul.f32 %v6818_v54, %v9016_v7  ;;  %v9032_v7 = vld [vmem:[#allocation399_spill] sm:$0xff] }
 0x5e3   : > { %4388 = vst [vmem:[%s6953_s6 + $0x50] sm:$0xff] %v4324_v56  ;;  %v4262_v6 = vmul.f32 %v6892_v33, %v4040_v12  ;;  %v3104_v27 = vmul.f32 %v6853_v32, %v9017_v53  ;;  %v2394_v0 = vadd.f32 %v2330_v59, %v2006_v41  ;;  %v3554_v45 = vadd.f32 %v3490_v62, %v3166_v40  ;;  %v9026_v12 = vld [vmem:[#allocation66_spill] sm:$0xff] }
 0x5e4   : > { %v3492_v20 = vmul.f32 %v6873_v31, %v9018_v63  ;;  %v3940_v22 = vadd.f32 %v3876_v21, %v3552_v23  ;;  %v1622_v3 = vadd.f32 %v7384_v34, %v1552_v26  ;;  %v1554_v9 = vmul.f32 %v6809_v50, %v9019_v2  ;;  %v9034_v63 = vld [vmem:[#allocation173_spill] sm:$0xff] }
 0x5e5   : > { %v4326_v11 = vadd.f32 %v4262_v6, %v3938_v14  ;;  %v2332_v48 = vmul.f32 %v6836_v29, %v9020_v52  ;;  %v2720_v57 = vmul.f32 %v6847_v17, %v9021_v30  ;;  %v2782_v43 = vadd.f32 %v2718_v28, %v2394_v0  ;;  %v9028_v6 = vld [vmem:[#allocation298_spill] sm:$0xff]  ;;  %v9031_v28 = vld [vmem:[#allocation291_spill] sm:$0xff] }
 0x5e6   : > { %v4048_v1 = vpop.permute.xlu1 %4047  ;;  %v3878_v61 = vmul.f32 %v6890_v4, %v9022_v35  ;;  %v3168_v16 = vadd.f32 %v3104_v27, %v2780_v44  ;;  %v2010_v60 = vadd.f32 %v1946_v13, %v1622_v3  ;;  %v1948_v37 = vmul.f32 %v6818_v54, %v9023_v55  ;;  %v9030_v44 = vld [vmem:[#allocation176_spill] sm:$0xff]  ;;  %v9038_v35 = vld [vmem:[#allocation293_spill] sm:$0xff] }
 0x5e7   : > { %4390 = vst [vmem:[%s6953_s6 + $0x60] sm:$0xff] %v4326_v11  ;;  %v4264_v15 = vmul.f32 %v6892_v33, %v4048_v1  ;;  %v3106_v38 = vmul.f32 %v6853_v32, %v9024_v8  ;;  %v2396_v10 = vadd.f32 %v2332_v48, %v2008_v47  ;;  %v3494_v51 = vmul.f32 %v6873_v31, %v9025_v49  ;;  %v9033_v1 = vld [vmem:[#allocation67_spill] sm:$0xff]  ;;  %v9035_v3 = vld [vmem:[#allocation300_spill] sm:$0xff]  ;;  %v9039_v55 = vld [vmem:[#allocation401_spill] sm:$0xff] }
 0x5e8   : > { %v3556_v41 = vadd.f32 %v3492_v20, %v3168_v16  ;;  %v3942_v18 = vadd.f32 %v3878_v61, %v3554_v45  ;;  %v1624_v46 = vadd.f32 %v7384_v34, %v1554_v9  ;;  %v1556_v23 = vmul.f32 %v6809_v50, %v9026_v12  ;;  %v9036_v9 = vld [vmem:[#allocation388_spill] sm:$0xff]  ;;  %v9041_v49 = vld [vmem:[#allocation175_spill] sm:$0xff]  ;;  %v9043_v12 = vld [vmem:[#allocation390_spill] sm:$0xff] }
 0x5e9   : > { %v4328_v39 = vadd.f32 %v4264_v15, %v3940_v22  ;;  %v2334_v62 = vmul.f32 %v6836_v29, %v9027_v24  ;;  %v2784_v14 = vadd.f32 %v2720_v57, %v2396_v10  ;;  %v2722_v25 = vmul.f32 %v6847_v17, %v9028_v6  ;;  %v9037_v57 = vld [vmem:[#allocation178_spill] sm:$0xff] }
 0x5ea   : > { %v4056_v56 = vpop.permute.xlu1 %4055  ;;  %v3880_v26 = vmul.f32 %v6890_v4, %v9029_v42  ;;  %v3170_v36 = vadd.f32 %v3106_v38, %v2782_v43  ;;  %v2012_v40 = vadd.f32 %v1948_v37, %v1624_v46  ;;  %v1950_v5 = vmul.f32 %v6818_v54, %v9030_v44  ;;  %v9044_v6 = vld [vmem:[#allocation38_spill] sm:$0xff]  ;;  %v9045_v42 = vld [vmem:[#allocation295_spill] sm:$0xff]  ;;  %v9046_v44 = vld [vmem:[#allocation40_spill] sm:$0xff] }
 0x5eb   : > { %4392 = vst [vmem:[%s6953_s6 + $0x70] sm:$0xff] %v4328_v39  ;;  %v4266_v58 = vmul.f32 %v6892_v33, %v4056_v56  ;;  %v3108_v19 = vmul.f32 %v6853_v32, %v9031_v28  ;;  %v2398_v21 = vadd.f32 %v2334_v62, %v2010_v60  ;;  %v3496_v13 = vmul.f32 %v6873_v31, %v9032_v7  ;;  %v9040_v56 = vld [vmem:[#allocation68_spill] sm:$0xff]  ;;  %v9048_v7 = vld [vmem:[#allocation177_spill] sm:$0xff] }
 0x5ec   : > { %v3558_v47 = vadd.f32 %v3494_v51, %v3170_v36  ;;  %v3944_v53 = vadd.f32 %v3880_v26, %v3556_v41  ;;  %v1626_v0 = vadd.f32 %v7384_v34, %v1556_v23  ;;  %v1558_v45 = vmul.f32 %v6809_v50, %v9033_v1  ;;  %v9050_v1 = vld [vmem:[#allocation392_spill] sm:$0xff] }
 0x5ed   : > { %v4330_v59 = vadd.f32 %v4266_v58, %v3942_v18  ;;  %v2336_v20 = vmul.f32 %v6836_v29, %v9034_v63  ;;  %v3172_v22 = vadd.f32 %v3108_v19, %v2784_v14  ;;  %v2786_v15 = vadd.f32 %v2722_v25, %v2398_v21  ;;  %v9042_v18 = vld [vmem:[#allocation302_spill] sm:$0xff] }
 0x5ee   : > { %v4064_v11 = vpop.permute.xlu1 %4063  ;;  %v2724_v2 = vmul.f32 %v6847_v17, %v9035_v3  ;;  %v3882_v52 = vmul.f32 %v6890_v4, %v9036_v9  ;;  %v2014_v30 = vadd.f32 %v1950_v5, %v1626_v0  ;;  %v1952_v43 = vmul.f32 %v6818_v54, %v9037_v57  ;;  %v9053_v57 = vld [vmem:[#allocation42_spill] sm:$0xff] }
 0x5ef   : > { %4394 = vst [vmem:[%s6953_s6 + $0x80] sm:$0xff] %v4330_v59  ;;  %v4268_v27 = vmul.f32 %v6892_v33, %v4064_v11  ;;  %v3110_v61 = vmul.f32 %v6853_v32, %v9038_v35  ;;  %v2400_v16 = vadd.f32 %v2336_v20, %v2012_v40  ;;  %v3560_v60 = vadd.f32 %v3496_v13, %v3172_v22  ;;  %v9047_v11 = vld [vmem:[#allocation69_spill] sm:$0xff] }
 0x5f0   : > { %v3498_v37 = vmul.f32 %v6873_v31, %v9039_v55  ;;  %v3946_v8 = vadd.f32 %v3882_v52, %v3558_v47  ;;  %v1628_v10 = vadd.f32 %v7384_v34, %v1558_v45  ;;  %v1560_v41 = vmul.f32 %v6809_v50, %v9040_v56  ;;  %v9055_v55 = vld [vmem:[#allocation179_spill] sm:$0xff] }
 0x5f1   : > { %v4332_v48 = vadd.f32 %v4268_v27, %v3944_v53  ;;  %v2338_v51 = vmul.f32 %v6836_v29, %v9041_v49  ;;  %v2726_v58 = vmul.f32 %v6847_v17, %v9042_v18  ;;  %v2788_v46 = vadd.f32 %v2724_v2, %v2400_v16  ;;  %v9049_v27 = vld [vmem:[#allocation304_spill] sm:$0xff]  ;;  %v9052_v2 = vld [vmem:[#allocation297_spill] sm:$0xff] }
 0x5f2   : > { %v4072_v39 = vpop.permute.xlu1 %4071  ;;  %v3884_v23 = vmul.f32 %v6890_v4, %v9043_v12  ;;  %v3174_v24 = vadd.f32 %v3110_v61, %v2786_v15  ;;  %v2016_v14 = vadd.f32 %v1952_v43, %v1628_v10  ;;  %v1954_v25 = vmul.f32 %v6818_v54, %v9044_v6  ;;  %v9051_v15 = vld [vmem:[#allocation181_spill] sm:$0xff]  ;;  %v9056_v10 = vld [vmem:[#allocation306_spill] sm:$0xff]  ;;  %v9059_v12 = vld [vmem:[#allocation299_spill] sm:$0xff] }
 0x5f3   : > { %4396 = vst [vmem:[%s6953_s6 + $0x90] sm:$0xff] %v4332_v48  ;;  %v4270_v38 = vmul.f32 %v6892_v33, %v4072_v39  ;;  %v3112_v26 = vmul.f32 %v6853_v32, %v9045_v42  ;;  %v2402_v36 = vadd.f32 %v2338_v51, %v2014_v30  ;;  %v3500_v5 = vmul.f32 %v6873_v31, %v9046_v44  ;;  %v9054_v39 = vld [vmem:[#allocation70_spill] sm:$0xff]  ;;  %v9060_v6 = vld [vmem:[#allocation5_spill] sm:$0xff]  ;;  %v9062_v44 = vld [vmem:[#allocation180_spill] sm:$0xff] }
 0x5f4   : > { %v3562_v40 = vadd.f32 %v3498_v37, %v3174_v24  ;;  %v3948_v28 = vadd.f32 %v3884_v23, %v3560_v60  ;;  %v1630_v21 = vadd.f32 %v7384_v34, %v1560_v41  ;;  %v1562_v47 = vmul.f32 %v6809_v50, %v9047_v11  ;;  %v9057_v41 = vld [vmem:[#allocation394_spill] sm:$0xff]  ;;  %v9064_v11 = vld [vmem:[#allocation396_spill] sm:$0xff] }
 0x5f5   : > { %v4334_v62 = vadd.f32 %v4270_v38, %v3946_v8  ;;  %v2340_v13 = vmul.f32 %v6836_v29, %v9048_v7  ;;  %v2790_v53 = vadd.f32 %v2726_v58, %v2402_v36  ;;  %v2728_v0 = vmul.f32 %v6847_v17, %v9049_v27  ;;  %v9058_v58 = vld [vmem:[#allocation183_spill] sm:$0xff]  ;;  %v9065_v27 = vld [vmem:[#allocation185_spill] sm:$0xff] }
 0x5f6   : > { %v4080_v59 = vpop.permute.xlu1 %4079  ;;  %v3886_v45 = vmul.f32 %v6890_v4, %v9050_v1  ;;  %v3176_v63 = vadd.f32 %v3112_v26, %v2788_v46  ;;  %v2018_v22 = vadd.f32 %v1954_v25, %v1630_v21  ;;  %v1956_v3 = vmul.f32 %v6818_v54, %v9051_v15  ;;  %v9066_v1 = vld [vmem:[#allocation301_spill] sm:$0xff]  ;;  %v9067_v15 = vld [vmem:[#allocation6_spill] sm:$0xff] }
 0x5f7   : > { %4398 = vst [vmem:[%s6953_s6 + $0xa0] sm:$0xff] %v4334_v62  ;;  %v4272_v19 = vmul.f32 %v6892_v33, %v4080_v59  ;;  %v3114_v9 = vmul.f32 %v6853_v32, %v9052_v2  ;;  %v2404_v52 = vadd.f32 %v2340_v13, %v2016_v14  ;;  %v3502_v43 = vmul.f32 %v6873_v31, %v9053_v57  ;;  %v9061_v59 = vld [vmem:[#allocation71_spill] sm:$0xff]  ;;  %v9069_v57 = vld [vmem:[#allocation182_spill] sm:$0xff] }
 0x5f8   : > { %v3564_v30 = vadd.f32 %v3500_v5, %v3176_v63  ;;  %v3950_v35 = vadd.f32 %v3886_v45, %v3562_v40  ;;  %v1632_v16 = vadd.f32 %v7384_v34, %v1562_v47  ;;  %v1564_v60 = vmul.f32 %v6809_v50, %v9054_v39  ;;  %v9071_v39 = vld [vmem:[#allocation398_spill] sm:$0xff] }
 0x5f9   : > { %v4336_v20 = vadd.f32 %v4272_v19, %v3948_v28  ;;  %v2342_v37 = vmul.f32 %v6836_v29, %v9055_v55  ;;  %v3178_v8 = vadd.f32 %v3114_v9, %v2790_v53  ;;  %v2792_v38 = vadd.f32 %v2728_v0, %v2404_v52  ;;  %v9063_v28 = vld [vmem:[#allocation308_spill] sm:$0xff] }
 0x5fa   : > { %v4088_v48 = vpop.permute.xlu1 %4087  ;;  %v2730_v56 = vmul.f32 %v6847_v17, %v9056_v10  ;;  %v3888_v49 = vmul.f32 %v6890_v4, %v9057_v41  ;;  %v2020_v18 = vadd.f32 %v1956_v3, %v1632_v16  ;;  %v1958_v46 = vmul.f32 %v6818_v54, %v9058_v58  ;;  %v9074_v58 = vld [vmem:[#allocation407_spill] sm:$0xff] }
 0x5fb   : > { %4400 = vst [vmem:[%s6953_s6 + $0xb0] sm:$0xff] %v4336_v20  ;;  %v4274_v61 = vmul.f32 %v6892_v33, %v4088_v48  ;;  %v3116_v23 = vmul.f32 %v6853_v32, %v9059_v12  ;;  %v2406_v24 = vadd.f32 %v2342_v37, %v2018_v22  ;;  %v3566_v14 = vadd.f32 %v3502_v43, %v3178_v8  ;;  %v9068_v48 = vld [vmem:[#allocation72_spill] sm:$0xff] }
 0x5fc   : > { %v3504_v25 = vmul.f32 %v6873_v31, %v9060_v6  ;;  %v3952_v42 = vadd.f32 %v3888_v49, %v3564_v30  ;;  %v1634_v36 = vadd.f32 %v7384_v34, %v1564_v60  ;;  %v1566_v40 = vmul.f32 %v6809_v50, %v9061_v59  ;;  %v9076_v6 = vld [vmem:[#allocation184_spill] sm:$0xff] }
 0x5fd   : > { %v4338_v51 = vadd.f32 %v4274_v61, %v3950_v35  ;;  %v2344_v5 = vmul.f32 %v6836_v29, %v9062_v44  ;;  %v2732_v19 = vmul.f32 %v6847_v17, %v9063_v28  ;;  %v2794_v21 = vadd.f32 %v2730_v56, %v2406_v24  ;;  %v9070_v61 = vld [vmem:[#allocation310_spill] sm:$0xff]  ;;  %v9073_v56 = vld [vmem:[#allocation303_spill] sm:$0xff] }
 0x5fe   : > { %v4096_v62 = vpop.permute.xlu1 %4095  ;;  %v3890_v47 = vmul.f32 %v6890_v4, %v9064_v11  ;;  %v3180_v7 = vadd.f32 %v3116_v23, %v2792_v38  ;;  %v2022_v53 = vadd.f32 %v1958_v46, %v1634_v36  ;;  %v1960_v0 = vmul.f32 %v6818_v54, %v9065_v27  ;;  %v9072_v38 = vld [vmem:[#allocation187_spill] sm:$0xff]  ;;  %v9077_v36 = vld [vmem:[#allocation312_spill] sm:$0xff]  ;;  %v9080_v11 = vld [vmem:[#allocation305_spill] sm:$0xff] }
 0x5ff   : > { %4402 = vst [vmem:[%s6953_s6 + $0xc0] sm:$0xff] %v4338_v51  ;;  %v4276_v26 = vmul.f32 %v6892_v33, %v4096_v62  ;;  %v3118_v45 = vmul.f32 %v6853_v32, %v9066_v1  ;;  %v2408_v63 = vadd.f32 %v2344_v5, %v2020_v18  ;;  %v3506_v3 = vmul.f32 %v6873_v31, %v9067_v15  ;;  %v9075_v62 = vld [vmem:[#allocation74_spill] sm:$0xff]  ;;  %v9081_v27 = vld [vmem:[#allocation409_spill] sm:$0xff] }
 0x600   : > { %v3568_v22 = vadd.f32 %v3504_v25, %v3180_v7  ;;  %v3954_v2 = vadd.f32 %v3890_v47, %v3566_v14  ;;  %v1636_v52 = vadd.f32 %v7384_v34, %v1566_v40  ;;  %v1568_v30 = vmul.f32 %v6809_v50, %v9068_v48  ;;  %v9078_v40 = vld [vmem:[#allocation400_spill] sm:$0xff]  ;;  %v9083_v15 = vld [vmem:[#allocation186_spill] sm:$0xff] }
 0x601   : > { %v4340_v13 = vadd.f32 %v4276_v26, %v3952_v42  ;;  %v2346_v43 = vmul.f32 %v6836_v29, %v9069_v57  ;;  %v2796_v35 = vadd.f32 %v2732_v19, %v2408_v63  ;;  %v2734_v16 = vmul.f32 %v6847_v17, %v9070_v61  ;;  %v9079_v19 = vld [vmem:[#allocation189_spill] sm:$0xff]  ;;  %v9085_v48 = vld [vmem:[#allocation402_spill] sm:$0xff]  ;;  %v9086_v61 = vld [vmem:[#allocation191_spill] sm:$0xff] }
 0x602   : > { %v4104_v20 = vpop.permute.xlu1 %4103  ;;  %v3892_v60 = vmul.f32 %v6890_v4, %v9071_v39  ;;  %v3182_v55 = vadd.f32 %v3118_v45, %v2794_v21  ;;  %v2024_v8 = vadd.f32 %v1960_v0, %v1636_v52  ;;  %v1962_v10 = vmul.f32 %v6818_v54, %v9072_v38  ;;  %v9087_v39 = vld [vmem:[#allocation307_spill] sm:$0xff] }
 0x603   : > { %4404 = vst [vmem:[%s6953_s6 + $0xd0] sm:$0xff] %v4340_v13  ;;  %v4278_v9 = vmul.f32 %v6892_v33, %v4104_v20  ;;  %v3120_v41 = vmul.f32 %v6853_v32, %v9073_v56  ;;  %v2410_v49 = vadd.f32 %v2346_v43, %v2022_v53  ;;  %v3508_v46 = vmul.f32 %v6873_v31, %v9074_v58  ;;  %v9082_v20 = vld [vmem:[#allocation76_spill] sm:$0xff]  ;;  %v9088_v38 = vld [vmem:[#allocation411_spill] sm:$0xff] }
 0x604   : > { %v3570_v18 = vadd.f32 %v3506_v3, %v3182_v55  ;;  %v3956_v12 = vadd.f32 %v3892_v60, %v3568_v22  ;;  %v1638_v24 = vadd.f32 %v7384_v34, %v1568_v30  ;;  %v1570_v14 = vmul.f32 %v6809_v50, %v9075_v62  ;;  %v9090_v58 = vld [vmem:[#allocation188_spill] sm:$0xff]  ;;  %v9092_v62 = vld [vmem:[#allocation403_spill] sm:$0xff] }
 0x605   : > { %v4342_v37 = vadd.f32 %v4278_v9, %v3954_v2  ;;  %v2348_v25 = vmul.f32 %v6836_v29, %v9076_v6  ;;  %v3184_v42 = vadd.f32 %v3120_v41, %v2796_v35  ;;  %v2798_v26 = vadd.f32 %v2734_v16, %v2410_v49  ;;  %v9084_v2 = vld [vmem:[#allocation11_spill] sm:$0xff] }
 0x606   : > { %v4112_v51 = vpop.permute.xlu1 %4111  ;;  %v2736_v59 = vmul.f32 %v6847_v17, %v9077_v36  ;;  %v3894_v44 = vmul.f32 %v6890_v4, %v9078_v40  ;;  %v2026_v28 = vadd.f32 %v1962_v10, %v1638_v24  ;;  %v1964_v21 = vmul.f32 %v6818_v54, %v9079_v19 }
 0x607   : > { %4406 = vst [vmem:[%s6953_s6 + $0xe0] sm:$0xff] %v4342_v37  ;;  %v4280_v23 = vmul.f32 %v6892_v33, %v4112_v51  ;;  %v3122_v47 = vmul.f32 %v6853_v32, %v9080_v11  ;;  %v2412_v7 = vadd.f32 %v2348_v25, %v2024_v8  ;;  %v3572_v53 = vadd.f32 %v3508_v46, %v3184_v42  ;;  %v9089_v51 = vld [vmem:[#allocation77_spill] sm:$0xff] }
 0x608   : > { %v3510_v0 = vmul.f32 %v6873_v31, %v9081_v27  ;;  %v3958_v1 = vadd.f32 %v3894_v44, %v3570_v18  ;;  %v1640_v63 = vadd.f32 %v7384_v34, %v1570_v14  ;;  %v1572_v22 = vmul.f32 %v6809_v50, %v9082_v20  ;;  %v9097_v27 = vld [vmem:[#allocation190_spill] sm:$0xff] }
 0x609   : > { %v4344_v5 = vadd.f32 %v4280_v23, %v3956_v12  ;;  %v2350_v3 = vmul.f32 %v6836_v29, %v9083_v15  ;;  %v2738_v9 = vmul.f32 %v6847_v17, %v9084_v2  ;;  %v2800_v52 = vadd.f32 %v2736_v59, %v2412_v7  ;;  %v9091_v23 = vld [vmem:[#allocation13_spill] sm:$0xff] }
 0x60a   : > { %v4120_v13 = vpop.permute.xlu1 %4119  ;;  %v3896_v30 = vmul.f32 %v6890_v4, %v9085_v48  ;;  %v3186_v57 = vadd.f32 %v3122_v47, %v2798_v26  ;;  %v2028_v35 = vadd.f32 %v1964_v21, %v1640_v63  ;;  %v1966_v16 = vmul.f32 %v6818_v54, %v9086_v61  ;;  %v9093_v26 = vld [vmem:[#allocation193_spill] sm:$0xff]  ;;  %v9098_v63 = vld [vmem:[#allocation15_spill] sm:$0xff]  ;;  %v9102_v61 = vld [vmem:[#allocation18_spill] sm:$0xff] }
 0x60b   : > { %4408 = vst [vmem:[%s6953_s6 + $0xf0] sm:$0xff] %v4344_v5  ;;  %v4282_v45 = vmul.f32 %v6892_v33, %v4120_v13  ;;  %v3124_v60 = vmul.f32 %v6853_v32, %v9087_v39  ;;  %v2414_v55 = vadd.f32 %v2350_v3, %v2026_v28  ;;  %v3512_v10 = vmul.f32 %v6873_v31, %v9088_v38  ;;  %v9095_v28 = vld [vmem:[#allocation413_spill] sm:$0xff]  ;;  %v9096_v13 = vld [vmem:[#allocation79_spill] sm:$0xff]  ;;  %v9104_v38 = vld [vmem:[#allocation192_spill] sm:$0xff] }
 0x60c   : > { %v3574_v8 = vadd.f32 %v3510_v0, %v3186_v57  ;;  %v3960_v56 = vadd.f32 %v3896_v30, %v3572_v53  ;;  %v1642_v49 = vadd.f32 %v7384_v34, %v1572_v22  ;;  %v1574_v18 = vmul.f32 %v6809_v50, %v9089_v51  ;;  %v9094_v34 = vld [vmem:[#allocation309_spill] sm:$0xff]  ;;  %v9099_v22 = vld [vmem:[#allocation404_spill] sm:$0xff]  ;;  %v9101_v48 = vld [vmem:[#allocation311_spill] sm:$0xff] }
 0x60d   : > { %v4346_v43 = vadd.f32 %v4282_v45, %v3958_v1  ;;  %v2352_v46 = vmul.f32 %v6836_v29, %v9090_v58  ;;  %v2802_v12 = vadd.f32 %v2738_v9, %v2414_v55  ;;  %v2740_v24 = vmul.f32 %v6847_v17, %v9091_v23  ;;  %v7884_v47 = vld [vmem:[%s8119_s4] ss:$0 sm:$0xff]  ;;  %v9100_v9 = vld [vmem:[#allocation195_spill] sm:$0xff] }
 0x60e   : > { %v4128_v37 = vpop.permute.xlu1 %4127  ;;  %v3898_v14 = vmul.f32 %v6890_v4, %v9092_v62  ;;  %v3188_v6 = vadd.f32 %v3124_v60, %v2800_v52  ;;  %v2030_v42 = vadd.f32 %v1966_v16, %v1642_v49  ;;  %v1968_v36 = vmul.f32 %v6818_v54, %v9093_v26  ;;  %v9106_v51 = vld [vmem:[#allocation405_spill] sm:$0xff]  ;;  %v9109_v26 = vld [vmem:[#allocation416_spill] sm:$0xff] }
 0x60f   : > { %4410 = vst [vmem:[%s6953_s6 + $0x100] sm:$0xff] %v4346_v43  ;;  %v4284_v41 = vmul.f32 %v6892_v33, %v4128_v37  ;;  %v3126_v59 = vmul.f32 %v6853_v32, %v9094_v34  ;;  %v2416_v40 = vadd.f32 %v2352_v46, %v2028_v35  ;;  %v3514_v19 = vmul.f32 %v6873_v31, %v9095_v28  ;;  %v9103_v37 = vld [vmem:[#allocation81_spill] sm:$0xff]  ;;  %v9111_v28 = vld [vmem:[#allocation194_spill] sm:$0xff] }
 0x610   : > { %v3576_v5 = vadd.f32 %v3512_v10, %v3188_v6  ;;  %v3962_v21 = vadd.f32 %v3898_v14, %v3574_v8  ;;  %v1644_v7 = vadd.f32 %v7884_v47, %v1574_v18  ;;  %v1576_v53 = vmul.f32 %v6809_v50, %v9096_v13  ;;  %v9107_v23 = vld [vmem:[#allocation197_spill] sm:$0xff]  ;;  %v9113_v13 = vld [vmem:[#allocation406_spill] sm:$0xff] }
 0x611   : > { %v4348_v25 = vadd.f32 %v4284_v41, %v3960_v56  ;;  %v2354_v0 = vmul.f32 %v6836_v29, %v9097_v27  ;;  %v3190_v1 = vadd.f32 %v3126_v59, %v2802_v12  ;;  %v2804_v45 = vadd.f32 %v2740_v24, %v2416_v40  ;;  %v9105_v56 = vld [vmem:[#allocation317_spill] sm:$0xff] }
 0x612   : > { %v4136_v44 = vpop.permute.xlu1 %4135  ;;  %v2742_v20 = vmul.f32 %v6847_v17, %v9098_v63  ;;  %v3900_v15 = vmul.f32 %v6890_v4, %v9099_v22  ;;  %v2032_v2 = vadd.f32 %v1968_v36, %v1644_v7  ;;  %v1970_v52 = vmul.f32 %v6818_v54, %v9100_v9  ;;  %v9108_v62 = vld [vmem:[#allocation313_spill] sm:$0xff]  ;;  %v9116_v9 = vld [vmem:[#allocation418_spill] sm:$0xff] }
 0x613   : > { %4412 = vst [vmem:[%s6953_s6 + $0x110] sm:$0xff] %v4348_v25  ;;  %v4286_v11 = vmul.f32 %v6892_v33, %v4136_v44  ;;  %v3128_v30 = vmul.f32 %v6853_v32, %v9101_v48  ;;  %v2418_v57 = vadd.f32 %v2354_v0, %v2030_v42  ;;  %v3578_v35 = vadd.f32 %v3514_v19, %v3190_v1  ;;  %v9110_v44 = vld [vmem:[#allocation82_spill] sm:$0xff] }
 0x614   : > { %v3516_v16 = vmul.f32 %v6873_v31, %v9102_v61  ;;  %v3964_v39 = vadd.f32 %v3900_v15, %v3576_v5  ;;  %v1646_v55 = vadd.f32 %v7884_v47, %v1576_v53  ;;  %v1578_v8 = vmul.f32 %v6809_v50, %v9103_v37  ;;  %v9118_v61 = vld [vmem:[#allocation196_spill] sm:$0xff] }
 0x615   : > { %v4350_v3 = vadd.f32 %v4286_v11, %v3962_v21  ;;  %v2356_v10 = vmul.f32 %v6836_v29, %v9104_v38  ;;  %v2744_v41 = vmul.f32 %v6847_v17, %v9105_v56  ;;  %v2806_v49 = vadd.f32 %v2742_v20, %v2418_v57  ;;  %v9112_v11 = vld [vmem:[#allocation20_spill] sm:$0xff]  ;;  %v9115_v20 = vld [vmem:[#allocation314_spill] sm:$0xff] }
 0x616   : > { %v4144_v43 = vpop.permute.xlu1 %4143  ;;  %v3902_v18 = vmul.f32 %v6890_v4, %v9106_v51  ;;  %v3192_v58 = vadd.f32 %v3128_v30, %v2804_v45  ;;  %v2034_v12 = vadd.f32 %v1970_v52, %v1646_v55  ;;  %v1972_v24 = vmul.f32 %v6818_v54, %v9107_v23  ;;  %v9114_v45 = vld [vmem:[#allocation199_spill] sm:$0xff]  ;;  %v9119_v55 = vld [vmem:[#allocation320_spill] sm:$0xff] }
 0x617   : > { %4414 = vst [vmem:[%s6953_s6 + $0x120] sm:$0xff] %v4350_v3  ;;  %v4288_v60 = vmul.f32 %v6892_v33, %v4144_v43  ;;  %v3130_v14 = vmul.f32 %v6853_v32, %v9108_v62  ;;  %v2420_v6 = vadd.f32 %v2356_v10, %v2032_v2  ;;  %v3518_v36 = vmul.f32 %v6873_v31, %v9109_v26  ;;  %v9117_v43 = vld [vmem:[#allocation84_spill] sm:$0xff]  ;;  %v9122_v51 = vld [vmem:[#allocation315_spill] sm:$0xff]  ;;  %v9125_v26 = vld [vmem:[#allocation198_spill] sm:$0xff] }
 0x618   : > { %v3580_v42 = vadd.f32 %v3516_v16, %v3192_v58  ;;  %v3966_v34 = vadd.f32 %v3902_v18, %v3578_v35  ;;  %v1648_v40 = vadd.f32 %v7884_v47, %v1578_v8  ;;  %v1580_v5 = vmul.f32 %v6809_v50, %v9110_v44  ;;  %v9120_v8 = vld [vmem:[#allocation408_spill] sm:$0xff]  ;;  %v9127_v44 = vld [vmem:[#allocation410_spill] sm:$0xff] }
 0x619   : > { %v4352_v46 = vadd.f32 %v4288_v60, %v3964_v39  ;;  %v2358_v19 = vmul.f32 %v6836_v29, %v9111_v28  ;;  %v2808_v21 = vadd.f32 %v2744_v41, %v2420_v6  ;;  %v2746_v7 = vmul.f32 %v6847_v17, %v9112_v11  ;;  %v9121_v41 = vld [vmem:[#allocation21_spill] sm:$0xff]  ;;  %v9123_v23 = vld [vmem:[#allocation420_spill] sm:$0xff] }
 0x61a   : > { %v4152_v25 = vpop.permute.xlu1 %4151  ;;  %v3904_v53 = vmul.f32 %v6890_v4, %v9113_v13  ;;  %v3194_v27 = vadd.f32 %v3130_v14, %v2806_v49  ;;  %v2036_v1 = vadd.f32 %v1972_v24, %v1648_v40  ;;  %v1974_v63 = vmul.f32 %v6818_v54, %v9114_v45  ;;  %v9128_v11 = vld [vmem:[#allocation45_spill] sm:$0xff]  ;;  %v9129_v13 = vld [vmem:[#allocation316_spill] sm:$0xff]  ;;  %v9130_v45 = vld [vmem:[#allocation422_spill] sm:$0xff] }
 0x61b   : > { %4416 = vst [vmem:[%s6953_s6 + $0x130] sm:$0xff] %v4352_v46  ;;  %v4290_v59 = vmul.f32 %v6892_v33, %v4152_v25  ;;  %v3132_v22 = vmul.f32 %v6853_v32, %v9115_v20  ;;  %v2422_v15 = vadd.f32 %v2358_v19, %v2034_v12  ;;  %v3520_v52 = vmul.f32 %v6873_v31, %v9116_v9  ;;  %v9124_v25 = vld [vmem:[#allocation86_spill] sm:$0xff]  ;;  %v9132_v9 = vld [vmem:[#allocation200_spill] sm:$0xff] }
 0x61c   : > { %v3582_v2 = vadd.f32 %v3518_v36, %v3194_v27  ;;  %v3968_v48 = vadd.f32 %v3904_v53, %v3580_v42  ;;  %v1650_v57 = vadd.f32 %v7884_v47, %v1580_v5  ;;  %v1582_v35 = vmul.f32 %v6809_v50, %v9117_v43  ;;  %v9134_v43 = vld [vmem:[#allocation412_spill] sm:$0xff] }
 0x61d   : > { %v4354_v0 = vadd.f32 %v4290_v59, %v3966_v34  ;;  %v2360_v16 = vmul.f32 %v6836_v29, %v9118_v61  ;;  %v3196_v39 = vadd.f32 %v3132_v22, %v2808_v21  ;;  %v2810_v60 = vadd.f32 %v2746_v7, %v2422_v15  ;;  %v9126_v34 = vld [vmem:[#allocation322_spill] sm:$0xff] }
 0x61e   : > { %v4160_v3 = vpop.permute.xlu1 %4159  ;;  %v2748_v37 = vmul.f32 %v6847_v17, %v9119_v55  ;;  %v3906_v38 = vmul.f32 %v6890_v4, %v9120_v8  ;;  %v2038_v56 = vadd.f32 %v1974_v63, %v1650_v57  ;;  %v1976_v49 = vmul.f32 %v6818_v54, %v9121_v41  ;;  %v9137_v41 = vld [vmem:[#allocation49_spill] sm:$0xff] }
 0x61f   : > { %4418 = vst [vmem:[%s6953_s6 + $0x140] sm:$0xff] %v4354_v0  ;;  %v4292_v30 = vmul.f32 %v6892_v33, %v4160_v3  ;;  %v3134_v18 = vmul.f32 %v6853_v32, %v9122_v51  ;;  %v2424_v58 = vadd.f32 %v2360_v16, %v2036_v1  ;;  %v3584_v12 = vadd.f32 %v3520_v52, %v3196_v39  ;;  %v9131_v3 = vld [vmem:[#allocation87_spill] sm:$0xff] }
 0x620   : > { %v3522_v24 = vmul.f32 %v6873_v31, %v9123_v23  ;;  %v3970_v62 = vadd.f32 %v3906_v38, %v3582_v2  ;;  %v1652_v6 = vadd.f32 %v7884_v47, %v1582_v35  ;;  %v1584_v42 = vmul.f32 %v6809_v50, %v9124_v25  ;;  %v9139_v23 = vld [vmem:[#allocation201_spill] sm:$0xff] }
 0x621   : > { %v4356_v10 = vadd.f32 %v4292_v30, %v3968_v48  ;;  %v2362_v36 = vmul.f32 %v6836_v29, %v9125_v26  ;;  %v2750_v59 = vmul.f32 %v6847_v17, %v9126_v34  ;;  %v2812_v40 = vadd.f32 %v2748_v37, %v2424_v58  ;;  %v9133_v30 = vld [vmem:[#allocation324_spill] sm:$0xff]  ;;  %v9136_v37 = vld [vmem:[#allocation318_spill] sm:$0xff] }
 0x622   : > { %v4168_v46 = vpop.permute.xlu1 %4167  ;;  %v3908_v5 = vmul.f32 %v6890_v4, %v9127_v44  ;;  %v3198_v28 = vadd.f32 %v3134_v18, %v2810_v60  ;;  %v2040_v21 = vadd.f32 %v1976_v49, %v1652_v6  ;;  %v1978_v7 = vmul.f32 %v6818_v54, %v9128_v11  ;;  %v9135_v60 = vld [vmem:[#allocation47_spill] sm:$0xff]  ;;  %v9140_v6 = vld [vmem:[#allocation326_spill] sm:$0xff]  ;;  %v9144_v11 = vld [vmem:[#allocation17_spill] sm:$0xff] }
 0x623   : > { %4420 = vst [vmem:[%s6953_s6 + $0x150] sm:$0xff] %v4356_v10  ;;  %v4294_v14 = vmul.f32 %v6892_v33, %v4168_v46  ;;  %v3136_v53 = vmul.f32 %v6853_v32, %v9129_v13  ;;  %v2426_v27 = vadd.f32 %v2362_v36, %v2038_v56  ;;  %v3524_v63 = vmul.f32 %v6873_v31, %v9130_v45  ;;  %v9138_v46 = vld [vmem:[#allocation89_spill] sm:$0xff]  ;;  %v9143_v44 = vld [vmem:[#allocation319_spill] sm:$0xff]  ;;  %v9146_v45 = vld [vmem:[#allocation202_spill] sm:$0xff] }
 0x624   : > { %v3586_v1 = vadd.f32 %v3522_v24, %v3198_v28  ;;  %v3972_v20 = vadd.f32 %v3908_v5, %v3584_v12  ;;  %v1654_v15 = vadd.f32 %v7884_v47, %v1584_v42  ;;  %v1586_v2 = vmul.f32 %v6809_v50, %v9131_v3  ;;  %v9141_v42 = vld [vmem:[#allocation414_spill] sm:$0xff]  ;;  %v9148_v3 = vld [vmem:[#allocation415_spill] sm:$0xff] }
 0x625   : > { %v4358_v19 = vadd.f32 %v4294_v14, %v3970_v62  ;;  %v2364_v52 = vmul.f32 %v6836_v29, %v9132_v9  ;;  %v2814_v48 = vadd.f32 %v2750_v59, %v2426_v27  ;;  %v2752_v57 = vmul.f32 %v6847_v17, %v9133_v30  ;;  %v9142_v59 = vld [vmem:[#allocation204_spill] sm:$0xff]  ;;  %v9149_v30 = vld [vmem:[#allocation206_spill] sm:$0xff] }
 0x626   : > { %v4176_v0 = vpop.permute.xlu1 %4175  ;;  %v3910_v35 = vmul.f32 %v6890_v4, %v9134_v43  ;;  %v3200_v61 = vadd.f32 %v3136_v53, %v2812_v40  ;;  %v2042_v39 = vadd.f32 %v1978_v7, %v1654_v15  ;;  %v1980_v55 = vmul.f32 %v6818_v54, %v9135_v60  ;;  %v9150_v43 = vld [vmem:[#allocation321_spill] sm:$0xff] }
 0x627   : > { %4422 = vst [vmem:[%s6953_s6 + $0x160] sm:$0xff] %v4358_v19  ;;  %v4296_v22 = vmul.f32 %v6892_v33, %v4176_v0  ;;  %v3138_v8 = vmul.f32 %v6853_v32, %v9136_v37  ;;  %v2428_v38 = vadd.f32 %v2364_v52, %v2040_v21  ;;  %v3526_v49 = vmul.f32 %v6873_v31, %v9137_v41  ;;  %v9145_v0 = vld [vmem:[#allocation91_spill] sm:$0xff] }
 0x628   : > { %v3588_v56 = vadd.f32 %v3524_v63, %v3200_v61  ;;  %v3974_v51 = vadd.f32 %v3910_v35, %v3586_v1  ;;  %v1656_v58 = vadd.f32 %v7884_v47, %v1586_v2  ;;  %v1588_v12 = vmul.f32 %v6809_v50, %v9138_v46 }
 0x629   : > { %v4360_v16 = vadd.f32 %v4296_v22, %v3972_v20  ;;  %v2366_v24 = vmul.f32 %v6836_v29, %v9139_v23  ;;  %v3202_v62 = vadd.f32 %v3138_v8, %v2814_v48  ;;  %v2816_v14 = vadd.f32 %v2752_v57, %v2428_v38  ;;  %v9147_v20 = vld [vmem:[#allocation51_spill] sm:$0xff] }
 0x62a   : > { %v4184_v10 = vpop.permute.xlu1 %4183  ;;  %v2754_v25 = vmul.f32 %v6847_v17, %v9140_v6  ;;  %v3912_v26 = vmul.f32 %v6890_v4, %v9141_v42  ;;  %v2044_v34 = vadd.f32 %v1980_v55, %v1656_v58  ;;  %v1982_v40 = vmul.f32 %v6818_v54, %v9142_v59  ;;  %v9152_v38 = vld [vmem:[#allocation203_spill] sm:$0xff] }
 0x62b   : > { %4424 = vst [vmem:[%s6953_s6 + $0x170] sm:$0xff] %v4360_v16  ;;  %v4298_v18 = vmul.f32 %v6892_v33, %v4184_v10  ;;  %v3140_v5 = vmul.f32 %v6853_v32, %v9143_v44  ;;  %v2430_v28 = vadd.f32 %v2366_v24, %v2042_v39  ;;  %v3590_v21 = vadd.f32 %v3526_v49, %v3202_v62  ;;  %v9151_v39 = vld [vmem:[#allocation73_spill] sm:$0xff] }
 0x62c   : > { %v3528_v7 = vmul.f32 %v6873_v31, %v9144_v11  ;;  %v3976_v13 = vadd.f32 %v3912_v26, %v3588_v56  ;;  %v1658_v27 = vadd.f32 %v7884_v47, %v1588_v12  ;;  %v1590_v1 = vmul.f32 %v6809_v50, %v9145_v0  ;;  %v9153_v56 = vld [vmem:[#allocation329_spill] sm:$0xff]  ;;  %v9155_v12 = vld [vmem:[#allocation323_spill] sm:$0xff] }
 0x62d   : > { %v4362_v36 = vadd.f32 %v4298_v18, %v3974_v51  ;;  %v2368_v63 = vmul.f32 %v6836_v29, %v9146_v45  ;;  %v2756_v22 = vmul.f32 %v6847_v17, %v9147_v20  ;;  %v2818_v15 = vadd.f32 %v2754_v25, %v2430_v28  ;;  %v9154_v49 = vld [vmem:[#allocation417_spill] sm:$0xff] }
 0x62e   : > { %v4192_v19 = vpop.permute.xlu1 %4191  ;;  %v3914_v2 = vmul.f32 %v6890_v4, %v9148_v3  ;;  %v3204_v9 = vadd.f32 %v3140_v5, %v2816_v14  ;;  %v2046_v48 = vadd.f32 %v1982_v40, %v1658_v27  ;;  %v1984_v57 = vmul.f32 %v6818_v54, %v9149_v30  ;;  %v9157_v26 = vld [vmem:[#allocation205_spill] sm:$0xff]  ;;  %v9158_v40 = vld [vmem:[#allocation331_spill] sm:$0xff]  ;;  %v9161_v27 = vld [vmem:[#allocation208_spill] sm:$0xff] }
 0x62f   : > { %4426 = vst [vmem:[%s6953_s6 + $0x180] sm:$0xff] %v4362_v36  ;;  %v4300_v53 = vmul.f32 %v6892_v33, %v4192_v19  ;;  %v3142_v35 = vmul.f32 %v6853_v32, %v9150_v43  ;;  %v2432_v50 = vadd.f32 %v2368_v63, %v2044_v34  ;;  %v3530_v60 = vmul.f32 %v6873_v31, %v9151_v39  ;;  %v9159_v5 = vld [vmem:[#allocation419_spill] sm:$0xff] }
 0x630   : > { %v3592_v16 = vadd.f32 %v3528_v7, %v3204_v9  ;;  %v3978_v55 = vadd.f32 %v3914_v2, %v3590_v21  ;;  %v1660_v8 = vadd.f32 %v7884_v47, %v1590_v1  ;;  %v2370_v10 = vmul.f32 %v6836_v29, %v9152_v38  ;;  %v9156_v47 = vld [vmem:[#allocation92_spill] sm:$0xff]  ;;  %v9160_v21 = vld [vmem:[#allocation325_spill] sm:$0xff]  ;;  %v9165_v43 = vld [vmem:[#allocation423_spill] sm:$0xff] }
 0x631   : > { %v4364_v52 = vadd.f32 %v4300_v53, %v3976_v13  ;;  %v2820_v54 = vadd.f32 %v2756_v22, %v2432_v50  ;;  %v2758_v41 = vmul.f32 %v6847_v17, %v9153_v56  ;;  %v3916_v51 = vmul.f32 %v6890_v4, %v9154_v49 }
 0x632   : > { %v4200_v61 = vpop.permute.xlu1 %4199  ;;  %v3206_v18 = vadd.f32 %v3142_v35, %v2818_v15  ;;  %v2048_v46 = vadd.f32 %v1984_v57, %v1660_v8  ;;  %v3144_v23 = vmul.f32 %v6853_v32, %v9155_v12  ;;  %v2434_v24 = vadd.f32 %v2370_v10, %v2046_v48  ;;  %v9163_v15 = vld [vmem:[#allocation327_spill] sm:$0xff] }
 0x633   : > { %4428 = vst [vmem:[%s6953_s6 + $0x190] sm:$0xff] %v4364_v52  ;;  %v4302_v37 = vmul.f32 %v6892_v33, %v4200_v61  ;;  %v3532_v6 = vmul.f32 %v6873_v31, %v9156_v47  ;;  %v3980_v25 = vadd.f32 %v3916_v51, %v3592_v16  ;;  %v2372_v36 = vmul.f32 %v6836_v29, %v9157_v26  ;;  %v9164_v52 = vld [vmem:[#allocation78_spill] sm:$0xff] }
 0x634   : > { %v3594_v14 = vadd.f32 %v3530_v60, %v3206_v18  ;;  %v3208_v34 = vadd.f32 %v3144_v23, %v2820_v54  ;;  %v2822_v59 = vadd.f32 %v2758_v41, %v2434_v24  ;;  %v2760_v44 = vmul.f32 %v6847_v17, %v9158_v40  ;;  %v9162_v17 = vld [vmem:[#allocation421_spill] sm:$0xff] }
 0x635   : > { %v4366_v58 = vadd.f32 %v4302_v37, %v3978_v55  ;;  %v3918_v28 = vmul.f32 %v6890_v4, %v9159_v5  ;;  %v3146_v11 = vmul.f32 %v6853_v32, %v9160_v21  ;;  %v2436_v7 = vadd.f32 %v2372_v36, %v2048_v46  ;;  %v9166_v55 = vld [vmem:[#allocation424_spill] sm:$0xff] }
 0x636   : > { %v4208_v62 = vpop.permute.xlu1 %4207  ;;  %v3596_v53 = vadd.f32 %v3532_v6, %v3208_v34  ;;  %v3534_v0 = vmul.f32 %v6873_v31, %v9161_v27  ;;  %v3920_v63 = vmul.f32 %v6890_v4, %v9162_v17  ;;  %v3148_v3 = vmul.f32 %v6853_v32, %v9163_v15 }
 0x637   : > { %4430 = vst [vmem:[%s6953_s6 + $0x1a0] sm:$0xff] %v4366_v58  ;;  %v4304_v42 = vmul.f32 %v6892_v33, %v4208_v62  ;;  %v3982_v29 = vadd.f32 %v3918_v28, %v3594_v14  ;;  %v2824_v45 = vadd.f32 %v2760_v44, %v2436_v7  ;;  %v3210_v20 = vadd.f32 %v3146_v11, %v2822_v59 }
 0x638   : > { %v3536_v48 = vmul.f32 %v6873_v31, %v9164_v52  ;;  %v3984_v30 = vadd.f32 %v3920_v63, %v3596_v53  ;;  %v3922_v35 = vmul.f32 %v6890_v4, %v9165_v43  ;;  %v3924_v31 = vmul.f32 %v6890_v4, %v9166_v55 }
 0x639   : > { %v4368_v19 = vadd.f32 %v4304_v42, %v3980_v25  ;;  %v3598_v9 = vadd.f32 %v3534_v0, %v3210_v20  ;;  %v3212_v50 = vadd.f32 %v3148_v3, %v2824_v45 }
 0x63a   : > { %v4216_v13 = vpop.permute.xlu1 %4215 }
 0x63b   : > { %4432 = vst [vmem:[%s6953_s6 + $0x1b0] sm:$0xff] %v4368_v19  ;;  %v4306_v1 = vmul.f32 %v6892_v33, %v4216_v13  ;;  %v3600_v32 = vadd.f32 %v3536_v48, %v3212_v50  ;;  %v3986_v39 = vadd.f32 %v3922_v35, %v3598_v9 }
 0x63d   : > { %v4370_v22 = vadd.f32 %v4306_v1, %v3982_v29  ;;  %v3988_v38 = vadd.f32 %v3924_v31, %v3600_v32 }
 0x63e   : > { %v4224_v2 = vpop.permute.xlu1 %4223 }
 0x63f   : > { %4434 = vst [vmem:[%s6953_s6 + $0x1c0] sm:$0xff] %v4370_v22  ;;  %v4308_v57 = vmul.f32 %v6892_v33, %v4224_v2 }
 0x641   : > { %v4372_v61 = vadd.f32 %v4308_v57, %v3984_v30 }
 0x642   : > { %v4232_v16 = vpop.permute.xlu1 %4231 }
 0x643   : > { %4436 = vst [vmem:[%s6953_s6 + $0x1d0] sm:$0xff] %v4372_v61  ;;  %v4310_v60 = vmul.f32 %v6892_v33, %v4232_v16 }
 0x645   : > { %v4374_v37 = vadd.f32 %v4310_v60, %v3986_v39 }
 0x646   : > { %v4240_v8 = vpop.permute.xlu1 %4239 }
 0x647   : > { %4438 = vst [vmem:[%s6953_s6 + $0x1e0] sm:$0xff] %v4374_v37  ;;  %v4312_v10 = vmul.f32 %v6892_v33, %v4240_v8 }
 0x649   : > { %v4376_v54 = vadd.f32 %v4312_v10, %v3988_v38 }
 0x64b   : > { %4440 = vst [vmem:[%s6953_s6 + $0x1f0] sm:$0xff] %v4376_v54 }
 0x64c   : > { %4746 = shalt.err (!%p4743_p3)
}
 0x64d   : > { %s4747_s26 = scalar_lea.hbm %s8068_s15, 8192  ;;  %s4751_s7 = scalar_lea.hbm %s8120_s5, 16384 }
 0x64e   : > { %p4748_p4 = scmp.ne.s32.totalorder %s8068_s15, %s4747_s26  ;;  %p4752_p9 = scmp.lt.s32.totalorder %s8068_s15, %s8120_s5 }
 0x64f   : > { %p4753_p10 = scmp.lt.s32.totalorder %s4751_s7, %s4747_s26 }
 0x650   : > { %p4749_p7 = pnand %p4748_p4, %p4874_p5 }
 0x651   : > { %p4754_p11 = por %p4753_p10, %p4752_p9 }
 0x652   : > { %p4750_p8 = pneg %p4749_p7 }
 0x654   : > { %p4755_p12 = pnand %p4754_p11, %p4750_p8 }
 0x656   : > { %4758 = shalt.err (!%p4755_p12)
}
 0x657   : > { %s4804_s10 = smov 128   ;;  %s4805_s11 = smov 8  }
 0x658   : > { %4533 = dma.vmem_to_hbm [thread:$0]  (%p4874_p5), %s8070_s12, 8192, %s8068_s15, %s8075_s22, %s4804_s10, %s4804_s10, %s4805_s11  }
 0x659 PF: > { %p4539_p13 = scmp.ge.s32.totalorder %s4793_s21, 2  ;;  %s4471_s13 = sand.u32 1, %s4781_s18  }
 0x65a   : > { %s4472_s14 = scalar_lea.sflag [#allocation3], %s4471_s13 }
 0x65b   : > { %p4536_p0 = pnand %p4539_p13, %p4878_p6 }
 0x65d   : > { %p4537_p1 = pneg %p4536_p0 }
 0x65f   : > { %4776 = dma.done.wait (%p4537_p1), %s4472_s14, 8192  }
 0x660   : > { %4778 = vsyncadd (%p4537_p1), %s4472_s14, 4294959104  ;;  %p15_p2 = scmp.ge.s32.totalorder %s4861_s24, 4   ;;  %s9167_s18 = smov %s4785_s19 }
 0x661   : > { %s9168_s19 = smov %s4789_s20  ;;  %s9169_s20 = smov %s4872_s27 }
 0x662   : > { %s9170_s21 = smov %s4861_s24  ;;  %17 = sbr.rel (!%p15_p2) target bundleno = 3 (0x3), region = 75 }
 0x667   :  { %4477 = vsyncpa [#allocation3], 1 }
 0x668   :  { %4479 = vsyncpa [#allocation3 + $0x1], 1 }

</bundles_post_ra>
